<compile_context>
chip_gen: v6e
topology: v6e:2x2x1
jax: 0.10.0
libtpu: 0.0.40
codegen_flags: <defaults>
</compile_context>

<pallas_src>
import math

import jax
import jax.numpy as jnp
from jax.experimental import pallas as pl
from jax.experimental.pallas import tpu as pltpu


def siren_mlp_kernel(w0_ref, b0_ref, w1_ref, b1_ref, w2_ref, b2_ref,
                     x_ref, o_ref):
    # x_ref: (in_size, TN) tile of input points, feature-major.
    x = x_ref[...].astype(jnp.float32)

    # Layer 0: SIREN layer (in_size -> hidden); omega already folded into w0/b0.
    h = jnp.dot(w0_ref[...], x, preferred_element_type=jnp.float32) + b0_ref[...]
    h = jnp.sin(h)

    # Layer 1: SIREN layer (hidden -> hidden); omega already folded into w1/b1.
    h = jnp.dot(w1_ref[...], h, preferred_element_type=jnp.float32) + b1_ref[...]
    h = jnp.sin(h)

    # Layer 2: plain Linear (hidden -> out), no activation.
    y = jnp.dot(w2_ref[...], h, preferred_element_type=jnp.float32) + b2_ref[...]

    o_ref[...] = y.astype(o_ref.dtype)


def _choose_tile(n, tile_n):
    """Lane-aligned tile; capped so the grid has >= 2 steps when possible."""
    if n >= 256:
        cap = max(128, ((n // 2) // 128) * 128)
    else:
        cap = 128
    return max(128, min(tile_n, cap))


def siren_mlp(x, params, *, omega=30.0, tile_n=1024):
    """x: (N, in_size) float32.  params: PyTorch-layout weights/biases.
       Returns (N, out_size)."""
    N, in_size = x.shape
    w0, b0 = params["w0"], params["b0"]   # (H, in_size), (H,)
    w1, b1 = params["w1"], params["b1"]   # (H, H),       (H,)
    w2, b2 = params["w2"], params["b2"]   # (out, H),     (out,)
    hidden = w0.shape[0]
    out_size = w2.shape[0]

    # Fold omega into the SIREN layers: sin(omega*(Wx+b)) == sin((omega W)x + omega b).
    w0k = (omega * w0).astype(jnp.float32)
    b0k = (omega * b0).astype(jnp.float32).reshape(hidden, 1)
    w1k = (omega * w1).astype(jnp.float32)
    b1k = (omega * b1).astype(jnp.float32).reshape(hidden, 1)
    w2k = w2.astype(jnp.float32)
    b2k = b2.astype(jnp.float32).reshape(out_size, 1)

    tn = _choose_tile(N, tile_n)
    n_pad = pl.cdiv(N, tn) * tn

    # Feature-major slab: (in_size, N_pad).  Layout plumbing stays in the wrapper.
    xt = x.T
    if n_pad != N:
        xt = jnp.pad(xt, ((0, 0), (0, n_pad - N)))

    grid = (n_pad // tn,)
    full = lambda i: (0, 0)   # small weight/bias arrays resident every step

    yt = pl.pallas_call(
        siren_mlp_kernel,
        out_shape=jax.ShapeDtypeStruct((out_size, n_pad), x.dtype),
        grid_spec=pltpu.PrefetchScalarGridSpec(
            num_scalar_prefetch=0,
            grid=grid,
            in_specs=[
                pl.BlockSpec((hidden, in_size), full),   # w0 (omega-folded)
                pl.BlockSpec((hidden, 1), full),         # b0 (omega-folded)
                pl.BlockSpec((hidden, hidden), full),    # w1 (omega-folded)
                pl.BlockSpec((hidden, 1), full),         # b1 (omega-folded)
                pl.BlockSpec((out_size, hidden), full),  # w2
                pl.BlockSpec((out_size, 1), full),       # b2
                pl.BlockSpec((in_size, tn), lambda i: (0, i)),   # x tile
            ],
            out_specs=pl.BlockSpec((out_size, tn), lambda i: (0, i)),
        ),
        compiler_params=pltpu.CompilerParams(
            dimension_semantics=("parallel",)),
    )(w0k, b0k, w1k, b1k, w2k, b2k, xt)

    # Back to row-major (N, out_size); drop padding.
    return yt[:, :N].T


def init_params(key, in_size, hidden_size, out_size, omega):
    """Deterministic SIREN init (SIREN paper supplement Sec 1.5), in PyTorch
    (out_features, in_features) weight layout, biases (out_features,)."""
    k = jax.random.split(key, 6)
    # Layer 0 weights: U(-1/in, 1/in)
    w0 = jax.random.uniform(k[0], (hidden_size, in_size), jnp.float32,
                            -1.0 / in_size, 1.0 / in_size)
    # Hidden SIREN layer: U(+-sqrt(6/fan_in)/omega)
    bnd1 = math.sqrt(6.0 / hidden_size) / omega
    w1 = jax.random.uniform(k[1], (hidden_size, hidden_size), jnp.float32,
                            -bnd1, bnd1)
    # Final linear: U(+-sqrt(6/fan_in)/omega)
    bnd2 = math.sqrt(6.0 / hidden_size) / omega
    w2 = jax.random.uniform(k[2], (out_size, hidden_size), jnp.float32,
                            -bnd2, bnd2)
    # Biases: PyTorch nn.Linear default U(+-1/sqrt(fan_in)); kept deterministic.
    b0 = jax.random.uniform(k[3], (hidden_size,), jnp.float32,
                            -1.0 / math.sqrt(in_size), 1.0 / math.sqrt(in_size))
    b1 = jax.random.uniform(k[4], (hidden_size,), jnp.float32,
                            -1.0 / math.sqrt(hidden_size), 1.0 / math.sqrt(hidden_size))
    b2 = jax.random.uniform(k[5], (out_size,), jnp.float32,
                            -1.0 / math.sqrt(hidden_size), 1.0 / math.sqrt(hidden_size))
    return {"w0": w0, "b0": b0, "w1": w1, "b1": b1, "w2": w2, "b2": b2}


def siren_mlp_ref(x, params, omega):
    h = jnp.sin(omega * (x @ params["w0"].T + params["b0"]))
    h = jnp.sin(omega * (h @ params["w1"].T + params["b1"]))
    return h @ params["w2"].T + params["b2"]


if __name__ == "__main__":
    in_size, hidden_size, out_size = 2, 32, 3
    omega = 30.0
    N = 1000  # number of coordinate points; NOT a tile multiple (exercises padding)

    key = jax.random.PRNGKey(0)
    kp, kx = jax.random.split(key)
    params = init_params(kp, in_size, hidden_size, out_size, omega)
    x = jax.random.uniform(kx, (N, in_size), jnp.float32, -1.0, 1.0)

    y = siren_mlp(x, params, omega=omega, tile_n=1024)
    y = jax.block_until_ready(y)

    y_ref = siren_mlp_ref(x, params, omega)
    assert y.shape == (N, out_size)
    # omega-folding differs from the reference only by fp rounding inside sin args.
    assert jnp.allclose(y, y_ref, atol=1e-3, rtol=1e-3), float(
        jnp.max(jnp.abs(y - y_ref)))

    print("KERNEL_OK")
</pallas_src>

<mosaic_0001>
module attributes {stable_mosaic.version = 11 : i64} {
  func.func @siren_mlp_kernel(%arg0: i32, %arg1: memref<32x2xf32, #tpu.memory_space<vmem>>, %arg2: memref<32x1xf32, #tpu.memory_space<vmem>>, %arg3: memref<32x32xf32, #tpu.memory_space<vmem>>, %arg4: memref<32x1xf32, #tpu.memory_space<vmem>>, %arg5: memref<3x32xf32, #tpu.memory_space<vmem>>, %arg6: memref<3x1xf32, #tpu.memory_space<vmem>>, %arg7: memref<2x384xf32, #tpu.memory_space<vmem>>, %arg8: memref<3x384xf32, #tpu.memory_space<vmem>>) attributes {dimension_semantics = [#tpu.dimension_semantics<parallel>], iteration_bounds = array<i64: 3>, scalar_prefetch = 0 : i64, scratch_operands = 0 : i64, tpu.core_type = #tpu.core_type<tc>, window_params = [{pipeline_mode = #tpu.pipeline_mode<synchronous>, transform_indices = @transform_0, window_bounds = array<i64: 32, 2>}, {pipeline_mode = #tpu.pipeline_mode<synchronous>, transform_indices = @transform_1, window_bounds = array<i64: 32, 1>}, {pipeline_mode = #tpu.pipeline_mode<synchronous>, transform_indices = @transform_2, window_bounds = array<i64: 32, 32>}, {pipeline_mode = #tpu.pipeline_mode<synchronous>, transform_indices = @transform_3, window_bounds = array<i64: 32, 1>}, {pipeline_mode = #tpu.pipeline_mode<synchronous>, transform_indices = @transform_4, window_bounds = array<i64: 3, 32>}, {pipeline_mode = #tpu.pipeline_mode<synchronous>, transform_indices = @transform_5, window_bounds = array<i64: 3, 1>}, {transform_indices = @transform_6, window_bounds = array<i64: 2, 384>}, {transform_indices = @transform_7, window_bounds = array<i64: 3, 384>}]} {
    %c0 = arith.constant 0 : index
    %c0_0 = arith.constant 0 : index
    %0 = vector.load %arg7[%c0, %c0_0] : memref<2x384xf32, #tpu.memory_space<vmem>>, vector<2x384xf32>
    %c0_1 = arith.constant 0 : index
    %c0_2 = arith.constant 0 : index
    %1 = vector.load %arg1[%c0_1, %c0_2] : memref<32x2xf32, #tpu.memory_space<vmem>>, vector<32x2xf32>
    %cst = arith.constant dense<0.000000e+00> : vector<32x384xf32>
    %2 = tpu.matmul %1, %0, %cst {dimension_numbers = #tpu.dot_dimension_numbers<[1], [0], [0], [1], [0, 0, 1, 1], [], []>} : vector<32x2xf32>, vector<2x384xf32>, vector<32x384xf32> -> vector<32x384xf32>
    %c0_3 = arith.constant 0 : index
    %c0_4 = arith.constant 0 : index
    %3 = vector.load %arg2[%c0_3, %c0_4] : memref<32x1xf32, #tpu.memory_space<vmem>>, vector<32x1xf32>
    %4 = vector.broadcast %3 : vector<32x1xf32> to vector<32x384xf32>
    %5 = arith.addf %2, %4 : vector<32x384xf32>
    %6 = math.sin %5 : vector<32x384xf32>
    %c0_5 = arith.constant 0 : index
    %c0_6 = arith.constant 0 : index
    %7 = vector.load %arg3[%c0_5, %c0_6] : memref<32x32xf32, #tpu.memory_space<vmem>>, vector<32x32xf32>
    %cst_7 = arith.constant dense<0.000000e+00> : vector<32x384xf32>
    %8 = tpu.matmul %7, %6, %cst_7 {dimension_numbers = #tpu.dot_dimension_numbers<[1], [0], [0], [1], [0, 0, 1, 1], [], []>} : vector<32x32xf32>, vector<32x384xf32>, vector<32x384xf32> -> vector<32x384xf32>
    %c0_8 = arith.constant 0 : index
    %c0_9 = arith.constant 0 : index
    %9 = vector.load %arg4[%c0_8, %c0_9] : memref<32x1xf32, #tpu.memory_space<vmem>>, vector<32x1xf32>
    %10 = vector.broadcast %9 : vector<32x1xf32> to vector<32x384xf32>
    %11 = arith.addf %8, %10 : vector<32x384xf32>
    %12 = math.sin %11 : vector<32x384xf32>
    %c0_10 = arith.constant 0 : index
    %c0_11 = arith.constant 0 : index
    %13 = vector.load %arg5[%c0_10, %c0_11] : memref<3x32xf32, #tpu.memory_space<vmem>>, vector<3x32xf32>
    %cst_12 = arith.constant dense<0.000000e+00> : vector<3x384xf32>
    %14 = tpu.matmul %13, %12, %cst_12 {dimension_numbers = #tpu.dot_dimension_numbers<[1], [0], [0], [1], [0, 0, 1, 1], [], []>} : vector<3x32xf32>, vector<32x384xf32>, vector<3x384xf32> -> vector<3x384xf32>
    %c0_13 = arith.constant 0 : index
    %c0_14 = arith.constant 0 : index
    %15 = vector.load %arg6[%c0_13, %c0_14] : memref<3x1xf32, #tpu.memory_space<vmem>>, vector<3x1xf32>
    %16 = vector.broadcast %15 : vector<3x1xf32> to vector<3x384xf32>
    %17 = arith.addf %14, %16 : vector<3x384xf32>
    %c0_15 = arith.constant 0 : index
    %c0_16 = arith.constant 0 : index
    %18 = vector.load %arg8[%c0_15, %c0_16] : memref<3x384xf32, #tpu.memory_space<vmem>>, vector<3x384xf32>
    tpu.vector_store %arg8[%c0_15, %c0_16], %17 {strides = array<i32>} : memref<3x384xf32, #tpu.memory_space<vmem>>, vector<3x384xf32>,
    return
  }
  func.func @transform_0(%arg0: i32) -> (i32, i32) {
    %c0_i32 = arith.constant 0 : i32
    %c0_i32_0 = arith.constant 0 : i32
    %c0_i32_1 = arith.constant 0 : i32
    return %c0_i32, %c0_i32_0 : i32, i32
  }
  func.func @transform_1(%arg0: i32) -> (i32, i32) {
    %c0_i32 = arith.constant 0 : i32
    %c0_i32_0 = arith.constant 0 : i32
    %c0_i32_1 = arith.constant 0 : i32
    return %c0_i32, %c0_i32_0 : i32, i32
  }
  func.func @transform_2(%arg0: i32) -> (i32, i32) {
    %c0_i32 = arith.constant 0 : i32
    %c0_i32_0 = arith.constant 0 : i32
    %c0_i32_1 = arith.constant 0 : i32
    return %c0_i32, %c0_i32_0 : i32, i32
  }
  func.func @transform_3(%arg0: i32) -> (i32, i32) {
    %c0_i32 = arith.constant 0 : i32
    %c0_i32_0 = arith.constant 0 : i32
    %c0_i32_1 = arith.constant 0 : i32
    return %c0_i32, %c0_i32_0 : i32, i32
  }
  func.func @transform_4(%arg0: i32) -> (i32, i32) {
    %c0_i32 = arith.constant 0 : i32
    %c0_i32_0 = arith.constant 0 : i32
    %c0_i32_1 = arith.constant 0 : i32
    return %c0_i32, %c0_i32_0 : i32, i32
  }
  func.func @transform_5(%arg0: i32) -> (i32, i32) {
    %c0_i32 = arith.constant 0 : i32
    %c0_i32_0 = arith.constant 0 : i32
    %c0_i32_1 = arith.constant 0 : i32
    return %c0_i32, %c0_i32_0 : i32, i32
  }
  func.func @transform_6(%arg0: i32) -> (i32, i32) {
    %c0_i32 = arith.constant 0 : i32
    %c0_i32_0 = arith.constant 0 : i32
    return %c0_i32, %arg0 : i32, i32
  }
  func.func @transform_7(%arg0: i32) -> (i32, i32) {
    %c0_i32 = arith.constant 0 : i32
    %c0_i32_0 = arith.constant 0 : i32
    return %c0_i32, %arg0 : i32, i32
  }
}

</mosaic_0001>

<bundles_post_ra>
// kernel: tpu_custom_call.1
= control target key start
LH: loop header
LB: loop body
LE: loop exit
PB: predicated region body
PF: predicated region fallthrough
CT: control target
= control target key end

     0   :  { %12 = vsyncpa [#allocation3], 0  ;;  %s6302_s0 = inlined_call_operand.vmem [shape: f32[32,2], index: 0, kind: input, shape index: {}]   ;;  %s6303_s1 = inlined_call_operand.vmem [shape: f32[32,1], index: 1, kind: input, shape index: {}]   ;;  %s6304_s2 = inlined_call_operand.vmem [shape: f32[32,32], index: 2, kind: input, shape index: {}]   ;;  %s6305_s3 = inlined_call_operand.vmem [shape: f32[32,1], index: 3, kind: input, shape index: {}]   ;;  %s6306_s4 = inlined_call_operand.vmem [shape: f32[3,32], index: 4, kind: input, shape index: {}]   ;;  %s6307_s5 = inlined_call_operand.vmem [shape: f32[3,1], index: 5, kind: input, shape index: {}]   ;;  %s6308_s6 = inlined_call_operand.vmem [shape: f32[2,1152], index: 6, kind: input, shape index: {}]   ;;  %s6309_s7 = inlined_call_operand.hbm [shape: f32[3,1152], index: 7, kind: output, shape index: {}]  }
   0x1   :  { %14 = vsyncpa [#allocation3 + $0x1], 0  ;;  %s3997_s24 = smov 0   ;;  %s3999_s25 = smov 0  }
   0x2   :  { %s4001_s26 = smov 0   ;;  %s4003_s27 = smov 0  }
   0x3 LB: > { %s4018_s28 = sadd.s32 4294967295, %s3944_s27   ;;  %s3462_s29 = sadd.s32 4294967294, %s3944_s27   ;;  %s3944_s27 = sphi %s4003_s27, %s6553_s27   ;;  %s3940_s26 = sphi %s4001_s26, %s6552_s26   ;;  %s3936_s25 = sphi %s3999_s25, %s6551_s25   ;;  %s3932_s24 = sphi %s3997_s24, %s6550_s24  }
   0x4   : > { %s4022_s30 = sadd.s32 1, %s3944_s27   ;;  %s179_s8 = sadd.s32 1, %s3940_s26 }
   0x5   : > { %s176_s9 = ssub.s32 %s3944_s27, %s4022_s30  ;;  %p189_p0 = scmp.ne.s32.totalorder %s3940_s26, %s3936_s25 }
   0x6   : > { %p177_p1 = scmp.eq.s32.totalorder %s176_s9, 0  ;;  %p190_p2 = scmp.eq.s32.totalorder %s4018_s28, 2 }
   0x7   : > { %p195_p3 = scmp.ne.s32.totalorder %s3936_s25, %s3932_s24  ;;  %p196_p4 = scmp.eq.s32.totalorder %s3462_s29, 2 }
   0x8   : > { %s4033_s10 = scalar_select %p177_p1, %s3940_s26, %s179_s8  }
   0x9   : > { %p4035_p5 = por %p190_p2, %p189_p0  ;;  %p4039_p6 = por %p196_p4, %p195_p3 }
   0xa   : > { %p3465_p7 = scmp.ge.s32.totalorder %s3944_s27, 1  ;;  %p241_p8 = scmp.lt.s32.totalorder %s3944_s27, 4 }
   0xc   : > { %p242_p9 = pnand %p3465_p7, %p241_p8 }
   0xe   : > { %245 = sbr.rel (%p242_p9) target bundleno = 1217 (0x4c1), region = 48 }
  0x13   : > { %s273_s13 = smul.u32 3, %s4018_s28  ;;  %v314_v0 = vlaneseq  ;;  %v281_v1 = vld [vmem:[%s6302_s0] sm:$0xff]  ;;  %v3946_v2 = vmov 1983009808   ;;  %v6311_v4 = vmov 0.0   ;;  %vm326_vm0 = vcmask 15360  }
  0x14   : > { %v312_v3 = vunpack.c.l.s4 %v3946_v2  ;;  %410 = vmatprep.mubr.f32.mxu0 %v6311_v4  ;;  %3608 = vmatprep.mubr.msk.f32.mxu1 %vm326_vm0, %v281_v1  ;;  %v3948_v6 = vmov 0   ;;  %v288_v7 = vld [vmem:[%s6303_s1 + $0x18] sm:$0xff]  ;;  %v286_v8 = vld [vmem:[%s6303_s1 + $0x8] sm:$0xff]  ;;  %v285_v10 = vld [vmem:[%s6303_s1] sm:$0xff]  ;;  %vm339_vm1 = vcmask 1041408   ;;  %s270_s9 = sand.u32 1, %s3936_s25  }
  0x15   : > { %p274_p10 = scmp.lt.s32.totalorder %s273_s13, 8  ;;  %v315_v5 = vshrl.u32 %v314_v0, 7  ;;  %3786 = vset.pattern.permute.xlu1 %v3948_v6  ;;  %3785 = vset.pattern.permute.xlu0 %v3948_v6  ;;  %v287_v12 = vld [vmem:[%s6303_s1 + $0x10] sm:$0xff]  ;;  %v1775_v17 = vld [vmem:[%s6305_s3 + $0x18] sm:$0xff]  ;;  %v282_v20 = vld [vmem:[%s6302_s0 + $0x8] sm:$0xff]  ;;  %s3587_s16 = smul.u32 192, %s4018_s28 }
  0x16   : > { %v313_v9 = vunpack.c.0.s8 %v312_v3  ;;  %296 = vperm.xlu1 %3786, %v286_v8   ;;  %306 = vperm.xlu0 %3785, %v288_v7   ;;  %v1774_v14 = vld [vmem:[%s6305_s3 + $0x10] sm:$0xff]  ;;  %v1773_v22 = vld [vmem:[%s6305_s3 + $0x8] sm:$0xff]  ;;  %v1772_v23 = vld [vmem:[%s6305_s3] sm:$0xff]  ;;  %v6331_v2 = vmov 683565275   ;;  %s3389_s20 = scalar_lea.sflag [#allocation3], %s270_s9 }
  0x17   : > { %s6555_s13 = smov (!%p274_p10, %s273_s13), 8  ;;  %v283_v21 = vld [vmem:[%s6302_s0 + $0x10] sm:$0xff]  ;;  %v284_v24 = vld [vmem:[%s6302_s0 + $0x18] sm:$0xff]  ;;  %v3232_v25 = vld [vmem:[%s6307_s5] sm:$0x7]  ;;  %s3401_s19 = scalar_lea.hbm %s6309_s7, %s3587_s16 }
  0x18   : > { %v316_v11 = vsub.s32 %v313_v9, %v315_v5  ;;  %s3466_s29 = sshll.u32 %s6555_s13, 1  ;;  %v6319_v5 = vmov 2475754826   ;;  %v6321_v8 = vmov 2131351028   ;;  %s3956_s22 = smov [#allocation2]  }
  0x19   : > { %s277_s14 = scalar_lea.vmem %s6308_s6, %s3466_s29  ;;  %s3888_s23 = sshll.u32 %s3956_s22, 4  ;;  %s3889_s23 = int_to_ptr.vmem [resolvable:$false] %s3888_s23 }
  0x1a   : > { %291 = vperm.xlu1 %3786, %v285_v10   ;;  %v280_v13 = vld [vmem:[%s277_s14] sm:$0x3f]  ;;  %301 = vperm.xlu0 %3785, %v287_v12   ;;  %v6323_v10 = vmov 2102212464   ;;  %v6327_v12 = vmov 920167782  }
  0x1b   : > { %v317_v15 = vrot.slane %v280_v13, %v316_v11  ;;  %v310_v16 = vcombine.high %v280_v13, %v280_v13  ;;  %s3639_s14 = smul.u32 12, %s270_s9  ;;  %s3890_s28 = scalar_lea.vmem %s3889_s23, 384 }
  0x1d   : > { %v325_v18 = vcombine.high %v317_v15, %v317_v15  ;;  %v324_v19 = vrot.slane %v310_v16, %v316_v11  ;;  %s272_s15 = scalar_lea.vmem [#allocation2], %s3639_s14 }
  0x1e   : > { %1788 = vperm.xlu1 %3786, %v1774_v14   ;;  %1793 = vperm.xlu0 %3785, %v1775_v17   ;;  %s3403_s17 = sshll.u32 %s272_s15, 4  ;;  %s3404_s17 = int_to_ptr.vmem [resolvable:$true] %s3403_s17 }
  0x1f   : > { %3467 = vmatprep.subr.msk.mxu0 %vm339_vm1, %v325_v18  ;;  %3606 = vmatprep.subr.msk.mxu1 %vm339_vm1, %v324_v19  ;;  %s3884_s21 = scalar_lea.vmem %s3404_s17, 192  ;;  %p3891_p0 = scmp.lt.s32.totalorder %s3404_s17, %s3889_s23 }
  0x20   : > { %3468 = vmatpush1.msk.msra.mxu0 %vm339_vm1, %v317_v15  ;;  %3607 = vmatpush3.msk.msra.mxu1 %vm339_vm1, %v324_v19  ;;  %v6325_v19 = vmov 1326507024   ;;  %p3885_p11 = scmp.ne.s32.totalorder %s3404_s17, %s3884_s21  ;;  %p3892_p1 = scmp.lt.s32.totalorder %s3890_s28, %s3884_s21 }
  0x21   : > { %3469 = vmatmul.mubr.msk.f32.vlgmr.msra.gmra.mxu0 %vm326_vm0, %v281_v1  ;;  %3609 = vmatmul.mubr.msk.f32.vlgmr.msra.gmra.mxu1 %vm326_vm0, %v282_v20 }
  0x22   : > { %416 = vmatprep.mubr.f32.mxu0 %v6311_v4  ;;  %3611 = vmatprep.mubr.msk.f32.mxu1 %vm326_vm0, %v283_v21  ;;  %p3886_p12 = pnand %p3885_p11, %p4035_p5  ;;  %p3893_p2 = por %p3892_p1, %p3891_p0 }
  0x23   : > { %1783 = vperm.xlu0 %3785, %v1773_v22   ;;  %1778 = vperm.xlu1 %3786, %v1772_v23  }
  0x24   : > { %p3887_p13 = pneg %p3886_p12 }
  0x25   : > { %3470 = vmatmul.mubr.msk.f32.gmra.mxu0 %vm326_vm0, %v282_v20  ;;  %3612 = vmatmul.mubr.msk.f32.gmra.mxu1 %vm326_vm0, %v284_v24 }
  0x26   : > { %422 = vmatprep.mubr.f32.mxu0 %v6311_v4  ;;  %1873 = vmatprep.mubr.f32.mxu1 %v6311_v4  ;;  %p3894_p3 = pnand %p3893_p2, %p3887_p13 }
  0x27   : > { %3235 = vperm.xlu0 %3785, %v3232_v25  }
  0x29   : > { %3471 = vmatmul.mubr.msk.f32.gmra.mxu0 %vm326_vm0, %v283_v21 }
  0x2a   : > { %428 = vmatprep.mubr.f32.mxu0 %v6311_v4 }
  0x2d   : > { %3472 = vmatmul.mubr.msk.f32.gmra.mxu0 %vm326_vm0, %v284_v24 }
  0x91   : > { %v4101_v26 = vpop.permute.xlu1 %296 }
  0x95   : > { %v292_v27 = vpop.permute.xlu1 %291 }
  0xe1   : > { %v412_v28 = vpop.f32.mrf.mxu0  ;;  %v3610_v29 = vpop.f32.mrf.mxu1 }
  0xe2   : > { %v4103_v30 = vadd.f32 %v412_v28, %v292_v27  ;;  %v4106_v31 = vadd.f32 %v3610_v29, %v4101_v26 }
  0xe3   : > { %v414_v32 = vpop.f32.mrf.mxu0  ;;  %v501_v43 = vpop.f32.mrf.mxu1 }
  0xe4   : > { %6395 = vst [vmem:[#allocation5_spill] sm:$0xff] %v4103_v30  ;;  %v520_v33 = vand.u32 2147483647, %v4103_v30  ;;  %v523_v34 = vand.u32 2139095040, %v4103_v30  ;;  %v6314_v35 = vand.u32 2147483647, %v4106_v31  ;;  %v4112_v37 = vadd.f32 %v414_v32, %v292_v27 }
  0xe5   : > { %v1043_v36 = vand.u32 2139095040, %v4106_v31  ;;  %v4120_v50 = vadd.f32 %v501_v43, %v292_v27 }
  0xe6   : > { %6396 = vst [vmem:[#allocation6_spill] sm:$0xff] %v4112_v37  ;;  %v524_v38 = vshrl.u32 %v523_v34, 23  ;;  %v527_v39 = vand.u32 8388607, %v520_v33  ;;  %v1047_v41 = vand.u32 8388607, %v6314_v35 }
  0xe7   : > { %v1044_v40 = vshrl.u32 %v1043_v36, 23  ;;  %v6310_v42 = vand.u32 2147483647, %v4112_v37  ;;  %v627_v45 = vand.u32 2139095040, %v4112_v37  ;;  %v731_v60 = vand.u32 2139095040, %v4120_v50 }
  0xe8   : > { %v3478_v44 = vadd.s32 4294967169, %v524_v38  ;;  %v528_v46 = vor.u32 8388608, %v527_v39  ;;  %v1048_v51 = vor.u32 8388608, %v1047_v41 }
  0xe9   : > { %v3498_v47 = vadd.s32 4294967169, %v1044_v40  ;;  %v628_v49 = vshrl.u32 %v627_v45, 23  ;;  %v4124_v53 = vand.u32 8388607, %v6310_v42 }
  0xea   : > { %v530_v48 = vadd.s32 1, %v3478_v44  ;;  %v4126_v56 = vshll.u32 %v528_v46, 8  ;;  %v4131_v62 = vshll.u32 %v1048_v51, 8 }
  0xeb   : > { %v1050_v52 = vadd.s32 1, %v3498_v47  ;;  %v3482_v54 = vadd.s32 4294967169, %v628_v49  ;;  %v632_v63 = vor.u32 8388608, %v4124_v53 }
  0xec   : > { %vm531_vm2 = vcmp.gt.s32.totalorder %v530_v48, 0 }
  0xed   : > { %v532_v55 = vsel %vm531_vm2, %v530_v48, 0  ;;  %vm1051_vm3 = vcmp.gt.s32.totalorder %v1050_v52, 0  ;;  %v4134_v0 = vadd.s32 1, %v3482_v54 }
  0xee   : > { %v533_v57 = vshrl.u32 %v532_v55, 5  ;;  %v534_v58 = vand.u32 31, %v532_v55  ;;  %v1052_v59 = vsel %vm1051_vm3, %v1050_v52, 0 }
  0xef   : > { %v4129_v61 = vshrl.u32 %v1052_v59, 5  ;;  %v1054_v7 = vand.u32 31, %v1052_v59  ;;  %vm635_vm13 = vcmp.gt.s32.totalorder %v4134_v0, 0 }
  0xf0   : > { %v535_v1 = vsub.s32 32, %v534_v58  ;;  %v537_v3 = vshll.u32 %v6331_v2, %v534_v58  ;;  %v540_v6 = vshll.u32 %v6319_v5, %v534_v58  ;;  %v543_v9 = vshll.u32 %v6321_v8, %v534_v58 }
  0xf1   : > { %v546_v11 = vshll.u32 %v6323_v10, %v534_v58  ;;  %v549_v13 = vshll.u32 %v6327_v12, %v534_v58  ;;  %vm552_vm4 = vcmp.lt.s32.totalorder %v533_v57, 1  ;;  %vm553_vm5 = vcmp.lt.s32.totalorder %v533_v57, 2 }
  0xf2   : > { %v538_v14 = vshrl.u32 %v6319_v5, %v535_v1  ;;  %v541_v15 = vshrl.u32 %v6321_v8, %v535_v1  ;;  %v544_v16 = vshrl.u32 %v6323_v10, %v535_v1  ;;  %v536_v17 = vshrl.u32 %v6331_v2, %v535_v1 }
  0xf3   : > { %v547_v18 = vshrl.u32 %v6327_v12, %v535_v1  ;;  %v550_v20 = vshrl.u32 %v6325_v19, %v535_v1  ;;  %vm554_vm6 = vcmp.lt.s32.totalorder %v533_v57, 3  ;;  %v1055_v24 = vsub.s32 32, %v1054_v7 }
  0xf4   : > { %v539_v21 = vor.u32 %v538_v14, %v537_v3  ;;  %v542_v22 = vor.u32 %v541_v15, %v540_v6  ;;  %v545_v23 = vor.u32 %v544_v16, %v543_v9  ;;  %vm555_vm7 = vcmp.lt.s32.totalorder %v533_v57, 4 }
  0xf5   : > { %v548_v25 = vor.u32 %v547_v18, %v546_v11  ;;  %v551_v27 = vor.u32 %v550_v20, %v549_v13  ;;  %v1057_v28 = vshll.u32 %v6331_v2, %v1054_v7  ;;  %v1060_v41 = vshll.u32 %v6319_v5, %v1054_v7 }
  0xf6   : > { %v556_v29 = vsel %vm552_vm4, %v536_v17, %v539_v21  ;;  %v557_v32 = vsel %vm555_vm7, %v545_v23, 2102212464  ;;  %v560_v34 = vsel %vm552_vm4, %v539_v21, %v542_v22  ;;  %v564_v36 = vsel %vm552_vm4, %v542_v22, %v545_v23 }
  0xf7   : > { %v558_v38 = vsel %vm554_vm6, %v542_v22, %v557_v32  ;;  %v561_v39 = vsel %vm555_vm7, %v548_v25, 920167782  ;;  %v565_v40 = vsel %vm555_vm7, %v551_v27, 1326507024  ;;  %v1056_v45 = vshrl.u32 %v6331_v2, %v1055_v24 }
  0xf8   : > { %v562_v43 = vsel %vm554_vm6, %v545_v23, %v561_v39  ;;  %v566_v44 = vsel %vm554_vm6, %v548_v25, %v565_v40  ;;  %v1058_v46 = vshrl.u32 %v6319_v5, %v1055_v24  ;;  %v559_v47 = vsel %vm553_vm5, %v556_v29, %v558_v38 }
  0xf9   : > { %v563_v48 = vsel %vm553_vm5, %v560_v34, %v562_v43  ;;  %v567_v49 = vsel %vm553_vm5, %v564_v36, %v566_v44  ;;  %v1061_v51 = vshrl.u32 %v6321_v8, %v1055_v24  ;;  %v1063_v3 = vshll.u32 %v6321_v8, %v1054_v7 }
  0xfa   : > { %v4162_v52 = vmul.u32.u64.low %v4126_v56, %v567_v49  ;;  %v4163_v54 = vmul.u32.u64.high %v4126_v56, %v567_v49, %v4162_v52  ;;  %v4166_v55 = vmul.u32.u64.low %v4126_v56, %v563_v48  ;;  %v4167_v58 = vmul.u32.u64.high %v4126_v56, %v563_v48, %v4166_v55 }
  0xfb   : > { %v1059_v59 = vor.u32 %v1058_v46, %v1057_v28  ;;  %v1062_v1 = vor.u32 %v1061_v51, %v1060_v41  ;;  %v1064_v6 = vshrl.u32 %v6323_v10, %v1055_v24  ;;  %v1066_v57 = vshll.u32 %v6323_v10, %v1054_v7 }
  0xfc   : > { %v1067_v9 = vshrl.u32 %v6327_v12, %v1055_v24  ;;  %v1069_v11 = vshll.u32 %v6327_v12, %v1054_v7  ;;  %v1070_v13 = vshrl.u32 %v6325_v19, %v1055_v24  ;;  %v575_v14 = vmul.u32 %v4126_v56, %v559_v47 }
  0xfd   : > { %v1065_v15 = vor.u32 %v1064_v6, %v1063_v3  ;;  %vm1072_vm8 = vcmp.lt.s32.totalorder %v4129_v61, 1  ;;  %vm1073_vm9 = vcmp.lt.s32.totalorder %v4129_v61, 2  ;;  %vm577_vm10 = vc.u32 %v4163_v54, %v4166_v55 }
  0xfe   : > { %v578_v16 = vadd.s32 1, %v4167_v58  ;;  %v1068_v17 = vor.u32 %v1067_v9, %v1066_v57  ;;  %vm1074_vm11 = vcmp.lt.s32.totalorder %v4129_v61, 3  ;;  %v1071_v18 = vor.u32 %v1070_v13, %v1069_v11 }
  0xff   : > { %vm1075_vm12 = vcmp.lt.s32.totalorder %v4129_v61, 4  ;;  %v1076_v7 = vsel %vm1072_vm8, %v1056_v45, %v1059_v59  ;;  %v1080_v20 = vsel %vm1072_vm8, %v1059_v59, %v1062_v1  ;;  %v1084_v23 = vsel %vm1072_vm8, %v1062_v1, %v1065_v15 }
 0x100   : > { %v579_v56 = vsel %vm577_vm10, %v578_v16, %v4167_v58  ;;  %v1077_v21 = vsel %vm1075_vm12, %v1065_v15, 2102212464  ;;  %v1081_v22 = vsel %vm1075_vm12, %v1068_v17, 920167782  ;;  %v1085_v28 = vsel %vm1075_vm12, %v1071_v18, 1326507024 }
 0x101   : > { %v580_v24 = vadd.s32 %v579_v56, %v575_v14  ;;  %v1078_v25 = vsel %vm1074_vm11, %v1062_v1, %v1077_v21  ;;  %v1082_v27 = vsel %vm1074_vm11, %v1065_v15, %v1081_v22  ;;  %v1086_v32 = vsel %vm1074_vm11, %v1068_v17, %v1085_v28 }
 0x102   : > { %v1083_v29 = vsel %vm1073_vm9, %v1080_v20, %v1082_v27  ;;  %v732_v34 = vshrl.u32 %v731_v60, 23  ;;  %v1087_v38 = vsel %vm1073_vm9, %v1084_v23, %v1086_v32  ;;  %v1079_v41 = vsel %vm1073_vm9, %v1076_v7, %v1078_v25 }
 0x103   : > { %v581_v36 = vadd.s32 536870912, %v580_v24  ;;  %v4193_v39 = vmul.u32.u64.low %v4131_v62, %v1083_v29  ;;  %v4194_v40 = vmul.u32.u64.high %v4131_v62, %v1083_v29, %v4193_v39  ;;  %v636_v45 = vsel %vm635_vm13, %v4134_v0, 0 }
 0x104   : > { %v4200_v43 = vmul.u32.u64.low %v4131_v62, %v1087_v38  ;;  %v4201_v44 = vmul.u32.u64.high %v4131_v62, %v1087_v38, %v4200_v43  ;;  %v638_v60 = vand.u32 31, %v636_v45  ;;  %v4208_v47 = vshll.u32 %v632_v63, 8 }
 0x105   : > { %v4204_v46 = vshrl.u32 %v581_v36, 30  ;;  %v3486_v48 = vadd.s32 4294967169, %v732_v34  ;;  %v1095_v51 = vmul.u32 %v4131_v62, %v1079_v41  ;;  %v1098_v61 = vadd.s32 1, %v4194_v40 }
 0x106   : > { %v639_v52 = vsub.s32 32, %v638_v60  ;;  %vm1097_vm14 = vc.u32 %v4201_v44, %v4193_v39  ;;  %v637_v58 = vshrl.u32 %v636_v45, 5  ;;  %v641_v0 = vshll.u32 %v6331_v2, %v638_v60 }
 0x107   : > { %6397 = vst [vmem:[#allocation7_spill] sm:$0xff] %v4204_v46  ;;  %v583_v49 = vshll.u32 %v4204_v46, 30  ;;  %v644_v59 = vshll.u32 %v6319_v5, %v638_v60  ;;  %v1099_v53 = vsel %vm1097_vm14, %v1098_v61, %v4194_v40  ;;  %v647_v3 = vshll.u32 %v6321_v8, %v638_v60 }
 0x108   : > { %v642_v63 = vshrl.u32 %v6319_v5, %v639_v52  ;;  %v1100_v62 = vadd.s32 %v1099_v53, %v1095_v51  ;;  %v645_v6 = vshrl.u32 %v6321_v8, %v639_v52  ;;  %v648_v57 = vshrl.u32 %v6323_v10, %v639_v52 }
 0x109   : > { %v4217_v1 = vsub.s32 %v580_v24, %v583_v49  ;;  %v650_v9 = vshll.u32 %v6323_v10, %v638_v60  ;;  %v651_v14 = vshrl.u32 %v6327_v12, %v639_v52  ;;  %v653_v15 = vshll.u32 %v6327_v12, %v638_v60 }
 0x10a   : > { %v643_v13 = vor.u32 %v642_v63, %v641_v0  ;;  %v1101_v16 = vadd.s32 536870912, %v1100_v62  ;;  %v646_v17 = vor.u32 %v645_v6, %v644_v59  ;;  %v649_v18 = vor.u32 %v648_v57, %v647_v3 }
 0x10b   : > { %v586_v11 = vsub.s32 0, %v4217_v1  ;;  %v654_v7 = vshrl.u32 %v6325_v19, %v639_v52  ;;  %v640_v56 = vshrl.u32 %v6331_v2, %v639_v52  ;;  %v652_v21 = vor.u32 %v651_v14, %v650_v9 }
 0x10c   : > { %v738_v22 = vadd.s32 1, %v3486_v48  ;;  %v4231_v23 = vshrl.u32 %v1101_v16, 30  ;;  %vm656_vm15 = vcmp.lt.s32.totalorder %v637_v58, 1  ;;  %vm659_vm0 = vcmp.lt.s32.totalorder %v637_v58, 4 }
 0x10d   : > { %v3479_v20 = vmin.u32 %v586_v11, %v4217_v1  ;;  %v655_v24 = vor.u32 %v654_v7, %v653_v15  ;;  %vm657_vm1 = vcmp.lt.s32.totalorder %v637_v58, 2  ;;  %v661_v27 = vsel %vm659_vm0, %v649_v18, 2102212464 }
 0x10e   : > { %v664_v28 = vsel %vm656_vm15, %v643_v13, %v646_v17  ;;  %v1103_v29 = vshll.u32 %v4231_v23, 30  ;;  %vm658_vm2 = vcmp.lt.s32.totalorder %v637_v58, 3  ;;  %v665_v32 = vsel %vm659_vm0, %v652_v21, 920167782 }
 0x10f   : > { %v588_v25 = vclz %v3479_v20  ;;  %v668_v34 = vsel %vm656_vm15, %v646_v17, %v649_v18  ;;  %v660_v38 = vsel %vm656_vm15, %v640_v56, %v643_v13  ;;  %v666_v40 = vsel %vm658_vm2, %v649_v18, %v665_v32 }
 0x110   : > { %v669_v41 = vsel %vm659_vm0, %v655_v24, 1326507024  ;;  %v4234_v43 = vsub.s32 %v1100_v62, %v1103_v29  ;;  %v662_v45 = vsel %vm658_vm2, %v646_v17, %v661_v27  ;;  %v667_v60 = vsel %vm657_vm1, %v664_v28, %v666_v40  ;;  %v418_v17 = vpop.f32.mrf.mxu0 }
 0x111   : > { %v3480_v36 = vadd.s32 4294967294, %v588_v25  ;;  %v670_v48 = vsel %vm658_vm2, %v652_v21, %v669_v41  ;;  %v4239_v51 = vmul.u32.u64.low %v4208_v47, %v667_v60  ;;  %v4240_v61 = vmul.u32.u64.high %v4208_v47, %v667_v60, %v4239_v51 }
 0x112   : > { %v671_v49 = vsel %vm657_vm1, %v668_v34, %v670_v48  ;;  %v1106_v0 = vsub.s32 0, %v4234_v43  ;;  %v663_v3 = vsel %vm657_vm1, %v660_v38, %v662_v45  ;;  %vm739_vm4 = vcmp.gt.s32.totalorder %v738_v22, 0 }
 0x113   : > { %vm3481_vm3 = vcmp.lt.s32.totalorder %v3480_v36, 0  ;;  %v4245_v59 = vmul.u32.u64.low %v4208_v47, %v671_v49  ;;  %v4246_v53 = vmul.u32.u64.high %v4208_v47, %v671_v49, %v4245_v59  ;;  %v740_v6 = vsel %vm739_vm4, %v738_v22, 0 }
 0x114   : > { %v591_v52 = vsel %vm3481_vm3, 0, %v3480_v36  ;;  %v3499_v62 = vmin.u32 %v1106_v0, %v4234_v43  ;;  %v682_v57 = vadd.s32 1, %v4240_v61  ;;  %v6313_v9 = vand.u32 2147483647, %v4120_v50 }
 0x115   : > { %v596_v63 = vsub.s32 4294967266, %v591_v52  ;;  %v592_v11 = vsub.s32 32, %v591_v52  ;;  %v679_v13 = vmul.u32 %v4208_v47, %v663_v3  ;;  %vm681_vm5 = vc.u32 %v4246_v53, %v4239_v51 }
 0x116   : > { %v742_v14 = vand.u32 31, %v740_v6  ;;  %v1108_v16 = vclz %v3499_v62  ;;  %v683_v58 = vsel %vm681_vm5, %v682_v57, %v4240_v61  ;;  %v576_v18 = vadd.s32 %v4166_v55, %v4163_v54 }
 0x117   : > { %v597_v15 = vadd.s32 127, %v596_v63  ;;  %v684_v7 = vadd.s32 %v683_v58, %v679_v13  ;;  %v735_v56 = vand.u32 8388607, %v6313_v9  ;;  %v4261_v47 = vadd.f32 %v418_v17, %v4101_v26 }
 0x118   : > { %v743_v20 = vsub.s32 32, %v742_v14  ;;  %v594_v21 = vshrl.u32 %v576_v18, %v592_v11  ;;  %v593_v24 = vshll.u32 %v4217_v1, %v591_v52  ;;  %v3500_v27 = vadd.s32 4294967294, %v1108_v16 }
 0x119   : > { %v685_v22 = vadd.s32 536870912, %v684_v7  ;;  %v598_v25 = vshll.u32 %v597_v15, 23  ;;  %v745_v28 = vshll.u32 %v6331_v2, %v742_v14  ;;  %v748_v55 = vshll.u32 %v6319_v5, %v742_v14 }
 0x11a   : > { %v746_v54 = vshrl.u32 %v6319_v5, %v743_v20  ;;  %v749_v32 = vshrl.u32 %v6321_v8, %v743_v20  ;;  %v736_v34 = vor.u32 8388608, %v735_v56  ;;  %v741_v36 = vshrl.u32 %v740_v6, 5 }
 0x11b   : > { %v4265_v29 = vshrl.u32 %v685_v22, 30  ;;  %v751_v38 = vshll.u32 %v6321_v8, %v742_v14  ;;  %v752_v40 = vshrl.u32 %v6323_v10, %v743_v20  ;;  %v595_v41 = vor.u32 %v594_v21, %v593_v24 }
 0x11c   : > { %v754_v45 = vshll.u32 %v6323_v10, %v742_v14  ;;  %v835_v60 = vand.u32 2139095040, %v4261_v47  ;;  %v599_v48 = vor.u32 4788187, %v598_v25  ;;  %v755_v49 = vshrl.u32 %v6327_v12, %v743_v20 }
 0x11d   : > { %6398 = vst [vmem:[#allocation8_spill] sm:$0xff] %v4265_v29  ;;  %v687_v1 = vshll.u32 %v4265_v29, 30  ;;  %v757_v61 = vshll.u32 %v6327_v12, %v742_v14  ;;  %v758_v52 = vshrl.u32 %v6325_v19, %v743_v20  ;;  %vm3501_vm6 = vcmp.lt.s32.totalorder %v3500_v27, 0 }
 0x11e   : > { %v747_v59 = vor.u32 %v746_v54, %v745_v28  ;;  %v750_v63 = vor.u32 %v749_v32, %v748_v55  ;;  %v753_v3 = vor.u32 %v752_v40, %v751_v38  ;;  %v756_v62 = vor.u32 %v755_v49, %v754_v45 }
 0x11f   : > { %v4278_v0 = vsub.s32 %v684_v7, %v687_v1  ;;  %v759_v6 = vor.u32 %v758_v52, %v757_v61  ;;  %vm760_vm7 = vcmp.lt.s32.totalorder %v741_v36, 1  ;;  %v602_v57 = vcvt.s32.f32 %v595_v41 }
 0x120   : > { %v776_v11 = vshll.u32 %v736_v34, 8  ;;  %v6315_v13 = vand.u32 2147483647, %v4261_v47  ;;  %v836_v15 = vshrl.u32 %v835_v60, 23  ;;  %v600_v16 = vand.u32 2147483647, %v599_v48 }
 0x121   : > { %v1111_v58 = vsel %vm3501_vm6, 0, %v3500_v27  ;;  %vm762_vm8 = vcmp.lt.s32.totalorder %v741_v36, 3  ;;  %vm763_vm9 = vcmp.lt.s32.totalorder %v741_v36, 4  ;;  %v690_v14 = vsub.s32 0, %v4278_v0 }
 0x122   : > { %v744_v17 = vshrl.u32 %v6331_v2, %v743_v20  ;;  %vm761_vm10 = vcmp.lt.s32.totalorder %v741_v36, 2  ;;  %v768_v18 = vsel %vm760_vm7, %v747_v59, %v750_v63  ;;  %v765_v7 = vsel %vm763_vm9, %v753_v3, 2102212464 }
 0x123   : > { %v769_v56 = vsel %vm763_vm9, %v756_v62, 920167782  ;;  %v772_v21 = vsel %vm760_vm7, %v750_v63, %v753_v3  ;;  %v773_v22 = vsel %vm763_vm9, %v759_v6, 1326507024  ;;  %v1096_v24 = vadd.s32 %v4193_v39, %v4201_v44 }
 0x124   : > { %v1112_v25 = vsub.s32 32, %v1111_v58  ;;  %v1116_v28 = vsub.s32 4294967266, %v1111_v58  ;;  %v770_v27 = vsel %vm762_vm8, %v753_v3, %v769_v56  ;;  %v603_v54 = vmul.f32 %v602_v57, %v600_v16  ;;  %v3613_v16 = vpop.f32.mrf.mxu1 }
 0x125   : > { %v771_v55 = vsel %vm761_vm10, %v768_v18, %v770_v27  ;;  %v774_v20 = vsel %vm762_vm8, %v756_v62, %v773_v22  ;;  %v3490_v32 = vadd.s32 4294967169, %v836_v15  ;;  %v3483_v34 = vmin.u32 %v690_v14, %v4278_v0 }
 0x126   : > { %v764_v38 = vsel %vm760_vm7, %v744_v17, %v747_v59  ;;  %v766_v40 = vsel %vm762_vm8, %v750_v63, %v765_v7  ;;  %v775_v41 = vsel %vm761_vm10, %v772_v21, %v774_v20  ;;  %v1114_v48 = vshrl.u32 %v1096_v24, %v1112_v25 }
 0x127   : > { %v4294_v1 = vmul.u32.u64.low %v776_v11, %v775_v41  ;;  %v4295_v39 = vmul.u32.u64.high %v776_v11, %v775_v41, %v4294_v1  ;;  %v4297_v44 = vmul.u32.u64.low %v776_v11, %v771_v55  ;;  %v4298_v45 = vmul.u32.u64.high %v776_v11, %v771_v55, %v4297_v44 }
 0x128   : > { %v842_v60 = vadd.s32 1, %v3490_v32  ;;  %v767_v49 = vsel %vm761_vm10, %v764_v38, %v766_v40  ;;  %v839_v61 = vand.u32 8388607, %v6315_v13  ;;  %v604_v52 = vxor.u32 2147483648, %v603_v54 }
 0x129   : > { %v1113_v59 = vshll.u32 %v4234_v43, %v1111_v58  ;;  %v1117_v63 = vadd.s32 127, %v1116_v28  ;;  %v692_v3 = vclz %v3483_v34  ;;  %vm785_vm12 = vc.u32 %v4295_v39, %v4297_v44  ;;  %v4312_v43 = vpop.permute.xlu0 %306 }
 0x12a   : > { %vm843_vm11 = vcmp.gt.s32.totalorder %v842_v60, 0  ;;  %v786_v62 = vadd.s32 1, %v4298_v45  ;;  %v783_v57 = vmul.u32 %v776_v11, %v767_v49  ;;  %vm6349_vm13 = vcmp.lt.s32.totalorder %v4103_v30, 0 }
 0x12b   : > { %v844_v6 = vsel %vm843_vm11, %v842_v60, 0  ;;  %v4309_v36 = vor.u32 %v1114_v48, %v1113_v59  ;;  %v840_v17 = vor.u32 8388608, %v839_v61  ;;  %v605_v58 = vsel %vm6349_vm13, %v604_v52, %v603_v54 }
 0x12c   : > { %v846_v15 = vand.u32 31, %v844_v6  ;;  %v787_v14 = vsel %vm785_vm12, %v786_v62, %v4298_v45  ;;  %v1118_v18 = vshll.u32 %v1117_v63, 23  ;;  %v3484_v21 = vadd.s32 4294967294, %v692_v3 }
 0x12d   : > { %v788_v7 = vadd.s32 %v787_v14, %v783_v57  ;;  %v845_v22 = vshrl.u32 %v844_v6, 5  ;;  %v4318_v24 = vadd.f32 %v3613_v16, %v4312_v43  ;;  %vm4335_vm14 = vcmp.le.f32.partialorder %v520_v33, 0.7853982 }
 0x12e   : > { %v847_v56 = vsub.s32 32, %v846_v15  ;;  %v849_v11 = vshll.u32 %v6331_v2, %v846_v15  ;;  %v852_v28 = vshll.u32 %v6319_v5, %v846_v15  ;;  %v855_v27 = vshll.u32 %v6321_v8, %v846_v15 }
 0x12f   : > { %v789_v25 = vadd.s32 536870912, %v788_v7  ;;  %v858_v55 = vshll.u32 %v6323_v10, %v846_v15  ;;  %v4327_v38 = vor.u32 4788187, %v1118_v18  ;;  %v861_v41 = vshll.u32 %v6327_v12, %v846_v15 }
 0x130   : > { %v850_v20 = vshrl.u32 %v6319_v5, %v847_v56  ;;  %v853_v54 = vshrl.u32 %v6321_v8, %v847_v56  ;;  %v856_v32 = vshrl.u32 %v6323_v10, %v847_v56  ;;  %v859_v34 = vshrl.u32 %v6327_v12, %v847_v56 }
 0x131   : > { %v4329_v40 = vshrl.u32 %v789_v25, 30  ;;  %v862_v1 = vshrl.u32 %v6325_v19, %v847_v56  ;;  %v6399_v61 = vmov 0  ;;  %vm3485_vm15 = vcmp.lt.s32.totalorder %v3484_v21, 0 }
 0x132   : > { %v851_v45 = vor.u32 %v850_v20, %v849_v11  ;;  %v854_v60 = vor.u32 %v853_v54, %v852_v28  ;;  %v857_v48 = vor.u32 %v856_v32, %v855_v27  ;;  %v860_v49 = vor.u32 %v859_v34, %v858_v55 }
 0x133   : > { %v6400_v61 = vsel %vm4335_vm14, 4294967295, %v6399_v61  ;;  %v791_v52 = vshll.u32 %v4329_v40, 30  ;;  %v863_v59 = vor.u32 %v862_v1, %v861_v41  ;;  %v880_v63 = vshll.u32 %v840_v17, 8 }
 0x134   : > { %6401 = vst [vmem:[#allocation9_spill] sm:$0xff] %v6400_v61  ;;  %vm864_vm0 = vcmp.lt.s32.totalorder %v845_v22, 1  ;;  %vm867_vm1 = vcmp.lt.s32.totalorder %v845_v22, 4  ;;  %v6316_v3 = vand.u32 2147483647, %v4318_v24  ;;  %v1667_v62 = vand.u32 2139095040, %v4318_v24 }
 0x135   : > { %v4342_v6 = vsub.s32 %v788_v7, %v791_v52  ;;  %v848_v57 = vshrl.u32 %v6331_v2, %v847_v56  ;;  %v869_v15 = vsel %vm867_vm1, %v857_v48, 2102212464  ;;  %v872_v33 = vsel %vm864_vm0, %v851_v45, %v854_v60  ;;  %v420_v7 = vpop.f32.mrf.mxu0 }
 0x136   : > { %vm866_vm2 = vcmp.lt.s32.totalorder %v845_v22, 3  ;;  %v873_v16 = vsel %vm867_vm1, %v860_v49, 920167782  ;;  %v876_v14 = vsel %vm864_vm0, %v854_v60, %v857_v48  ;;  %v877_v18 = vsel %vm867_vm1, %v863_v59, 1326507024 }
 0x137   : > { %v794_v11 = vsub.s32 0, %v4342_v6  ;;  %vm865_vm3 = vcmp.lt.s32.totalorder %v845_v22, 2  ;;  %v868_v17 = vsel %vm864_vm0, %v848_v57, %v851_v45  ;;  %v874_v25 = vsel %vm866_vm2, %v857_v48, %v873_v16 }
 0x138   : > { %v870_v28 = vsel %vm866_vm2, %v854_v60, %v869_v15  ;;  %v875_v27 = vsel %vm865_vm3, %v872_v33, %v874_v25  ;;  %v878_v55 = vsel %vm866_vm2, %v860_v49, %v877_v18  ;;  %v1668_v20 = vshrl.u32 %v1667_v62, 23 }
 0x139   : > { %v3487_v54 = vmin.u32 %v794_v11, %v4342_v6  ;;  %v879_v56 = vsel %vm865_vm3, %v876_v14, %v878_v55  ;;  %v4349_v32 = vmul.u32.u64.low %v880_v63, %v875_v27  ;;  %v4350_v34 = vmul.u32.u64.high %v880_v63, %v875_v27, %v4349_v32 }
 0x13a   : > { %v4354_v41 = vsel %vm3485_vm15, 0, %v3484_v21  ;;  %v4356_v1 = vmul.u32.u64.low %v880_v63, %v879_v56  ;;  %v4357_v45 = vmul.u32.u64.high %v880_v63, %v879_v56, %v4356_v1  ;;  %v3522_v60 = vadd.s32 4294967169, %v1668_v20 }
 0x13b   : > { %v4361_v48 = vadd.s32 %v4239_v51, %v4246_v53  ;;  %v796_v49 = vclz %v3487_v54  ;;  %v871_v52 = vsel %vm865_vm3, %v868_v17, %v870_v28  ;;  %v4365_v59 = vadd.f32 %v420_v7, %v4101_v26 }
 0x13c   : > { %v4370_v62 = vsel %vm4335_vm14, %v4103_v30, %v605_v58  ;;  %v1120_v21 = vand.u32 2147483647, %v4327_v38  ;;  %v1122_v57 = vcvt.s32.f32 %v4309_v36  ;;  %v1674_v15 = vadd.s32 1, %v3522_v60 }
 0x13d   : > { %v700_v33 = vsub.s32 4294967266, %v4354_v41  ;;  %v3488_v51 = vadd.s32 4294967294, %v796_v49  ;;  %v890_v53 = vadd.s32 1, %v4350_v34  ;;  %v1671_v22 = vand.u32 8388607, %v6316_v3 }
 0x13e   : > { %v696_v26 = vsub.s32 32, %v4354_v41  ;;  %v887_v16 = vmul.u32 %v880_v63, %v871_v52  ;;  %vm889_vm4 = vc.u32 %v4357_v45, %v4349_v32  ;;  %vm1675_vm5 = vcmp.gt.s32.totalorder %v1674_v15, 0 }
 0x13f   : > { %vm3489_vm6 = vcmp.lt.s32.totalorder %v3488_v51, 0  ;;  %v891_v58 = vsel %vm889_vm4, %v890_v53, %v4350_v34  ;;  %v1676_v14 = vsel %vm1675_vm5, %v1674_v15, 0  ;;  %v939_v18 = vand.u32 2139095040, %v4365_v59 }
 0x140   : > { %v784_v11 = vadd.s32 %v4297_v44, %v4295_v39  ;;  %v799_v17 = vsel %vm3489_vm6, 0, %v3488_v51  ;;  %v892_v25 = vadd.s32 %v891_v58, %v887_v16  ;;  %v1678_v28 = vand.u32 31, %v1676_v14 }
 0x141   : > { %v4385_v27 = vadd.s32 127, %v700_v33  ;;  %v804_v55 = vsub.s32 4294967266, %v799_v17  ;;  %v1672_v63 = vor.u32 8388608, %v1671_v22  ;;  %v6317_v20 = vand.u32 2147483647, %v4365_v59 }
 0x142   : > { %v893_v7 = vadd.s32 536870912, %v892_v25  ;;  %v1679_v54 = vsub.s32 32, %v1678_v28  ;;  %v1681_v56 = vshll.u32 %v6331_v2, %v1678_v28  ;;  %v1684_v34 = vshll.u32 %v6319_v5, %v1678_v28 }
 0x143   : > { %v1677_v1 = vshrl.u32 %v1676_v14, 5  ;;  %v1687_v60 = vshll.u32 %v6321_v8, %v1678_v28  ;;  %v1690_v39 = vshll.u32 %v6323_v10, %v1678_v28  ;;  %v940_v44 = vshrl.u32 %v939_v18, 23 }
 0x144   : > { %v805_v49 = vadd.s32 127, %v804_v55  ;;  %v4392_v52 = vshrl.u32 %v893_v7, 30  ;;  %v1682_v15 = vshrl.u32 %v6319_v5, %v1679_v54  ;;  %v1685_v33 = vshrl.u32 %v6321_v8, %v1679_v54 }
 0x145   : > { %v1688_v51 = vshrl.u32 %v6323_v10, %v1679_v54  ;;  %v1691_v53 = vshrl.u32 %v6327_v12, %v1679_v54  ;;  %v4398_v22 = vshll.u32 %v1672_v63, 8  ;;  %v4402_v16 = vand.u32 8388607, %v6317_v20  ;;  %v511_v20 = vpop.f32.mrf.mxu1 }
 0x146   : > { %6402 = vst [vmem:[#allocation10_spill] sm:$0xff] %v4392_v52  ;;  %v895_v58 = vshll.u32 %v4392_v52, 30  ;;  %v1683_v14 = vor.u32 %v1682_v15, %v1681_v56  ;;  %v1686_v18 = vor.u32 %v1685_v33, %v1684_v34  ;;  %v1693_v55 = vshll.u32 %v6327_v12, %v1678_v28 }
 0x147   : > { %v800_v7 = vsub.s32 32, %v799_v17  ;;  %v1689_v42 = vor.u32 %v1688_v51, %v1687_v60  ;;  %v1692_v4 = vor.u32 %v1691_v53, %v1690_v39  ;;  %v3494_v9 = vadd.s32 4294967169, %v940_v44 }
 0x148   : > { %v806_v35 = vshll.u32 %v805_v49, 23  ;;  %v4406_v13 = vsub.s32 %v892_v25, %v895_v58  ;;  %v1694_v63 = vshrl.u32 %v6325_v19, %v1679_v54  ;;  %vm1696_vm7 = vcmp.lt.s32.totalorder %v1677_v1, 1 }
 0x149   : > { %v1680_v3 = vshrl.u32 %v6331_v2, %v1679_v54  ;;  %vm1697_vm8 = vcmp.lt.s32.totalorder %v1677_v1, 2  ;;  %vm1698_vm9 = vcmp.lt.s32.totalorder %v1677_v1, 3  ;;  %vm1699_vm10 = vcmp.lt.s32.totalorder %v1677_v1, 4 }
 0x14a   : > { %v898_v56 = vsub.s32 0, %v4406_v13  ;;  %v1695_v34 = vor.u32 %v1694_v63, %v1693_v55  ;;  %v1701_v15 = vsel %vm1699_vm10, %v1689_v42, 2102212464  ;;  %v1704_v28 = vsel %vm1696_vm7, %v1683_v14, %v1686_v18 }
 0x14b   : > { %v801_v60 = vshll.u32 %v4342_v6, %v799_v17  ;;  %v802_v39 = vshrl.u32 %v784_v11, %v800_v7  ;;  %v1705_v44 = vsel %vm1699_vm10, %v1692_v4, 920167782  ;;  %v1708_v25 = vsel %vm1696_vm7, %v1686_v18, %v1689_v42  ;;  %v4426_v7 = vpop.permute.xlu0 %301 }
 0x14c   : > { %v807_v49 = vor.u32 4788187, %v806_v35  ;;  %v3491_v33 = vmin.u32 %v898_v56, %v4406_v13  ;;  %v1706_v54 = vsel %vm1698_vm9, %v1689_v42, %v1705_v44  ;;  %v1709_v51 = vsel %vm1699_vm10, %v1695_v34, 1326507024 }
 0x14d   : > { %v1700_v53 = vsel %vm1696_vm7, %v1680_v3, %v1683_v14  ;;  %v1702_v58 = vsel %vm1698_vm9, %v1686_v18, %v1701_v15  ;;  %v1707_v55 = vsel %vm1697_vm8, %v1704_v28, %v1706_v54  ;;  %v1710_v63 = vsel %vm1698_vm9, %v1692_v4, %v1709_v51 }
 0x14e   : > { %v900_v6 = vclz %v3491_v33  ;;  %v1711_v11 = vsel %vm1697_vm8, %v1708_v25, %v1710_v63  ;;  %v4422_v17 = vmul.u32.u64.low %v4398_v22, %v1707_v55  ;;  %v4423_v35 = vmul.u32.u64.high %v4398_v22, %v1707_v55, %v4422_v17 }
 0x14f   : > { %v803_v42 = vor.u32 %v802_v39, %v801_v60  ;;  %v4429_v3 = vmul.u32.u64.low %v4398_v22, %v1711_v11  ;;  %v4430_v14 = vmul.u32.u64.high %v4398_v22, %v1711_v11, %v4429_v3  ;;  %v946_v18 = vadd.s32 1, %v3494_v9 }
 0x150   : > { %v4436_v4 = vmul.f32 %v1122_v57, %v1120_v21  ;;  %v3492_v56 = vadd.s32 4294967294, %v900_v6  ;;  %v1703_v34 = vsel %vm1697_vm8, %v1700_v53, %v1702_v58  ;;  %v4440_v15 = vadd.f32 %v511_v20, %v4426_v7  ;;  %v424_v57 = vpop.f32.mrf.mxu0 }
 0x151   : > { %v697_v28 = vshll.u32 %v4278_v0, %v4354_v41  ;;  %v698_v60 = vshrl.u32 %v4361_v48, %v696_v26  ;;  %v702_v9 = vshll.u32 %v4385_v27, 23  ;;  %vm947_vm11 = vcmp.gt.s32.totalorder %v946_v18, 0 }
 0x152   : > { %v808_v38 = vand.u32 2147483647, %v807_v49  ;;  %vm3493_vm12 = vcmp.lt.s32.totalorder %v3492_v56, 0  ;;  %v1722_v36 = vadd.s32 1, %v4423_v35  ;;  %v948_v21 = vsel %vm947_vm11, %v946_v18, 0 }
 0x153   : > { %v810_v1 = vcvt.s32.f32 %v803_v42  ;;  %v1719_v20 = vmul.u32 %v4398_v22, %v1703_v34  ;;  %vm1721_vm15 = vc.u32 %v4430_v14, %v4422_v17  ;;  %v944_v0 = vor.u32 8388608, %v4402_v16 }
 0x154   : > { %v4453_v41 = vsel %vm3493_vm12, 0, %v3492_v56  ;;  %v1723_v48 = vsel %vm1721_vm15, %v1722_v36, %v4423_v35  ;;  %v4456_v26 = vshrl.u32 %v948_v21, 5  ;;  %v1355_v27 = vand.u32 2139095040, %v4440_v15 }
 0x155   : > { %v1124_v39 = vxor.u32 2147483648, %v4436_v4  ;;  %v1724_v44 = vadd.s32 %v1723_v48, %v1719_v20  ;;  %v950_v25 = vand.u32 31, %v948_v21  ;;  %v4461_v49 = vadd.f32 %v424_v57, %v4426_v7 }
 0x156   : > { %v4463_v22 = vor.u32 %v698_v60, %v697_v28  ;;  %v4465_v33 = vor.u32 4788187, %v702_v9  ;;  %v4467_v16 = vmul.f32 %v810_v1, %v808_v38  ;;  %v6318_v54 = vand.u32 2147483647, %v4440_v15 }
 0x157   : > { %v908_v51 = vsub.s32 4294967266, %v4453_v41  ;;  %v1725_v53 = vadd.s32 536870912, %v1724_v44  ;;  %v951_v58 = vsub.s32 32, %v950_v25  ;;  %v4471_v55 = vshll.u32 %v944_v0, 8 }
 0x158   : > { %v953_v63 = vshll.u32 %v6331_v2, %v950_v25  ;;  %vm968_vm0 = vcmp.lt.s32.totalorder %v4456_v26, 1  ;;  %vm969_vm1 = vcmp.lt.s32.totalorder %v4456_v26, 2  ;;  %v1356_v6 = vshrl.u32 %v1355_v27, 23 }
 0x159   : > { %v4476_v11 = vshrl.u32 %v1725_v53, 30  ;;  %v954_v35 = vshrl.u32 %v6319_v5, %v951_v58  ;;  %v956_v42 = vshll.u32 %v6319_v5, %v950_v25  ;;  %v957_v3 = vshrl.u32 %v6321_v8, %v951_v58 }
 0x15a   : > { %v959_v18 = vshll.u32 %v6321_v8, %v950_v25  ;;  %v960_v56 = vshrl.u32 %v6323_v10, %v951_v58  ;;  %v962_v34 = vshll.u32 %v6323_v10, %v950_v25  ;;  %v963_v28 = vshrl.u32 %v6327_v12, %v951_v58 }
 0x15b   : > { %v909_v60 = vadd.s32 127, %v908_v51  ;;  %v1727_v9 = vshll.u32 %v4476_v11, 30  ;;  %v955_v38 = vor.u32 %v954_v35, %v953_v63  ;;  %v958_v36 = vor.u32 %v957_v3, %v956_v42 }
 0x15c   : > { %v961_v21 = vor.u32 %v960_v56, %v959_v18  ;;  %v964_v57 = vor.u32 %v963_v28, %v962_v34  ;;  %v965_v1 = vshll.u32 %v6327_v12, %v950_v25  ;;  %v966_v20 = vshrl.u32 %v6325_v19, %v951_v58 }
 0x15d   : > { %v4488_v0 = vsub.s32 %v1724_v44, %v1727_v9  ;;  %v952_v48 = vshrl.u32 %v6331_v2, %v951_v58  ;;  %vm971_vm2 = vcmp.lt.s32.totalorder %v4456_v26, 4  ;;  %v976_v27 = vsel %vm968_vm0, %v955_v38, %v958_v36 }
 0x15e   : > { %v967_v51 = vor.u32 %v966_v20, %v965_v1  ;;  %vm970_vm3 = vcmp.lt.s32.totalorder %v4456_v26, 3  ;;  %v973_v53 = vsel %vm971_vm2, %v961_v21, 2102212464  ;;  %v977_v63 = vsel %vm971_vm2, %v964_v57, 920167782 }
 0x15f   : > { %v1730_v35 = vsub.s32 0, %v4488_v0  ;;  %v972_v25 = vsel %vm968_vm0, %v952_v48, %v955_v38  ;;  %v978_v42 = vsel %vm970_vm3, %v961_v21, %v977_v63  ;;  %v980_v44 = vsel %vm968_vm0, %v958_v36, %v961_v21 }
 0x160   : > { %v974_v58 = vsel %vm970_vm3, %v958_v36, %v973_v53  ;;  %v979_v3 = vsel %vm969_vm1, %v976_v27, %v978_v42  ;;  %v981_v18 = vsel %vm971_vm2, %v967_v51, 1326507024  ;;  %v3510_v56 = vadd.s32 4294967169, %v1356_v6 }
 0x161   : > { %v3523_v34 = vmin.u32 %v1730_v35, %v4488_v0  ;;  %v982_v28 = vsel %vm970_vm3, %v964_v57, %v981_v18  ;;  %v4504_v9 = vmul.u32.u64.low %v4471_v55, %v979_v3  ;;  %v4505_v1 = vmul.u32.u64.high %v4471_v55, %v979_v3, %v4504_v9 }
 0x162   : > { %v704_v38 = vand.u32 2147483647, %v4465_v33  ;;  %v706_v20 = vcvt.s32.f32 %v4463_v22  ;;  %v904_v21 = vsub.s32 32, %v4453_v41  ;;  %v983_v36 = vsel %vm969_vm1, %v980_v44, %v982_v28 }
 0x163   : > { %v888_v6 = vadd.s32 %v4349_v32, %v4357_v45  ;;  %v1732_v48 = vclz %v3523_v34  ;;  %v4516_v57 = vmul.u32.u64.low %v4471_v55, %v983_v36  ;;  %v4517_v27 = vmul.u32.u64.high %v4471_v55, %v983_v36, %v4516_v57 }
 0x164   : > { %v975_v53 = vsel %vm969_vm1, %v972_v25, %v974_v58  ;;  %v1359_v63 = vand.u32 8388607, %v6318_v54  ;;  %v1362_v35 = vadd.s32 1, %v3510_v56  ;;  %v910_v42 = vshll.u32 %v909_v60, 23 }
 0x165   : > { %v3524_v3 = vadd.s32 4294967294, %v1732_v48  ;;  %v994_v44 = vadd.s32 1, %v4505_v1  ;;  %v906_v45 = vshrl.u32 %v888_v6, %v904_v21  ;;  %v1720_v18 = vadd.s32 %v4422_v17, %v4430_v14 }
 0x166   : > { %vm1363_vm4 = vcmp.gt.s32.totalorder %v1362_v35, 0  ;;  %v1147_v34 = vand.u32 2139095040, %v4461_v49  ;;  %v991_v26 = vmul.u32 %v4471_v55, %v975_v53  ;;  %vm993_vm6 = vc.u32 %v4517_v27, %v4504_v9 }
 0x167   : > { %vm3525_vm5 = vcmp.lt.s32.totalorder %v3524_v3, 0  ;;  %v1364_v25 = vsel %vm1363_vm4, %v1362_v35, 0  ;;  %v905_v60 = vshll.u32 %v4406_v13, %v4453_v41  ;;  %v995_v56 = vsel %vm993_vm6, %v994_v44, %v4505_v1 }
 0x168   : > { %v4534_v58 = vsel %vm3525_vm5, 0, %v3524_v3  ;;  %v1366_v28 = vand.u32 31, %v1364_v25  ;;  %v4537_v21 = vor.u32 4788187, %v910_v42  ;;  %v996_v14 = vadd.s32 %v995_v56, %v991_v26 }
 0x169   : > { %v1740_v17 = vsub.s32 4294967266, %v4534_v58  ;;  %v1360_v36 = vor.u32 8388608, %v1359_v63  ;;  %v907_v53 = vor.u32 %v906_v45, %v905_v60  ;;  %v1365_v41 = vshrl.u32 %v1364_v25, 5 }
 0x16a   : > { %v1367_v6 = vsub.s32 32, %v1366_v28  ;;  %v1369_v55 = vshll.u32 %v6331_v2, %v1366_v28  ;;  %v1372_v48 = vshll.u32 %v6319_v5, %v1366_v28  ;;  %v1375_v57 = vshll.u32 %v6321_v8, %v1366_v28 }
 0x16b   : > { %v997_v13 = vadd.s32 536870912, %v996_v14  ;;  %v1378_v35 = vshll.u32 %v6323_v10, %v1366_v28  ;;  %v1741_v1 = vadd.s32 127, %v1740_v17  ;;  %v912_v63 = vand.u32 2147483647, %v4537_v21 }
 0x16c   : > { %v1370_v42 = vshrl.u32 %v6319_v5, %v1367_v6  ;;  %v1373_v3 = vshrl.u32 %v6321_v8, %v1367_v6  ;;  %v1376_v44 = vshrl.u32 %v6323_v10, %v1367_v6  ;;  %v1379_v56 = vshrl.u32 %v6327_v12, %v1367_v6 }
 0x16d   : > { %v4548_v26 = vshrl.u32 %v997_v13, 30  ;;  %v4551_v54 = vshll.u32 %v1360_v36, 8  ;;  %v1381_v51 = vshll.u32 %v6327_v12, %v1366_v28  ;;  %v1736_v17 = vsub.s32 32, %v4534_v58 }
 0x16e   : > { %v1371_v45 = vor.u32 %v1370_v42, %v1369_v55  ;;  %v1374_v60 = vor.u32 %v1373_v3, %v1372_v48  ;;  %v1377_v25 = vor.u32 %v1376_v44, %v1375_v57  ;;  %v1380_v8 = vor.u32 %v1379_v56, %v1378_v35 }
 0x16f   : > { %v999_v5 = vshll.u32 %v4548_v26, 30  ;;  %v1148_v32 = vshrl.u32 %v1147_v34, 23  ;;  %vm1042_vm7 = vcmp.lt.s32.totalorder %v4106_v31, 0  ;;  %v1742_v21 = vshll.u32 %v1741_v1, 23 }
 0x170   : > { %v1382_v13 = vshrl.u32 %v6325_v19, %v1367_v6  ;;  %vm1384_vm8 = vcmp.lt.s32.totalorder %v1365_v41, 1  ;;  %vm1386_vm9 = vcmp.lt.s32.totalorder %v1365_v41, 3  ;;  %v1737_v36 = vshll.u32 %v4488_v0, %v4534_v58 }
 0x171   : > { %v4560_v55 = vsub.s32 %v996_v14, %v999_v5  ;;  %v1368_v28 = vshrl.u32 %v6331_v2, %v1367_v6  ;;  %vm1387_vm10 = vcmp.lt.s32.totalorder %v1365_v41, 4  ;;  %vm730_vm11 = vcmp.lt.s32.totalorder %v4120_v50, 0 }
 0x172   : > { %v1383_v48 = vor.u32 %v1382_v13, %v1381_v51  ;;  %v1389_v57 = vsel %vm1387_vm10, %v1377_v25, 2102212464  ;;  %v1392_v34 = vsel %vm1384_vm8, %v1371_v45, %v1374_v60  ;;  %v1393_v35 = vsel %vm1387_vm10, %v1380_v8, 920167782 }
 0x173   : > { %v1738_v1 = vshrl.u32 %v1720_v18, %v1736_v17  ;;  %v1002_v42 = vsub.s32 0, %v4560_v55  ;;  %vm1385_vm12 = vcmp.lt.s32.totalorder %v1365_v41, 2  ;;  %v1394_v3 = vsel %vm1386_vm9, %v1377_v25, %v1393_v35 }
 0x174   : > { %v1743_v44 = vor.u32 4788187, %v1742_v21  ;;  %v1395_v5 = vsel %vm1385_vm12, %v1392_v34, %v1394_v3  ;;  %v1396_v0 = vsel %vm1384_vm8, %v1374_v60, %v1377_v25  ;;  %v1397_v58 = vsel %vm1387_vm10, %v1383_v48, 1326507024  ;;  %v426_v34 = vpop.f32.mrf.mxu0 }
 0x175   : > { %v3495_v14 = vmin.u32 %v1002_v42, %v4560_v55  ;;  %v1388_v51 = vsel %vm1384_vm8, %v1368_v28, %v1371_v45  ;;  %v1390_v6 = vsel %vm1386_vm9, %v1374_v60, %v1389_v57  ;;  %v1398_v56 = vsel %vm1386_vm9, %v1380_v8, %v1397_v58 }
 0x176   : > { %v1399_v18 = vsel %vm1385_vm12, %v1396_v0, %v1398_v56  ;;  %v4575_v17 = vmul.u32.u64.low %v4551_v54, %v1395_v5  ;;  %v4576_v13 = vmul.u32.u64.high %v4551_v54, %v1395_v5, %v4575_v17  ;;  %v3502_v21 = vadd.s32 4294967169, %v1148_v32  ;;  %v430_v5 = vpop.f32.mrf.mxu0 }
 0x177   : > { %v914_v35 = vcvt.s32.f32 %v907_v53  ;;  %v1004_v25 = vclz %v3495_v14  ;;  %v4580_v48 = vmul.u32.u64.low %v4551_v54, %v1399_v18  ;;  %v4581_v42 = vmul.u32.u64.high %v4551_v54, %v1399_v18, %v4580_v48 }
 0x178   : > { %3788 = vcosq.f32 %v4370_v62  ;;  %v1739_v45 = vor.u32 %v1738_v1, %v1737_v36  ;;  %v1391_v8 = vsel %vm1385_vm12, %v1388_v51, %v1390_v6  ;;  %v1154_v60 = vadd.s32 1, %v3502_v21 }
 0x179   : > { %v4590_v28 = vsel %vm1042_vm7, %v1124_v39, %v4436_v4  ;;  %v4596_v32 = vmul.f32 %v706_v20, %v704_v38  ;;  %v4598_v53 = vmul.f32 %v914_v35, %v912_v63  ;;  %v3496_v57 = vadd.s32 4294967294, %v1004_v25 }
 0x17a   : > { %v1744_v36 = vand.u32 2147483647, %v1743_v44  ;;  %v1410_v41 = vadd.s32 1, %v4576_v13  ;;  %v6403_v1 = vand.u32 2147483647, %v4461_v49  ;;  %vm1155_vm15 = vcmp.gt.s32.totalorder %v1154_v60, 0 }
 0x17b   : > { %v6404_v4 = vxor.u32 2147483648, %v4467_v16  ;;  %v1407_v22 = vmul.u32 %v4551_v54, %v1391_v8  ;;  %vm1409_vm0 = vc.u32 %v4581_v42, %v4575_v17  ;;  %v1156_v33 = vsel %vm1155_vm15, %v1154_v60, 0 }
 0x17c   : > { %v1151_v3 = vand.u32 8388607, %v6403_v1  ;;  %v1746_v38 = vcvt.s32.f32 %v1739_v45  ;;  %vm3497_vm1 = vcmp.lt.s32.totalorder %v3496_v57, 0  ;;  %v1411_v20 = vsel %vm1409_vm0, %v1410_v41, %v4576_v13 }
 0x17d   : > { %v4608_v39 = vsel %vm730_vm11, %v6404_v4, %v4467_v16  ;;  %v1158_v63 = vand.u32 31, %v1156_v33  ;;  %v916_v44 = vxor.u32 2147483648, %v4598_v53  ;;  %v1412_v0 = vadd.s32 %v1411_v20, %v1407_v22 }
 0x17e   : > { %v4616_v58 = vadd.f32 %v426_v34, %v4426_v7  ;;  %v4619_v16 = vadd.f32 %v430_v5, %v4312_v43  ;;  %v4621_v14 = vmul.f32 %v1746_v38, %v1744_v36  ;;  %v992_v54 = vadd.s32 %v4504_v9, %v4517_v27 }
 0x17f   : > { %v1152_v51 = vor.u32 8388608, %v1151_v3  ;;  %v1159_v6 = vsub.s32 32, %v1158_v63  ;;  %v4625_v56 = vsel %vm3497_vm1, 0, %v3496_v57  ;;  %v1413_v18 = vadd.s32 536870912, %v1412_v0 }
 0x180   : > { %v1161_v13 = vshll.u32 %v6331_v2, %v1158_v63  ;;  %v6405_v21 = vmov 2475754826   ;;  %v6406_v34 = vmov 2131351028   ;;  %v1157_v9 = vshrl.u32 %v1156_v33, 5 }
 0x181   : > { %v1164_v35 = vshll.u32 %v6405_v21, %v1158_v63  ;;  %v1162_v7 = vshrl.u32 %v6405_v21, %v1159_v6  ;;  %v1165_v25 = vshrl.u32 %v6406_v34, %v1159_v6  ;;  %v1167_v48 = vshll.u32 %v6406_v34, %v1158_v63 }
 0x182   : > { %v1168_v45 = vshrl.u32 %v6323_v10, %v1159_v6  ;;  %v4633_v8 = vshrl.u32 %v1413_v18, 30  ;;  %v1170_v27 = vshll.u32 %v6323_v10, %v1158_v63  ;;  %v1171_v60 = vshrl.u32 %v6327_v12, %v1159_v6 }
 0x183   : > { %v1163_v57 = vor.u32 %v1162_v7, %v1161_v13  ;;  %v1166_v36 = vor.u32 %v1165_v25, %v1164_v35  ;;  %v6329_v1 = vand.u32 2147483647, %v4616_v58  ;;  %v1192_v4 = vshll.u32 %v1152_v51, 8 }
 0x184   : > { %v1169_v41 = vor.u32 %v1168_v45, %v1167_v48  ;;  %v1415_v3 = vshll.u32 %v4633_v8, 30  ;;  %v1172_v5 = vor.u32 %v1171_v60, %v1170_v27  ;;  %v1251_v22 = vand.u32 2139095040, %v4616_v58 }
 0x185   : > { %v1008_v38 = vsub.s32 32, %v4625_v56  ;;  %v1012_v20 = vsub.s32 4294967266, %v4625_v56  ;;  %v1173_v33 = vshll.u32 %v6327_v12, %v1158_v63  ;;  %v1174_v18 = vshrl.u32 %v6325_v19, %v1159_v6  ;;  %v4644_v10 = vpop.eup %3788 }
 0x186   : > { %6407 = vst [vmem:[#allocation11_spill] sm:$0xff] %v4644_v10  ;;  %v4646_v13 = vsub.s32 %v1412_v0, %v1415_v3  ;;  %vm1176_vm2 = vcmp.lt.s32.totalorder %v1157_v9, 1  ;;  %vm1178_vm3 = vcmp.lt.s32.totalorder %v1157_v9, 3  ;;  %vm1179_vm4 = vcmp.lt.s32.totalorder %v1157_v9, 4 }
 0x187   : > { %v1175_v35 = vor.u32 %v1174_v18, %v1173_v33  ;;  %v1181_v7 = vsel %vm1179_vm4, %v1169_v41, 2102212464  ;;  %v1184_v51 = vsel %vm1176_vm2, %v1163_v57, %v1166_v36  ;;  %v1185_v25 = vsel %vm1179_vm4, %v1172_v5, 920167782 }
 0x188   : > { %v1418_v48 = vsub.s32 0, %v4646_v13  ;;  %v1160_v45 = vshrl.u32 %v6331_v2, %v1159_v6  ;;  %vm1177_vm5 = vcmp.lt.s32.totalorder %v1157_v9, 2  ;;  %v1186_v63 = vsel %vm1178_vm3, %v1169_v41, %v1185_v25 }
 0x189   : > { %v1013_v27 = vadd.s32 127, %v1012_v20  ;;  %v1187_v60 = vsel %vm1177_vm5, %v1184_v51, %v1186_v63  ;;  %v1188_v0 = vsel %vm1176_vm2, %v1166_v36, %v1169_v41  ;;  %v1189_v3 = vsel %vm1179_vm4, %v1175_v35, 1326507024 }
 0x18a   : > { %vm6350_vm6 = vcmp.lt.s32.totalorder %v4261_v47, 0  ;;  %v3511_v33 = vmin.u32 %v1418_v48, %v4646_v13  ;;  %v1180_v18 = vsel %vm1176_vm2, %v1160_v45, %v1163_v57  ;;  %v1182_v19 = vsel %vm1178_vm3, %v1166_v36, %v1181_v7 }
 0x18b   : > { %v1190_v12 = vsel %vm1178_vm3, %v1172_v5, %v1189_v3  ;;  %vm1666_vm8 = vcmp.lt.s32.totalorder %v4318_v24, 0  ;;  %v4661_v20 = vmul.u32.u64.low %v1192_v4, %v1187_v60  ;;  %v4662_v25 = vmul.u32.u64.high %v1192_v4, %v1187_v60, %v4661_v20 }
 0x18c   : > { %v1191_v6 = vsel %vm1177_vm5, %v1188_v0, %v1190_v12  ;;  %v1252_v41 = vshrl.u32 %v1251_v22, 23  ;;  %v1420_v35 = vclz %v3511_v33  ;;  %v1255_v57 = vand.u32 8388607, %v6329_v1 }
 0x18d   : > { %v4665_v51 = vmul.u32.u64.low %v1192_v4, %v1191_v6  ;;  %v4666_v63 = vmul.u32.u64.high %v1192_v4, %v1191_v6, %v4665_v51  ;;  %v1748_v36 = vxor.u32 2147483648, %v4621_v14  ;;  %v1183_v5 = vsel %vm1177_vm5, %v1180_v18, %v1182_v19 }
 0x18e   : > { %v3506_v7 = vadd.s32 4294967169, %v1252_v41  ;;  %v1459_v48 = vand.u32 2139095040, %v4619_v16  ;;  %v1010_v12 = vshrl.u32 %v992_v54, %v1008_v38  ;;  %v1408_v45 = vadd.s32 %v4575_v17, %v4581_v42 }
 0x18f   : > { %v3512_v60 = vadd.s32 4294967294, %v1420_v35  ;;  %v6330_v22 = vand.u32 2147483647, %v4619_v16  ;;  %v1014_v0 = vshll.u32 %v1013_v27, 23  ;;  %v1202_v3 = vadd.s32 1, %v4662_v25 }
 0x190   : > { %v1258_v33 = vadd.s32 1, %v3506_v7  ;;  %v1460_v6 = vshrl.u32 %v1459_v48, 23  ;;  %v1199_v51 = vmul.u32 %v1192_v4, %v1183_v5  ;;  %vm1201_vm10 = vc.u32 %v4666_v63, %v4661_v20 }
 0x191   : > { %vm3513_vm9 = vcmp.lt.s32.totalorder %v3512_v60, 0  ;;  %v1256_v19 = vor.u32 8388608, %v1255_v57  ;;  %v1203_v54 = vsel %vm1201_vm10, %v1202_v3, %v4662_v25  ;;  %v4682_v27 = vand.u32 8388607, %v6330_v22  ;;  %v432_v57 = vpop.f32.mrf.mxu0 }
 0x192   : > { %v1423_v9 = vsel %vm3513_vm9, 0, %v3512_v60  ;;  %vm1259_vm12 = vcmp.gt.s32.totalorder %v1258_v33, 0  ;;  %v3514_v38 = vadd.s32 4294967169, %v1460_v6  ;;  %v1204_v18 = vadd.s32 %v1203_v54, %v1199_v51 }
 0x193   : > { %v1424_v17 = vsub.s32 32, %v1423_v9  ;;  %v1428_v42 = vsub.s32 4294967266, %v1423_v9  ;;  %v4689_v4 = vsel %vm6350_vm6, %v916_v44, %v4598_v53  ;;  %v1009_v41 = vshll.u32 %v4560_v55, %v4625_v56 }
 0x194   : > { %v1260_v25 = vsel %vm1259_vm12, %v1258_v33, 0  ;;  %v1466_v35 = vadd.s32 1, %v3514_v38  ;;  %v4696_v5 = vsel %vm1666_vm8, %v1748_v36, %v4621_v14  ;;  %v1205_v60 = vadd.s32 536870912, %v1204_v18 }
 0x195   : > { %v1426_v7 = vshrl.u32 %v1408_v45, %v1424_v17  ;;  %v1429_v48 = vadd.s32 127, %v1428_v42  ;;  %v4698_v3 = vor.u32 %v1010_v12, %v1009_v41  ;;  %v4700_v6 = vor.u32 4788187, %v1014_v0 }
 0x196   : > { %v1425_v53 = vshll.u32 %v4646_v13, %v1423_v9  ;;  %v1262_v44 = vand.u32 31, %v1260_v25  ;;  %v4703_v51 = vshrl.u32 %v1205_v60, 30  ;;  %v4705_v55 = vshll.u32 %v1256_v19, 8 }
 0x197   : > { %v1464_v56 = vor.u32 8388608, %v4682_v27  ;;  %v4709_v33 = vadd.f32 %v432_v57, %v4312_v43  ;;  %v1261_v36 = vshrl.u32 %v1260_v25, 5  ;;  %vm1467_vm15 = vcmp.gt.s32.totalorder %v1466_v35, 0 }
 0x198   : > { %v1427_v14 = vor.u32 %v1426_v7, %v1425_v53  ;;  %v1263_v45 = vsub.s32 32, %v1262_v44  ;;  %v1430_v12 = vshll.u32 %v1429_v48, 23  ;;  %v1207_v0 = vshll.u32 %v4703_v51, 30 }
 0x199   : > { %v1265_v54 = vshll.u32 %v6331_v2, %v1262_v44  ;;  %v1268_v13 = vshll.u32 %v6405_v21, %v1262_v44  ;;  %v1271_v38 = vshll.u32 %v6406_v34, %v1262_v44  ;;  %v6408_v17 = vmov 2102212464  }
 0x19a   : > { %v1266_v9 = vshrl.u32 %v6405_v21, %v1263_v45  ;;  %v1269_v19 = vshrl.u32 %v6406_v34, %v1263_v45  ;;  %v1272_v43 = vshrl.u32 %v6408_v17, %v1263_v45  ;;  %v4718_v42 = vsub.s32 %v1204_v18, %v1207_v0 }
 0x19b   : > { %v1274_v27 = vshll.u32 %v6408_v17, %v1262_v44  ;;  %v6409_v41 = vmov 920167782   ;;  %v6410_v53 = vmov 1326507024   ;;  %v1431_v22 = vor.u32 4788187, %v1430_v12 }
 0x19c   : > { %v1275_v25 = vshrl.u32 %v6409_v41, %v1263_v45  ;;  %v1277_v57 = vshll.u32 %v6409_v41, %v1262_v44  ;;  %v1267_v7 = vor.u32 %v1266_v9, %v1265_v54  ;;  %v1270_v48 = vor.u32 %v1269_v19, %v1268_v13 }
 0x19d   : > { %v1273_v60 = vor.u32 %v1272_v43, %v1271_v38  ;;  %v1278_v1 = vshrl.u32 %v6410_v53, %v1263_v45  ;;  %v1210_v2 = vsub.s32 0, %v4718_v42  ;;  %vm1280_vm0 = vcmp.lt.s32.totalorder %v1261_v36, 1 }
 0x19e   : > { %v1276_v10 = vor.u32 %v1275_v25, %v1274_v27  ;;  %v1434_v61 = vcvt.s32.f32 %v1427_v14  ;;  %v6411_v30 = vmov 683565275   ;;  %vm1283_vm1 = vcmp.lt.s32.totalorder %v1261_v36, 4 }
 0x19f   : > { %v1264_v18 = vshrl.u32 %v6411_v30, %v1263_v45  ;;  %v1279_v0 = vor.u32 %v1278_v1, %v1277_v57  ;;  %v3503_v46 = vmin.u32 %v1210_v2, %v4718_v42  ;;  %vm1281_vm2 = vcmp.lt.s32.totalorder %v1261_v36, 2 }
 0x1a0   : > { %v1285_v29 = vsel %vm1283_vm1, %v1273_v60, 2102212464  ;;  %v1288_v44 = vsel %vm1280_vm0, %v1267_v7, %v1270_v48  ;;  %vm1282_vm3 = vcmp.lt.s32.totalorder %v1261_v36, 3  ;;  %v1289_v54 = vsel %vm1283_vm1, %v1276_v10, 920167782 }
 0x1a1   : > { %v1292_v13 = vsel %vm1280_vm0, %v1270_v48, %v1273_v60  ;;  %v1293_v9 = vsel %vm1283_vm1, %v1279_v0, 1326507024  ;;  %v1212_v19 = vclz %v3503_v46  ;;  %v1284_v12 = vsel %vm1280_vm0, %v1264_v18, %v1267_v7 }
 0x1a2   : > { %v1286_v38 = vsel %vm1282_vm3, %v1270_v48, %v1285_v29  ;;  %v1290_v43 = vsel %vm1282_vm3, %v1273_v60, %v1289_v54  ;;  %v1432_v27 = vand.u32 2147483647, %v1431_v22  ;;  %v1294_v25 = vsel %vm1282_vm3, %v1276_v10, %v1293_v9 }
 0x1a3   : > { %v1291_v14 = vsel %vm1281_vm2, %v1288_v44, %v1290_v43  ;;  %v1468_v1 = vsel %vm1467_vm15, %v1466_v35, 0  ;;  %v3504_v45 = vadd.s32 4294967294, %v1212_v19  ;;  %v1295_v2 = vsel %vm1281_vm2, %v1292_v13, %v1294_v25 }
 0x1a4   : > { %v4731_v57 = vmul.u32.u64.low %v4705_v55, %v1291_v14  ;;  %v4732_v37 = vmul.u32.u64.high %v4705_v55, %v1291_v14, %v4731_v57  ;;  %v1287_v0 = vsel %vm1281_vm2, %v1284_v12, %v1286_v38  ;;  %v1470_v22 = vand.u32 31, %v1468_v1 }
 0x1a5   : > { %v4737_v46 = vmul.u32.u64.low %v4705_v55, %v1295_v2  ;;  %v4738_v29 = vmul.u32.u64.high %v4705_v55, %v1295_v2, %v4737_v46  ;;  %v1200_v10 = vadd.s32 %v4661_v20, %v4666_v63  ;;  %vm3505_vm4 = vcmp.lt.s32.totalorder %v3504_v45, 0 }
 0x1a6   : > { %v4742_v35 = vshll.u32 %v1464_v56, 8  ;;  %v6343_v7 = vand.u32 2147483647, %v4709_v33  ;;  %v4745_v48 = vmul.f32 %v1434_v61, %v1432_v27  ;;  %v1215_v60 = vsel %vm3505_vm4, 0, %v3504_v45 }
 0x1a7   : > { %v1471_v18 = vsub.s32 32, %v1470_v22  ;;  %v1563_v36 = vand.u32 2139095040, %v4709_v33  ;;  %v1220_v44 = vsub.s32 4294967266, %v1215_v60  ;;  %v1303_v54 = vmul.u32 %v4705_v55, %v1287_v0 }
 0x1a8   : > { %v1306_v13 = vadd.s32 1, %v4732_v37  ;;  %v1469_v9 = vshrl.u32 %v1468_v1, 5  ;;  %vm1305_vm5 = vc.u32 %v4738_v29, %v4731_v57  ;;  %v1473_v20 = vshll.u32 %v6411_v30, %v1470_v22 }
 0x1a9   : > { %v1474_v63 = vshrl.u32 %v6405_v21, %v1471_v18  ;;  %v1476_v61 = vshll.u32 %v6405_v21, %v1470_v22  ;;  %v1216_v56 = vsub.s32 32, %v1215_v60  ;;  %v1221_v19 = vadd.s32 127, %v1220_v44 }
 0x1aa   : > { %v1307_v12 = vsel %vm1305_vm5, %v1306_v13, %v4732_v37  ;;  %v1477_v38 = vshrl.u32 %v6406_v34, %v1471_v18  ;;  %v1479_v55 = vshll.u32 %v6406_v34, %v1470_v22  ;;  %v1480_v27 = vshrl.u32 %v6408_v17, %v1471_v18 }
 0x1ab   : > { %v1308_v43 = vadd.s32 %v1307_v12, %v1303_v54  ;;  %v1564_v14 = vshrl.u32 %v1563_v36, 23  ;;  %v1222_v25 = vshll.u32 %v1221_v19, 23  ;;  %v1475_v1 = vor.u32 %v1474_v63, %v1473_v20 }
 0x1ac   : > { %v1478_v45 = vor.u32 %v1477_v38, %v1476_v61  ;;  %v4761_v2 = vand.u32 8388607, %v6343_v7  ;;  %v1481_v46 = vor.u32 %v1480_v27, %v1479_v55  ;;  %v1482_v44 = vshll.u32 %v6408_v17, %v1470_v22 }
 0x1ad   : > { %v1309_v0 = vadd.s32 536870912, %v1308_v43  ;;  %v1483_v37 = vshrl.u32 %v6409_v41, %v1471_v18  ;;  %v1217_v54 = vshll.u32 %v4718_v42, %v1215_v60  ;;  %v1218_v13 = vshrl.u32 %v1200_v10, %v1216_v56 }
 0x1ae   : > { %v1485_v12 = vshll.u32 %v6409_v41, %v1470_v22  ;;  %v1486_v36 = vshrl.u32 %v6410_v53, %v1471_v18  ;;  %v1223_v19 = vor.u32 4788187, %v1222_v25  ;;  %v1472_v63 = vshrl.u32 %v6411_v30, %v1471_v18 }
 0x1af   : > { %v4768_v20 = vshrl.u32 %v1309_v0, 30  ;;  %v1484_v61 = vor.u32 %v1483_v37, %v1482_v44  ;;  %vm1488_vm9 = vcmp.lt.s32.totalorder %v1469_v9, 1  ;;  %vm1490_vm10 = vcmp.lt.s32.totalorder %v1469_v9, 3 }
 0x1b0   : > { %v1487_v38 = vor.u32 %v1486_v36, %v1485_v12  ;;  %vm1491_vm12 = vcmp.lt.s32.totalorder %v1469_v9, 4  ;;  %v1496_v7 = vsel %vm1488_vm9, %v1475_v1, %v1478_v45  ;;  %v1219_v10 = vor.u32 %v1218_v13, %v1217_v54 }
 0x1b1   : > { %v1311_v55 = vshll.u32 %v4768_v20, 30  ;;  %v1493_v27 = vsel %vm1491_vm12, %v1481_v46, 2102212464  ;;  %v1497_v42 = vsel %vm1491_vm12, %v1484_v61, 920167782  ;;  %vm1489_vm15 = vcmp.lt.s32.totalorder %v1469_v9, 2 }
 0x1b2   : > { %v1498_v22 = vsel %vm1490_vm10, %v1481_v46, %v1497_v42  ;;  %v1500_v60 = vsel %vm1488_vm9, %v1478_v45, %v1481_v46  ;;  %vm1354_vm0 = vcmp.lt.s32.totalorder %v4440_v15, 0  ;;  %v1492_v18 = vsel %vm1488_vm9, %v1472_v63, %v1475_v1 }
 0x1b3   : > { %v4774_v56 = vsub.s32 %v1308_v43, %v1311_v55  ;;  %v1499_v25 = vsel %vm1489_vm15, %v1496_v7, %v1498_v22  ;;  %v1501_v0 = vsel %vm1491_vm12, %v1487_v38, 1326507024  ;;  %v1494_v44 = vsel %vm1490_vm10, %v1478_v45, %v1493_v27 }
 0x1b4   : > { %v1502_v37 = vsel %vm1490_vm10, %v1484_v61, %v1501_v0  ;;  %v4780_v12 = vmul.u32.u64.low %v4742_v35, %v1499_v25  ;;  %v4781_v36 = vmul.u32.u64.high %v4742_v35, %v1499_v25, %v4780_v12  ;;  %v1224_v54 = vand.u32 2147483647, %v1223_v19 }
 0x1b5   : > { %v1314_v13 = vsub.s32 0, %v4774_v56  ;;  %v1503_v46 = vsel %vm1489_vm15, %v1500_v60, %v1502_v37  ;;  %v3518_v42 = vadd.s32 4294967169, %v1564_v14  ;;  %v6412_v7 = vand.u32 2147483647, %v4318_v24 }
 0x1b6   : > { %v4786_v43 = vmul.u32.u64.low %v4742_v35, %v1503_v46  ;;  %v4787_v1 = vmul.u32.u64.high %v4742_v35, %v1503_v46, %v4786_v43  ;;  %v1750_v63 = vsub.s32 4, %v4476_v11  ;;  %v1226_v61 = vcvt.s32.f32 %v1219_v10 }
 0x1b7   : > { %vm4791_vm1 = vcmp.le.f32.partialorder %v6412_v7, 0.7853982  ;;  %v3507_v19 = vmin.u32 %v1314_v13, %v4774_v56  ;;  %v1495_v38 = vsel %vm1489_vm15, %v1492_v18, %v1494_v44  ;;  %v1570_v55 = vadd.s32 1, %v3518_v42 }
 0x1b8   : > { %v1436_v27 = vxor.u32 2147483648, %v4745_v48  ;;  %v1514_v22 = vadd.s32 1, %v4781_v36  ;;  %v1752_v60 = vsel %vm4791_vm1, %v4318_v24, %v4696_v5  ;;  %v4805_v25 = vmul.f32 %v1226_v61, %v1224_v54 }
 0x1b9   : > { %v1316_v0 = vclz %v3507_v19  ;;  %v1568_v10 = vor.u32 8388608, %v4761_v2  ;;  %vm1571_vm2 = vcmp.gt.s32.totalorder %v1570_v55, 0  ;;  %v1511_v9 = vmul.u32 %v4742_v35, %v1495_v38 }
 0x1ba   : > { %vm1513_vm3 = vc.u32 %v4787_v1, %v4780_v12  ;;  %v1572_v18 = vsel %vm1571_vm2, %v1570_v55, 0  ;;  %v1751_v44 = vsel %vm1666_vm8, %v1750_v63, %v4476_v11  ;;  %3790 = vcosq.f32 %v1752_v60 }
 0x1bb   : > { %v3508_v37 = vadd.s32 4294967294, %v1316_v0  ;;  %v1515_v13 = vsel %vm1513_vm3, %v1514_v22, %v4781_v36  ;;  %v1574_v46 = vand.u32 31, %v1572_v18  ;;  %v4817_v5 = vsel %vm1354_vm0, %v1436_v27, %v4745_v48 }
 0x1bc   : > { %v1304_v35 = vadd.s32 %v4731_v57, %v4738_v29  ;;  %v1516_v2 = vadd.s32 %v1515_v13, %v1511_v9  ;;  %3792 = vsinq.f32 %v1752_v60  ;;  %v4822_v11 = vshll.u32 %v1568_v10, 8 }
 0x1bd   : > { %vm3509_vm4 = vcmp.lt.s32.totalorder %v3508_v37, 0  ;;  %v1575_v42 = vsub.s32 32, %v1574_v46  ;;  %v1573_v7 = vshrl.u32 %v1572_v18, 5  ;;  %v1753_v63 = vsel %vm4791_vm1, 0, %v1751_v44 }
 0x1be   : > { %v1319_v43 = vsel %vm3509_vm4, 0, %v3508_v37  ;;  %v1517_v36 = vadd.s32 536870912, %v1516_v2  ;;  %v1577_v48 = vshll.u32 %v6411_v30, %v1574_v46  ;;  %v1580_v19 = vshll.u32 %v6405_v21, %v1574_v46 }
 0x1bf   : > { %v1324_v61 = vsub.s32 4294967266, %v1319_v43  ;;  %v1583_v57 = vshll.u32 %v6406_v34, %v1574_v46  ;;  %v1578_v38 = vshrl.u32 %v6405_v21, %v1575_v42  ;;  %v1581_v55 = vshrl.u32 %v6406_v34, %v1575_v42 }
 0x1c0   : > { %v4829_v29 = vshrl.u32 %v1517_v36, 30  ;;  %v1584_v27 = vshrl.u32 %v6408_v17, %v1575_v42  ;;  %v1320_v22 = vsub.s32 32, %v1319_v43  ;;  %v1586_v45 = vshll.u32 %v6408_v17, %v1574_v46 }
 0x1c1   : > { %v1325_v60 = vadd.s32 127, %v1324_v61  ;;  %v1587_v0 = vshrl.u32 %v6409_v41, %v1575_v42  ;;  %v1579_v9 = vor.u32 %v1578_v38, %v1577_v48  ;;  %v1582_v18 = vor.u32 %v1581_v55, %v1580_v19 }
 0x1c2   : > { %v1519_v10 = vshll.u32 %v4829_v29, 30  ;;  %v1585_v44 = vor.u32 %v1584_v27, %v1583_v57  ;;  %v4838_v37 = vadd.s32 %v4780_v12, %v4787_v1  ;;  %v1589_v36 = vshll.u32 %v6409_v41, %v1574_v46 }
 0x1c3   : > { %v1588_v13 = vor.u32 %v1587_v0, %v1586_v45  ;;  %v1590_v14 = vshrl.u32 %v6410_v53, %v1575_v42  ;;  %v1321_v54 = vshll.u32 %v4774_v56, %v1319_v43  ;;  %v1326_v61 = vshll.u32 %v1325_v60, 23 }
 0x1c4   : > { %v4843_v34 = vsub.s32 %v1516_v2, %v1519_v10  ;;  %v1757_v17 = vadd.s32 3, %v1753_v63  ;;  %v1576_v21 = vshrl.u32 %v6411_v30, %v1575_v42  ;;  %vm1592_vm8 = vcmp.lt.s32.totalorder %v1573_v7, 1 }
 0x1c5   : > { %v1591_v52 = vor.u32 %v1590_v14, %v1589_v36  ;;  %vm1595_vm5 = vcmp.lt.s32.totalorder %v1573_v7, 4  ;;  %v1322_v48 = vshrl.u32 %v1304_v35, %v1320_v22  ;;  %v1600_v19 = vsel %vm1592_vm8, %v1579_v9, %v1582_v18 }
 0x1c6   : > { %v1522_v12 = vsub.s32 0, %v4843_v34  ;;  %v1597_v1 = vsel %vm1595_vm5, %v1585_v44, 2102212464  ;;  %vm1593_vm9 = vcmp.lt.s32.totalorder %v1573_v7, 2  ;;  %vm1594_vm10 = vcmp.lt.s32.totalorder %v1573_v7, 3 }
 0x1c7   : > { %v1601_v46 = vsel %vm1595_vm5, %v1588_v13, 920167782  ;;  %v1604_v56 = vsel %vm1592_vm8, %v1582_v18, %v1585_v44  ;;  %v3791_v43 = vpop.eup %3790  ;;  %v4849_v2 = vor.u32 4788187, %v1326_v61  ;;  %v1605_v14 = vsel %vm1595_vm5, %v1591_v52, 1326507024 }
 0x1c8   : > { %v3515_v63 = vmin.u32 %v1522_v12, %v4843_v34  ;;  %v1602_v42 = vsel %vm1594_vm10, %v1585_v44, %v1601_v46  ;;  %vm1756_vm12 = vweird.f32 %v4318_v24  ;;  %v1596_v57 = vsel %vm1592_vm8, %v1576_v21, %v1579_v9 }
 0x1c9   : > { %v3793_v35 = vpop.eup %3792  ;;  %v1598_v38 = vsel %vm1594_vm10, %v1582_v18, %v1597_v1  ;;  %v1603_v55 = vsel %vm1593_vm9, %v1600_v19, %v1602_v42  ;;  %v1606_v27 = vsel %vm1594_vm10, %v1588_v13, %v1605_v14  ;;  %v1323_v10 = vor.u32 %v1322_v48, %v1321_v54 }
 0x1ca   : > { %v1524_v22 = vclz %v3515_v63  ;;  %v1607_v60 = vsel %vm1593_vm9, %v1604_v56, %v1606_v27  ;;  %v4857_v45 = vmul.u32.u64.low %v4822_v11, %v1603_v55  ;;  %v4858_v0 = vmul.u32.u64.high %v4822_v11, %v1603_v55, %v4857_v45 }
 0x1cb   : > { %v4862_v52 = vmul.u32.u64.low %v4822_v11, %v1607_v60  ;;  %v4863_v44 = vmul.u32.u64.high %v4822_v11, %v1607_v60, %v4862_v52  ;;  %v1758_v36 = vand.u32 3, %v1757_v17  ;;  %v1599_v21 = vsel %vm1593_vm9, %v1596_v57, %v1598_v38 }
 0x1cc   : > { %v3516_v61 = vadd.s32 4294967294, %v1524_v22  ;;  %v1761_v9 = vxor.u32 2147483648, %v3793_v35  ;;  %v1764_v18 = vxor.u32 2147483648, %v3791_v43  ;;  %vm1146_vm15 = vcmp.lt.s32.totalorder %v4461_v49, 0 }
 0x1cd   : > { %v1328_v13 = vand.u32 2147483647, %v4849_v2  ;;  %vm1759_vm1 = vcmp.lt.s32.totalorder %v1758_v36, 2  ;;  %vm1760_vm2 = vcmp.eq.s32.totalorder %v1758_v36, 0  ;;  %vm1763_vm3 = vcmp.eq.s32.totalorder %v1758_v36, 2 }
 0x1ce   : > { %vm3517_vm4 = vcmp.lt.s32.totalorder %v3516_v61, 0  ;;  %v1618_v54 = vadd.s32 1, %v4858_v0  ;;  %v1762_v48 = vsel %vm1760_vm2, %v3791_v43, %v1761_v9  ;;  %v1765_v12 = vsel %vm1763_vm3, %v1764_v18, %v3793_v35 }
 0x1cf   : > { %v1527_v1 = vsel %vm3517_vm4, 0, %v3516_v61  ;;  %v1615_v17 = vmul.u32 %v4822_v11, %v1599_v21  ;;  %vm1617_vm8 = vc.u32 %v4863_v44, %v4857_v45  ;;  %v1766_v7 = vsel %vm1759_vm1, %v1762_v48, %v1765_v12 }
 0x1d0   : > { %v6415_v19 = vand.u32 2147483647, %v4261_v47  ;;  %v1528_v56 = vsub.s32 32, %v1527_v1  ;;  %v1532_v2 = vsub.s32 4294967266, %v1527_v1  ;;  %v1619_v63 = vsel %vm1617_vm8, %v1618_v54, %v4858_v0 }
 0x1d1   : > { %v6418_v43 = vand.u32 2147483647, %v4440_v15  ;;  %v1620_v11 = vadd.s32 %v1619_v63, %v1615_v17  ;;  %v1767_v14 = vsel %vm1756_vm12, nan, %v1766_v7  ;;  %v1438_v35 = vsub.s32 4, %v4633_v8 }
 0x1d2   : > { %vm4874_vm5 = vcmp.le.f32.partialorder %v6415_v19, 0.7853982  ;;  %v1529_v38 = vshll.u32 %v4843_v34, %v1527_v1  ;;  %v1530_v55 = vshrl.u32 %v4838_v37, %v1528_v56  ;;  %v1533_v27 = vadd.s32 127, %v1532_v2  ;;  %3614 = vmatprep.subr.mxu0 %v1767_v14 }
 0x1d3   : > { %vm4881_vm9 = vcmp.le.f32.partialorder %v6418_v43, 0.7853982  ;;  %v1621_v22 = vadd.s32 536870912, %v1620_v11  ;;  %3615 = vmatpush3.msra.mxu0 %v1767_v14  ;;  %v1439_v24 = vsel %vm1354_vm0, %v1438_v35, %v4633_v8  ;;  %v6421_v60 = vand.u32 2147483647, %v4106_v31 }
 0x1d4   : > { %v1440_v57 = vsel %vm4881_vm9, %v4440_v15, %v4817_v5  ;;  %v1531_v5 = vor.u32 %v1530_v55, %v1529_v38  ;;  %v1534_v34 = vshll.u32 %v1533_v27, 23  ;;  %v1441_v37 = vsel %vm4881_vm9, 0, %v1439_v24 }
 0x1d5   : > { %3794 = vcosq.f32 %v1440_v57  ;;  %vm4899_vm10 = vcmp.le.f32.partialorder %v6421_v60, 0.7853982  ;;  %v1126_v52 = vsub.s32 4, %v4231_v23  ;;  %v1016_v36 = vand.u32 2147483647, %v4700_v6 }
 0x1d6   : > { %3796 = vsinq.f32 %v1440_v57  ;;  %v1330_v61 = vcvt.s32.f32 %v1323_v10  ;;  %v4907_v21 = vshrl.u32 %v1621_v22, 30  ;;  %v1128_v8 = vsel %vm4899_vm10, %v4106_v31, %v4590_v28 }
 0x1d7   : > { %v6424_v9 = vxor.u32 2147483648, %v4805_v25  ;;  %v1535_v54 = vor.u32 4788187, %v1534_v34  ;;  %v1127_v48 = vsel %vm1042_vm7, %v1126_v52, %v4231_v23  ;;  %3798 = vcosq.f32 %v1128_v8 }
 0x1d8   : > { %v1331_v6 = vmul.f32 %v1330_v61, %v1328_v13  ;;  %v1623_v10 = vshll.u32 %v4907_v21, 30  ;;  %v1445_v12 = vadd.s32 3, %v1441_v37  ;;  %3800 = vsinq.f32 %v1128_v8 }
 0x1d9   : > { %v1229_v18 = vsel %vm1146_vm15, %v6424_v9, %v4805_v25  ;;  %v1536_v1 = vand.u32 2147483647, %v1535_v54  ;;  %v1538_v17 = vcvt.s32.f32 %v1531_v5  ;;  %v1129_v28 = vsel %vm4899_vm10, 0, %v1127_v48 }
 0x1da   : > { %v814_v7 = vsub.s32 4, %v4329_v40  ;;  %v4929_v25 = vsel %vm4874_vm5, %v4261_v47, %v4689_v4  ;;  %v6425_v23 = vand.u32 2147483647, %v4461_v49  ;;  %v4937_v19 = vsub.s32 %v1620_v11, %v1623_v10 }
 0x1db   : > { %v6428_v56 = vand.u32 2147483647, %v4120_v50  ;;  %v6431_v63 = vcvt.s32.f32 %v4698_v3  ;;  %v1539_v4 = vmul.f32 %v1538_v17, %v1536_v1  ;;  %v1133_v57 = vadd.s32 3, %v1129_v28  ;;  %v4963_v3 = vld [vmem:[%s6304_s2] sm:$0xff] }
 0x1dc   : > { %vm4933_vm7 = vcmp.le.f32.partialorder %v6425_v23, 0.7853982  ;;  %v815_v42 = vsel %vm730_vm11, %v814_v7, %v4329_v40  ;;  %v1626_v35 = vsub.s32 0, %v4937_v19  ;;  %vm1250_vm11 = vcmp.lt.s32.totalorder %v4616_v58, 0 }
 0x1dd   : > { %vm4941_vm0 = vcmp.le.f32.partialorder %v6428_v56, 0.7853982  ;;  %v4947_v43 = vmul.f32 %v6431_v63, %v1016_v36  ;;  %v1232_v14 = vsel %vm4933_vm7, %v4461_v49, %v1229_v18  ;;  %v1332_v40 = vxor.u32 2147483648, %v1331_v6 }
 0x1de   : > { %v816_v11 = vsel %vm4941_vm0, %v4120_v50, %v4608_v39  ;;  %v1540_v38 = vxor.u32 2147483648, %v1539_v4  ;;  %v1446_v55 = vand.u32 3, %v1445_v12  ;;  %v3519_v39 = vmin.u32 %v1626_v35, %v4937_v19 }
 0x1df   : > { %3802 = vcosq.f32 %v816_v11  ;;  %v817_v27 = vsel %vm4941_vm0, 0, %v815_v42  ;;  %vm6351_vm12 = vcmask 261120   ;;  %v1020_v22 = vxor.u32 2147483648, %v4947_v43 }
 0x1e0   : > { %3804 = vsinq.f32 %v816_v11  ;;  %v6432_v24 = vand.u32 2147483647, %v4619_v16  ;;  %vm1458_vm2 = vcmp.lt.s32.totalorder %v4619_v16, 0  ;;  %3622 = vmatprep.mubr.msk.f32.mxu0 %vm6351_vm12, %v4963_v3  ;;  %v1628_v34 = vclz %v3519_v39 }
 0x1e1   : > { %3806 = vcosq.f32 %v1232_v14  ;;  %v1541_v5 = vsel %vm1458_vm2, %v1540_v38, %v1539_v4  ;;  %v1134_v37 = vand.u32 3, %v1133_v57  ;;  %v1333_v36 = vsel %vm1250_vm11, %v1332_v40, %v1331_v6 }
 0x1e2   : > { %vm4972_vm1 = vcmp.le.f32.partialorder %v6432_v24, 0.7853982  ;;  %v3795_v0 = vpop.eup %3794  ;;  %3808 = vsinq.f32 %v1232_v14  ;;  %v1616_v61 = vadd.s32 %v4857_v45, %v4863_v44  ;;  %v821_v9 = vadd.s32 3, %v817_v27 }
 0x1e3   : > { %v3797_v52 = vpop.eup %3796  ;;  %v1452_v8 = vxor.u32 2147483648, %v3795_v0  ;;  %v3520_v18 = vadd.s32 4294967294, %v1628_v34  ;;  %vm1444_vm3 = vweird.f32 %v4440_v15  ;;  %vm1451_vm4 = vcmp.eq.s32.totalorder %v1446_v55, 2 }
 0x1e4   : > { %v1449_v54 = vxor.u32 2147483648, %v3797_v52  ;;  %v1544_v48 = vsel %vm4972_vm1, %v4619_v16, %v1541_v5  ;;  %vm1448_vm8 = vcmp.eq.s32.totalorder %v1446_v55, 0  ;;  %vm1132_vm9 = vweird.f32 %v4106_v31  ;;  %v3799_v12 = vpop.eup %3798 }
 0x1e5   : > { %v1453_v10 = vsel %vm1451_vm4, %v1452_v8, %v3797_v52  ;;  %vm1562_vm10 = vcmp.lt.s32.totalorder %v4709_v33, 0  ;;  %vm3521_vm0 = vcmp.lt.s32.totalorder %v3520_v18, 0  ;;  %vm1447_vm13 = vcmp.lt.s32.totalorder %v1446_v55, 2  ;;  %v3801_v44 = vpop.eup %3800 }
 0x1e6   : > { %v1450_v45 = vsel %vm1448_vm8, %v3795_v0, %v1449_v54  ;;  %vm1139_vm6 = vcmp.eq.s32.totalorder %v1134_v37, 2  ;;  %v1631_v6 = vsel %vm3521_vm0, 0, %v3520_v18  ;;  %v1140_v17 = vxor.u32 2147483648, %v3799_v12 }
 0x1e7   : > { %v1454_v1 = vsel %vm1447_vm13, %v1450_v45, %v1453_v10  ;;  %v822_v28 = vand.u32 3, %v821_v9  ;;  %3810 = vcosq.f32 %v1544_v48  ;;  %v1632_v7 = vsub.s32 32, %v1631_v6 }
 0x1e8   : > { %v1636_v23 = vsub.s32 4294967266, %v1631_v6  ;;  %v1455_v56 = vsel %vm1444_vm3, nan, %v1454_v1  ;;  %3812 = vsinq.f32 %v1544_v48  ;;  %v1137_v2 = vxor.u32 2147483648, %v3801_v44 }
 0x1e9   : > { %3616 = vmatprep.subr.mxu0 %v1455_v56  ;;  %v1141_v63 = vsel %vm1139_vm6, %v1140_v17, %v3801_v44  ;;  %v1542_v4 = vsub.s32 4, %v4829_v29  ;;  %v1633_v42 = vshll.u32 %v4937_v19, %v1631_v6  ;;  %v1634_v11 = vshrl.u32 %v1616_v61, %v1632_v7  ;;  %v5033_v6 = vld [vmem:[%s6304_s2 + $0x8] sm:$0xff]  ;;  %v5043_v17 = vld [vmem:[%s6304_s2 + $0x10] sm:$0xff] }
 0x1ea   : > { %v1637_v14 = vadd.s32 127, %v1636_v23  ;;  %3617 = vmatpush3.msra.mxu0 %v1455_v56  ;;  %vm1136_vm13 = vcmp.eq.s32.totalorder %v1134_v37, 0  ;;  %vm1135_vm4 = vcmp.lt.s32.totalorder %v1134_v37, 2  ;;  %vm827_vm8 = vcmp.eq.s32.totalorder %v822_v28, 2 }
 0x1eb   : > { %v1138_v57 = vsel %vm1136_vm13, %v3799_v12, %v1137_v2  ;;  %v1646_v40 = vsub.s32 4, %v4907_v21  ;;  %v1635_v15 = vor.u32 %v1634_v11, %v1633_v42  ;;  %v1543_v19 = vsel %vm1458_vm2, %v1542_v4, %v4829_v29 }
 0x1ec   : > { %v3803_v35 = vpop.eup %3802  ;;  %v1638_v38 = vshll.u32 %v1637_v14, 23  ;;  %v1142_v55 = vsel %vm1135_vm4, %v1138_v57, %v1141_v63  ;;  %v6435_v0 = vand.u32 2147483647, %v4616_v58  ;;  %v1334_v34 = vsub.s32 4, %v4768_v20 }
 0x1ed   : > { %v828_v39 = vxor.u32 2147483648, %v3803_v35  ;;  %v3805_v27 = vpop.eup %3804  ;;  %v1143_v24 = vsel %vm1132_vm9, nan, %v1142_v55  ;;  %vm820_vm2 = vweird.f32 %v4120_v50  ;;  %vm823_vm3 = vcmp.lt.s32.totalorder %v822_v28, 2 }
 0x1ee   : > { %vm5003_vm6 = vcmp.le.f32.partialorder %v6435_v0, 0.7853982  ;;  %v5008_v37 = vpop.eup %3806  ;;  %v1639_v52 = vor.u32 4788187, %v1638_v38  ;;  %3618 = vmatprep.subr.mxu0 %v1143_v24  ;;  %v825_v61 = vxor.u32 2147483648, %v3805_v27  ;;  %vm824_vm9 = vcmp.eq.s32.totalorder %v822_v28, 0 }
 0x1ef   : > { %v829_v8 = vsel %vm827_vm8, %v828_v39, %v3805_v27  ;;  %v1336_v31 = vsel %vm5003_vm6, %v4616_v58, %v1333_v36  ;;  %v5013_v9 = vpop.eup %3808  ;;  %3619 = vmatpush3.msra.mxu0 %v1143_v24  ;;  %v1647_v29 = vsel %vm1562_vm10, %v1646_v40, %v4907_v21  ;;  %v1642_v54 = vcvt.s32.f32 %v1635_v15  ;;  %v6444_v15 = vld [vmem:[#allocation10_spill] sm:$0xff] }
 0x1f0   : > { %v1640_v18 = vand.u32 2147483647, %v1639_v52  ;;  %v826_v48 = vsel %vm824_vm9, %v3803_v35, %v825_v61  ;;  %v1545_v10 = vsel %vm4972_vm1, 0, %v1543_v19  ;;  %v6438_v36 = vand.u32 2147483647, %v4709_v33  ;;  %v6445_v24 = vld [vmem:[#allocation6_spill] sm:$0xff] }
 0x1f1   : > { %v830_v12 = vsel %vm823_vm3, %v826_v48, %v829_v8  ;;  %v1335_v50 = vsel %vm1250_vm11, %v1334_v34, %v4768_v20  ;;  %3814 = vcosq.f32 %v1336_v31  ;;  %v1230_v60 = vsub.s32 4, %v4703_v51 }
 0x1f2   : > { %vm5023_vm0 = vcmp.le.f32.partialorder %v6438_v36, 0.7853982  ;;  %v1643_v44 = vmul.f32 %v1642_v54, %v1640_v18  ;;  %v831_v21 = vsel %vm820_vm2, nan, %v830_v12  ;;  %3816 = vsinq.f32 %v1336_v31  ;;  %v6451_v36 = vld [vmem:[#allocation8_spill] sm:$0xff] }
 0x1f3   : > { %3818 = vcosq.f32 %v4929_v25  ;;  %vm938_vm1 = vcmp.lt.s32.totalorder %v4365_v59, 0  ;;  %3620 = vmatprep.subr.mxu0 %v831_v21  ;;  %v1649_v1 = vsel %vm5023_vm0, 0, %v1647_v29  ;;  %v1549_v20 = vadd.s32 3, %v1545_v10 }
 0x1f4   : > { %3820 = vsinq.f32 %v4929_v25  ;;  %v1021_v28 = vsel %vm938_vm1, %v1020_v22, %v4947_v43  ;;  %v1644_v7 = vxor.u32 2147483648, %v1643_v44  ;;  %3621 = vmatpush3.msra.mxu0 %v831_v21  ;;  %v1231_v23 = vsel %vm1146_vm15, %v1230_v60, %v4703_v51  ;;  %v3811_v56 = vpop.eup %3810 }
 0x1f5   : > { %3822 = vsinq.f32 %v4370_v62  ;;  %v708_v2 = vxor.u32 2147483648, %v4596_v32  ;;  %3623 = vmatmul.mubr.msk.f32.vlgmr.msra.gmra.mxu0 %vm6351_vm12, %v5033_v6  ;;  %v1337_v25 = vsel %vm5003_vm6, 0, %v1335_v50  ;;  %v3813_v63 = vpop.eup %3812  ;;  %v1653_v22 = vadd.s32 3, %v1649_v1  ;;  %v5067_v62 = vld [vmem:[%s6304_s2 + $0x18] sm:$0xff] }
 0x1f6   : > { %v1645_v43 = vsel %vm1562_vm10, %v1644_v7, %v1643_v44  ;;  %3625 = vmatprep.mubr.msk.f32.mxu0 %vm6351_vm12, %v5043_v17  ;;  %v1233_v51 = vsel %vm4933_vm7, 0, %v1231_v23  ;;  %v6441_v4 = vand.u32 2147483647, %v4365_v59  ;;  %v1550_v14 = vand.u32 3, %v1549_v20 }
 0x1f7   : > { %v1648_v11 = vsel %vm5023_vm0, %v4709_v33, %v1645_v43  ;;  %v1022_v35 = vsub.s32 4, %v4548_v26  ;;  %v1556_v13 = vxor.u32 2147483648, %v3811_v56  ;;  %v1341_v40 = vadd.s32 3, %v1337_v25 }
 0x1f8   : > { %vm5073_vm15 = vcmp.le.f32.partialorder %v6441_v4, 0.7853982  ;;  %3824 = vcosq.f32 %v1648_v11  ;;  %v918_v38 = vsub.s32 4, %v6444_v15  ;;  %v1553_v55 = vxor.u32 2147483648, %v3813_v63  ;;  %v6452_v4 = vld [vmem:[#allocation7_spill] sm:$0xff] }
 0x1f9   : > { %v1024_v57 = vsel %vm5073_vm15, %v4365_v59, %v1021_v28  ;;  %3826 = vsinq.f32 %v1648_v11  ;;  %3626 = vmatmul.mubr.msk.f32.gmra.mxu0 %vm6351_vm12, %v5067_v62  ;;  %v1237_v39 = vadd.s32 3, %v1233_v51  ;;  %v1023_v27 = vsel %vm938_vm1, %v1022_v35, %v4548_v26 }
 0x1fa   : > { %vm626_vm7 = vcmp.lt.s32.totalorder %v6445_v24, 0  ;;  %v1025_v19 = vsel %vm5073_vm15, 0, %v1023_v27  ;;  %3828 = vcosq.f32 %v1024_v57  ;;  %vm6446_vm11 = vcmp.lt.s32.totalorder %v4261_v47, 0 }
 0x1fb   : > { %v919_v0 = vsel %vm6446_vm11, %v918_v38, %v6444_v15  ;;  %v6447_v5 = vmov 0.0   ;;  %v709_v34 = vsel %vm626_vm7, %v708_v2, %v4596_v32  ;;  %v5100_v52 = vand.u32 3, %v1653_v22 }
 0x1fc   : > { %3305 = vmatprep.mubr.f32.mxu0 %v6447_v5  ;;  %vm1555_vm10 = vcmp.eq.s32.totalorder %v1550_v14, 2  ;;  %3830 = vsinq.f32 %v1024_v57  ;;  %vm1552_vm13 = vcmp.eq.s32.totalorder %v1550_v14, 0  ;;  %v5102_v61 = vand.u32 3, %v1341_v40 }
 0x1fd   : > { %v1557_v26 = vsel %vm1555_vm10, %v1556_v13, %v3813_v63  ;;  %v921_v8 = vsel %vm4874_vm5, 0, %v919_v0  ;;  %v1554_v31 = vsel %vm1552_vm13, %v3811_v56, %v1553_v55  ;;  %v1238_v29 = vand.u32 3, %v1237_v39  ;;  %v6453_v13 = vld [vmem:[#allocation5_spill] sm:$0xff] }
 0x1fe   : > { %v1029_v18 = vadd.s32 3, %v1025_v19  ;;  %v6448_v54 = vand.u32 2147483647, %v6445_v24  ;;  %v3815_v32 = vpop.eup %3814  ;;  %v1241_v10 = vxor.u32 2147483648, %v5013_v9  ;;  %v1244_v12 = vxor.u32 2147483648, %v5008_v37 }
 0x1ff   : > { %v710_v45 = vsub.s32 4, %v6451_v36  ;;  %v3817_v50 = vpop.eup %3816  ;;  %vm1548_vm5 = vweird.f32 %v4619_v16  ;;  %vm1551_vm8 = vcmp.lt.s32.totalorder %v1550_v14, 2  ;;  %v925_v44 = vadd.s32 3, %v921_v8 }
 0x200   : > { %vm5108_vm4 = vcmp.le.f32.partialorder %v6448_v54, 0.7853982  ;;  %v3819_v21 = vpop.eup %3818  ;;  %vm1656_vm6 = vcmp.eq.s32.totalorder %v5100_v52, 0  ;;  %vm1659_vm2 = vcmp.eq.s32.totalorder %v5100_v52, 2  ;;  %v1558_v60 = vsel %vm1551_vm8, %v1554_v31, %v1557_v26 }
 0x201   : > { %v712_v46 = vsel %vm5108_vm4, %v6445_v24, %v709_v34  ;;  %vm1343_vm3 = vcmp.lt.s32.totalorder %v5102_v61, 2  ;;  %vm1344_vm9 = vcmp.eq.s32.totalorder %v5102_v61, 0  ;;  %v3821_v1 = vpop.eup %3820  ;;  %vm1655_vm0 = vcmp.lt.s32.totalorder %v5100_v52, 2 }
 0x202   : > { %3832 = vcosq.f32 %v712_v46  ;;  %v1348_v20 = vxor.u32 2147483648, %v3815_v32  ;;  %vm1240_vm1 = vcmp.eq.s32.totalorder %v1238_v29, 0  ;;  %vm1243_vm15 = vcmp.eq.s32.totalorder %v1238_v29, 2  ;;  %v5124_v7 = vpop.eup %3822 }
 0x203   : > { %v1030_v28 = vand.u32 3, %v1029_v18  ;;  %vm1652_vm11 = vweird.f32 %v4709_v33  ;;  %v1345_v23 = vxor.u32 2147483648, %v3817_v50  ;;  %v1242_v56 = vsel %vm1240_vm1, %v5008_v37, %v1241_v10 }
 0x204   : > { %v1245_v2 = vsel %vm1243_vm15, %v1244_v12, %v5013_v9  ;;  %v711_v25 = vsel %vm626_vm7, %v710_v45, %v6451_v36  ;;  %v1559_v63 = vsel %vm1548_vm5, nan, %v1558_v60  ;;  %vm1347_vm10 = vcmp.eq.s32.totalorder %v5102_v61, 2 }
 0x205   : > { %v926_v43 = vand.u32 3, %v925_v44  ;;  %3834 = vsinq.f32 %v712_v46  ;;  %vm1340_vm13 = vweird.f32 %v4616_v58  ;;  %vm1239_vm8 = vcmp.lt.s32.totalorder %v1238_v29, 2  ;;  %v3825_v42 = vpop.eup %3824  ;;  %v6456_v44 = vld [vmem:[#allocation11_spill] sm:$0xff] }
 0x206   : > { %v929_v22 = vxor.u32 2147483648, %v3821_v1  ;;  %v932_v51 = vxor.u32 2147483648, %v3819_v21  ;;  %v606_v37 = vsub.s32 4, %v6452_v4  ;;  %v1349_v9 = vsel %vm1347_vm10, %v1348_v20, %v3817_v50  ;;  %v3827_v16 = vpop.eup %3826 }
 0x207   : > { %v1246_v11 = vsel %vm1239_vm8, %v1242_v56, %v1245_v2  ;;  %vm1031_vm1 = vcmp.lt.s32.totalorder %v1030_v28, 2  ;;  %v713_v14 = vsel %vm5108_vm4, 0, %v711_v25  ;;  %v1660_v35 = vxor.u32 2147483648, %v3825_v42  ;;  %v3829_v15 = vpop.eup %3828 }
 0x208   : > { %v1346_v57 = vsel %vm1344_vm9, %v3815_v32, %v1345_v23  ;;  %vm1032_vm7 = vcmp.eq.s32.totalorder %v1030_v28, 0  ;;  %vm6454_vm5 = vcmp.lt.s32.totalorder %v6453_v13, 0  ;;  %v1657_v38 = vxor.u32 2147483648, %v3827_v16 }
 0x209   : > { %v607_v40 = vsel %vm6454_vm5, %v606_v37, %v6452_v4  ;;  %vm1035_vm15 = vcmp.eq.s32.totalorder %v1030_v28, 2  ;;  %vm928_vm12 = vcmp.eq.s32.totalorder %v926_v43, 0  ;;  %v3831_v27 = vpop.eup %3830  ;;  %v1661_v19 = vsel %vm1659_vm2, %v1660_v35, %v3827_v16 }
 0x20a   : > { %v609_v39 = vsel %vm4335_vm14, 0, %v607_v40  ;;  %v1036_v0 = vxor.u32 2147483648, %v3829_v15  ;;  %vm931_vm4 = vcmp.eq.s32.totalorder %v926_v43, 2  ;;  %v717_v34 = vadd.s32 3, %v713_v14 }
 0x20b   : > { %v1658_v26 = vsel %vm1656_vm6, %v3825_v42, %v1657_v38  ;;  %v1350_v8 = vsel %vm1343_vm3, %v1346_v57, %v1349_v9  ;;  %v1033_v31 = vxor.u32 2147483648, %v3831_v27  ;;  %v613_v29 = vadd.s32 3, %v609_v39 }
 0x20c   : > { %v1662_v18 = vsel %vm1655_vm0, %v1658_v26, %v1661_v19  ;;  %v1037_v54 = vsel %vm1035_vm15, %v1036_v0, %v3831_v27  ;;  %v930_v48 = vsel %vm928_vm12, %v3819_v21, %v929_v22  ;;  %v933_v32 = vsel %vm931_vm4, %v932_v51, %v3821_v1 }
 0x20d   : > { %v1663_v10 = vsel %vm1652_vm11, nan, %v1662_v18  ;;  %v1034_v12 = vsel %vm1032_vm7, %v3829_v15, %v1033_v31  ;;  %vm927_vm14 = vcmp.lt.s32.totalorder %v926_v43, 2  ;;  %v614_v36 = vand.u32 3, %v613_v29 }
 0x20e   : > { %1833 = vmatprep.subr.mxu1 %v1663_v10  ;;  %v1038_v61 = vsel %vm1031_vm1, %v1034_v12, %v1037_v54  ;;  %v718_v46 = vand.u32 3, %v717_v34  ;;  %v617_v50 = vxor.u32 2147483648, %v5124_v7  ;;  %v620_v52 = vxor.u32 2147483648, %v6456_v44 }
 0x20f   : > { %v3833_v45 = vpop.eup %3832  ;;  %1834 = vmatpush1.msra.mxu1 %v1559_v63  ;;  %v1351_v21 = vsel %vm1340_vm13, nan, %v1350_v8  ;;  %vm1236_vm12 = vweird.f32 %v4461_v49  ;;  %v934_v33 = vsel %vm927_vm14, %v930_v48, %v933_v32  ;;  %vm1028_vm6 = vweird.f32 %v4365_v59 }
 0x210   : > { %v724_v60 = vxor.u32 2147483648, %v3833_v45  ;;  %1835 = vmatprep.subr.mxu1 %v1351_v21  ;;  %v1247_v1 = vsel %vm1236_vm12, nan, %v1246_v11  ;;  %v1039_v20 = vsel %vm1028_vm6, nan, %v1038_v61  ;;  %vm924_vm2 = vweird.f32 %v4261_v47 }
 0x211   : > { %1836 = vmatpush1.msra.mxu1 %v1247_v1  ;;  %vm616_vm3 = vcmp.eq.s32.totalorder %v614_v36, 0  ;;  %vm619_vm9 = vcmp.eq.s32.totalorder %v614_v36, 2  ;;  %v935_v23 = vsel %vm924_vm2, nan, %v934_v33  ;;  %vm723_vm0 = vcmp.eq.s32.totalorder %v718_v46, 2 }
 0x212   : > { %v3835_v28 = vpop.eup %3834  ;;  %1837 = vmatprep.subr.mxu1 %v1039_v20  ;;  %v618_v58 = vsel %vm616_vm3, %v6456_v44, %v617_v50  ;;  %v621_v49 = vsel %vm619_vm9, %v620_v52, %v5124_v7  ;;  %vm720_vm11 = vcmp.eq.s32.totalorder %v718_v46, 0  ;;  %vm615_vm10 = vcmp.lt.s32.totalorder %v614_v36, 2 }
 0x213   : > { %1838 = vmatpush1.msra.mxu1 %v935_v23  ;;  %v721_v56 = vxor.u32 2147483648, %v3835_v28  ;;  %v725_v2 = vsel %vm723_vm0, %v724_v60, %v3835_v28  ;;  %vm719_vm13 = vcmp.lt.s32.totalorder %v718_v46, 2  ;;  %v622_v25 = vsel %vm615_vm10, %v618_v58, %v621_v49 }
 0x214   : > { %vm716_vm8 = vweird.f32 %v6445_v24  ;;  %vm612_vm1 = vweird.f32 %v6453_v13  ;;  %vm6457_vm7 = vcmask 261120   ;;  %v5181_v24 = vpop.permute.xlu0 %1793  ;;  %v6462_v36 = vmov 2475754826  }
 0x215   : > { %v722_v59 = vsel %vm720_vm11, %v3833_v45, %v721_v56  ;;  %v623_v43 = vsel %vm612_vm1, nan, %v622_v25  ;;  %vm6458_vm5 = vmmov %vm6457_vm7  ;;  %v6463_v61 = vmov 2131351028   ;;  %v6464_v50 = vmov 2102212464  }
 0x216   : > { %v726_v47 = vsel %vm719_vm13, %v722_v59, %v725_v2  ;;  %vm6459_vm15 = vmmov %vm6458_vm5 }
 0x217   : > { %v727_v63 = vsel %vm716_vm8, nan, %v726_v47  ;;  %vm6460_vm4 = vmmov %vm6458_vm5 }
 0x218   : > { %1839 = vmatprep.subr.mxu1 %v727_v63  ;;  %v5185_v7 = vpop.permute.xlu0 %1783 }
 0x219   : > { %1840 = vmatpush1.msra.mxu1 %v623_v43 }
 0x21a   : > { %3526 = vmatmul.mubr.msk.f32.vlgmr.msra.gmra.mxu1 %vm6457_vm7, %v4963_v3  ;;  %3628 = vmatprep.subr.mxu1 %v6447_v5  ;;  %v5183_v3 = vpop.permute.xlu1 %1788 }
 0x21b   : > { %1879 = vmatprep.mubr.f32.mxu1 %v6447_v5 }
 0x21e   : > { %3527 = vmatmul.mubr.msk.f32.gmra.mxu1 %vm6458_vm5, %v5033_v6  ;;  %v5190_v6 = vpop.permute.xlu1 %1778 }
 0x21f   : > { %1885 = vmatprep.mubr.f32.mxu1 %v6447_v5 }
 0x222   : > { %3528 = vmatmul.mubr.msk.f32.gmra.mxu1 %vm6459_vm15, %v5043_v17 }
 0x223   : > { %1891 = vmatprep.mubr.f32.mxu1 %v6447_v5 }
 0x226   : > { %3529 = vmatmul.mubr.msk.f32.gmra.mxu1 %vm6460_vm4, %v5067_v62 }
 0x2b5   : > { %v3624_v22 = vpop.f32.mrf.mxu0 }
 0x2b6   : > { %v5188_v51 = vadd.f32 %v3624_v22, %v5185_v7 }
 0x2b7   : > { %v1964_v4 = vpop.f32.mrf.mxu0 }
 0x2b8   : > { %v2503_v17 = vand.u32 2147483647, %v5188_v51  ;;  %v2506_v37 = vand.u32 2139095040, %v5188_v51  ;;  %v5195_v42 = vadd.f32 %v1964_v4, %v5190_v6 }
 0x2b9   : > { %v3627_v62 = vpop.f32.mrf.mxu0 }
 0x2ba   : > { %6461 = vst [vmem:[#allocation10_spill] sm:$0xff] %v5195_v42  ;;  %v2507_v9 = vshrl.u32 %v2506_v37, 23  ;;  %v2510_v11 = vand.u32 8388607, %v2503_v17  ;;  %v2191_v14 = vand.u32 2147483647, %v5195_v42  ;;  %v5202_v35 = vadd.f32 %v3627_v62, %v5181_v24 }
 0x2bb   : > { %v2194_v16 = vand.u32 2139095040, %v5195_v42  ;;  %v1974_v19 = vpop.f32.mrf.mxu0 }
 0x2bc   : > { %v3554_v57 = vadd.s32 4294967169, %v2507_v9  ;;  %v2198_v40 = vand.u32 8388607, %v2191_v14  ;;  %v3130_v38 = vand.u32 2139095040, %v5202_v35  ;;  %v2511_v55 = vor.u32 8388608, %v2510_v11 }
 0x2bd   : > { %v2195_v13 = vshrl.u32 %v2194_v16, 23  ;;  %v5208_v29 = vadd.f32 %v1974_v19, %v5183_v3  ;;  %v6356_v48 = vand.u32 2147483647, %v5202_v35 }
 0x2be   : > { %v2513_v15 = vadd.s32 1, %v3554_v57  ;;  %v2199_v27 = vor.u32 8388608, %v2198_v40  ;;  %v3131_v0 = vshrl.u32 %v3130_v38, 23  ;;  %v5210_v18 = vshll.u32 %v2511_v55, 8 }
 0x2bf   : > { %v3542_v39 = vadd.s32 4294967169, %v2195_v13 }
 0x2c0   : > { %vm2514_vm14 = vcmp.gt.s32.totalorder %v2513_v15, 0  ;;  %v5212_v54 = vshll.u32 %v2199_v27, 8  ;;  %v5215_v32 = vadd.s32 4294967169, %v3131_v0 }
 0x2c1   : > { %v2515_v34 = vsel %vm2514_vm14, %v2513_v15, 0  ;;  %v2201_v26 = vadd.s32 1, %v3542_v39 }
 0x2c2   : > { %v2516_v8 = vshrl.u32 %v2515_v34, 5  ;;  %v2517_v31 = vand.u32 31, %v2515_v34 }
 0x2c3   : > { %vm2202_vm12 = vcmp.gt.s32.totalorder %v2201_v26, 0 }
 0x2c4   : > { %v2518_v10 = vsub.s32 32, %v2517_v31  ;;  %v2520_v12 = vshll.u32 %v6411_v30, %v2517_v31  ;;  %v2523_v45 = vshll.u32 %v6462_v36, %v2517_v31  ;;  %v2526_v46 = vshll.u32 %v6463_v61, %v2517_v31 }
 0x2c5   : > { %v2529_v44 = vshll.u32 %v6464_v50, %v2517_v31  ;;  %v2532_v52 = vshll.u32 %v6409_v41, %v2517_v31  ;;  %vm2535_vm6 = vcmp.lt.s32.totalorder %v2516_v8, 1  ;;  %vm2536_vm2 = vcmp.lt.s32.totalorder %v2516_v8, 2 }
 0x2c6   : > { %v2521_v21 = vshrl.u32 %v6462_v36, %v2518_v10  ;;  %v2524_v33 = vshrl.u32 %v6463_v61, %v2518_v10  ;;  %v2527_v60 = vshrl.u32 %v6464_v50, %v2518_v10  ;;  %v2519_v1 = vshrl.u32 %v6411_v30, %v2518_v10 }
 0x2c7   : > { %v2530_v20 = vshrl.u32 %v6409_v41, %v2518_v10  ;;  %v2533_v28 = vshrl.u32 %v6410_v53, %v2518_v10  ;;  %vm2537_vm3 = vcmp.lt.s32.totalorder %v2516_v8, 3  ;;  %v2203_v56 = vsel %vm2202_vm12, %v2201_v26, 0 }
 0x2c8   : > { %v2522_v23 = vor.u32 %v2521_v21, %v2520_v12  ;;  %v2525_v58 = vor.u32 %v2524_v33, %v2523_v45  ;;  %v2528_v49 = vor.u32 %v2527_v60, %v2526_v46  ;;  %vm2538_vm9 = vcmp.lt.s32.totalorder %v2516_v8, 4 }
 0x2c9   : > { %v2531_v2 = vor.u32 %v2530_v20, %v2529_v44  ;;  %v2534_v59 = vor.u32 %v2533_v28, %v2532_v52  ;;  %v2205_v25 = vand.u32 31, %v2203_v56  ;;  %v2204_v13 = vshrl.u32 %v2203_v56, 5 }
 0x2ca   : > { %v2539_v47 = vsel %vm2535_vm6, %v2519_v1, %v2522_v23  ;;  %v2540_v63 = vsel %vm2538_vm9, %v2528_v49, 2102212464  ;;  %v2543_v43 = vsel %vm2535_vm6, %v2522_v23, %v2525_v58  ;;  %v2547_v22 = vsel %vm2535_vm6, %v2525_v58, %v2528_v49 }
 0x2cb   : > { %v2541_v4 = vsel %vm2537_vm3, %v2525_v58, %v2540_v63  ;;  %v2544_v37 = vsel %vm2538_vm9, %v2531_v2, 920167782  ;;  %v2548_v62 = vsel %vm2538_vm9, %v2534_v59, 1326507024  ;;  %v2206_v9 = vsub.s32 32, %v2205_v25 }
 0x2cc   : > { %v2542_v11 = vsel %vm2536_vm2, %v2539_v47, %v2541_v4  ;;  %v2545_v16 = vsel %vm2537_vm3, %v2528_v49, %v2544_v37  ;;  %v2549_v57 = vsel %vm2537_vm3, %v2531_v2, %v2548_v62  ;;  %v2208_v55 = vshll.u32 %v6411_v30, %v2205_v25 }
 0x2cd   : > { %v2546_v40 = vsel %vm2536_vm2, %v2543_v43, %v2545_v16  ;;  %v2550_v15 = vsel %vm2536_vm2, %v2547_v22, %v2549_v57  ;;  %v2558_v38 = vmul.u32 %v5210_v18, %v2542_v11  ;;  %v2207_v34 = vshrl.u32 %v6411_v30, %v2206_v9 }
 0x2ce   : > { %v5241_v39 = vmul.u32.u64.low %v5210_v18, %v2550_v15  ;;  %v5242_v27 = vmul.u32.u64.high %v5210_v18, %v2550_v15, %v5241_v39  ;;  %v5245_v19 = vmul.u32.u64.low %v5210_v18, %v2546_v40  ;;  %v5246_v0 = vmul.u32.u64.high %v5210_v18, %v2546_v40, %v5245_v19 }
 0x2cf   : > { %v2209_v26 = vshrl.u32 %v6462_v36, %v2206_v9  ;;  %v2211_v8 = vshll.u32 %v6462_v36, %v2205_v25  ;;  %v2212_v31 = vshrl.u32 %v6463_v61, %v2206_v9  ;;  %v2214_v10 = vshll.u32 %v6463_v61, %v2205_v25 }
 0x2d0   : > { %v2215_v12 = vshrl.u32 %v6464_v50, %v2206_v9  ;;  %v2217_v45 = vshll.u32 %v6464_v50, %v2205_v25  ;;  %v2218_v46 = vshrl.u32 %v6409_v41, %v2206_v9  ;;  %v2220_v52 = vshll.u32 %v6409_v41, %v2205_v25 }
 0x2d1   : > { %v2210_v44 = vor.u32 %v2209_v26, %v2208_v55  ;;  %v2213_v18 = vor.u32 %v2212_v31, %v2211_v8  ;;  %v2221_v21 = vshrl.u32 %v6410_v53, %v2206_v9  ;;  %vm2560_vm0 = vc.u32 %v5242_v27, %v5245_v19 }
 0x2d2   : > { %v2561_v33 = vadd.s32 1, %v5246_v0  ;;  %v2216_v60 = vor.u32 %v2215_v12, %v2214_v10  ;;  %vm2223_vm11 = vcmp.lt.s32.totalorder %v2204_v13, 1  ;;  %v2219_v1 = vor.u32 %v2218_v46, %v2217_v45 }
 0x2d3   : > { %v2222_v20 = vor.u32 %v2221_v21, %v2220_v52  ;;  %vm2224_vm10 = vcmp.lt.s32.totalorder %v2204_v13, 2  ;;  %vm2225_vm13 = vcmp.lt.s32.totalorder %v2204_v13, 3  ;;  %vm2226_vm8 = vcmp.lt.s32.totalorder %v2204_v13, 4 }
 0x2d4   : > { %v2562_v28 = vsel %vm2560_vm0, %v2561_v33, %v5246_v0  ;;  %v2227_v23 = vsel %vm2223_vm11, %v2207_v34, %v2210_v44  ;;  %v2231_v58 = vsel %vm2223_vm11, %v2210_v44, %v2213_v18  ;;  %v2228_v56 = vsel %vm2226_vm8, %v2216_v60, 2102212464 }
 0x2d5   : > { %v2563_v49 = vadd.s32 %v2562_v28, %v2558_v38  ;;  %v2232_v2 = vsel %vm2226_vm8, %v2219_v1, 920167782  ;;  %v2235_v59 = vsel %vm2223_vm11, %v2213_v18, %v2216_v60  ;;  %v2229_v25 = vsel %vm2225_vm13, %v2213_v18, %v2228_v56 }
 0x2d6   : > { %v2233_v47 = vsel %vm2225_vm13, %v2216_v60, %v2232_v2  ;;  %v2236_v63 = vsel %vm2226_vm8, %v2222_v20, 1326507024  ;;  %v3137_v43 = vadd.s32 1, %v5215_v32  ;;  %v2818_v62 = vand.u32 2139095040, %v5208_v29 }
 0x2d7   : > { %v2564_v22 = vadd.s32 536870912, %v2563_v49  ;;  %v2234_v4 = vsel %vm2224_vm10, %v2231_v58, %v2233_v47  ;;  %v2237_v37 = vsel %vm2225_vm13, %v2219_v1, %v2236_v63  ;;  %v2230_v9 = vsel %vm2224_vm10, %v2227_v23, %v2229_v25 }
 0x2d8   : > { %v2238_v11 = vsel %vm2224_vm10, %v2235_v59, %v2237_v37  ;;  %v5269_v16 = vmul.u32.u64.low %v5212_v54, %v2234_v4  ;;  %v5270_v57 = vmul.u32.u64.high %v5212_v54, %v2234_v4, %v5269_v16  ;;  %vm3138_vm1 = vcmp.gt.s32.totalorder %v3137_v43, 0 }
 0x2d9   : > { %v5273_v40 = vshrl.u32 %v2564_v22, 30  ;;  %v5276_v15 = vmul.u32.u64.low %v5212_v54, %v2238_v11  ;;  %v5277_v32 = vmul.u32.u64.high %v5212_v54, %v2238_v11, %v5276_v15  ;;  %v3139_v38 = vsel %vm3138_vm1, %v3137_v43, 0 }
 0x2da   : > { %v3141_v39 = vand.u32 31, %v3139_v38  ;;  %v2246_v0 = vmul.u32 %v5212_v54, %v2230_v9  ;;  %v2249_v13 = vadd.s32 1, %v5270_v57  ;;  %v3134_v34 = vand.u32 8388607, %v6356_v48 }
 0x2db   : > { %v2566_v55 = vshll.u32 %v5273_v40, 30  ;;  %vm2248_vm7 = vc.u32 %v5277_v32, %v5269_v16  ;;  %v2819_v31 = vshrl.u32 %v2818_v62, 23  ;;  %v3140_v12 = vshrl.u32 %v3139_v38, 5 }
 0x2dc   : > { %v3142_v8 = vsub.s32 32, %v3141_v39  ;;  %v2250_v10 = vsel %vm2248_vm7, %v2249_v13, %v5270_v57  ;;  %v3144_v45 = vshll.u32 %v6411_v30, %v3141_v39  ;;  %v3147_v46 = vshll.u32 %v6462_v36, %v3141_v39 }
 0x2dd   : > { %v5284_v26 = vsub.s32 %v2563_v49, %v2566_v55  ;;  %v2251_v44 = vadd.s32 %v2250_v10, %v2246_v0  ;;  %v3150_v52 = vshll.u32 %v6463_v61, %v3141_v39  ;;  %v3153_v60 = vshll.u32 %v6464_v50, %v3141_v39 }
 0x2de   : > { %v3145_v18 = vshrl.u32 %v6462_v36, %v3142_v8  ;;  %v3148_v21 = vshrl.u32 %v6463_v61, %v3142_v8  ;;  %v3151_v33 = vshrl.u32 %v6464_v50, %v3142_v8  ;;  %v3154_v1 = vshrl.u32 %v6409_v41, %v3142_v8 }
 0x2df   : > { %v2569_v54 = vsub.s32 0, %v5284_v26  ;;  %v2252_v28 = vadd.s32 536870912, %v2251_v44  ;;  %v3156_v58 = vshll.u32 %v6409_v41, %v3141_v39  ;;  %v3157_v59 = vshrl.u32 %v6410_v53, %v3142_v8 }
 0x2e0   : > { %v3146_v23 = vor.u32 %v3145_v18, %v3144_v45  ;;  %v3149_v49 = vor.u32 %v3148_v21, %v3147_v46  ;;  %v3152_v56 = vor.u32 %v3151_v33, %v3150_v52  ;;  %v3155_v2 = vor.u32 %v3154_v1, %v3153_v60 }
 0x2e1   : > { %v3555_v20 = vmin.u32 %v2569_v54, %v5284_v26  ;;  %v5301_v47 = vshrl.u32 %v2252_v28, 30  ;;  %v3135_v63 = vor.u32 8388608, %v3134_v34  ;;  %v3158_v43 = vor.u32 %v3157_v59, %v3156_v58 }
 0x2e2   : > { %vm3159_vm5 = vcmp.lt.s32.totalorder %v3140_v12, 1  ;;  %vm3160_vm15 = vcmp.lt.s32.totalorder %v3140_v12, 2  ;;  %v3566_v22 = vadd.s32 4294967169, %v2819_v31  ;;  %vm3161_vm4 = vcmp.lt.s32.totalorder %v3140_v12, 3 }
 0x2e3   : > { %v2571_v25 = vclz %v3555_v20  ;;  %6465 = vst [vmem:[#allocation6_spill] sm:$0xff] %v5301_v47  ;;  %v2254_v4 = vshll.u32 %v5301_v47, 30  ;;  %vm3162_vm14 = vcmp.lt.s32.totalorder %v3140_v12, 4  ;;  %v3167_v37 = vsel %vm3159_vm5, %v3146_v23, %v3149_v49 }
 0x2e4   : > { %v3143_v62 = vshrl.u32 %v6411_v30, %v3142_v8  ;;  %v3164_v9 = vsel %vm3162_vm14, %v3152_v56, 2102212464  ;;  %v3168_v11 = vsel %vm3162_vm14, %v3155_v2, 920167782  ;;  %v3172_v57 = vsel %vm3162_vm14, %v3158_v43, 1326507024 }
 0x2e5   : > { %v3556_v15 = vadd.s32 4294967294, %v2571_v25  ;;  %v5306_v38 = vsub.s32 %v2251_v44, %v2254_v4  ;;  %v3169_v55 = vsel %vm3161_vm4, %v3152_v56, %v3168_v11  ;;  %v3171_v39 = vsel %vm3159_vm5, %v3149_v49, %v3152_v56 }
 0x2e6   : > { %v3170_v0 = vsel %vm3160_vm15, %v3167_v37, %v3169_v55  ;;  %v3173_v13 = vsel %vm3161_vm4, %v3155_v2, %v3172_v57  ;;  %v3175_v34 = vshll.u32 %v3135_v63, 8  ;;  %v3163_v10 = vsel %vm3159_vm5, %v3143_v62, %v3146_v23  ;;  %v1875_v62 = vpop.f32.mrf.mxu1 }
 0x2e7   : > { %v2257_v31 = vsub.s32 0, %v5306_v38  ;;  %v3165_v8 = vsel %vm3161_vm4, %v3149_v49, %v3164_v9  ;;  %v3174_v45 = vsel %vm3160_vm15, %v3171_v39, %v3173_v13  ;;  %v2825_v44 = vadd.s32 1, %v3566_v22 }
 0x2e8   : > { %v5316_v46 = vmul.u32.u64.low %v3175_v34, %v3170_v0  ;;  %v5317_v54 = vmul.u32.u64.high %v3175_v34, %v3170_v0, %v5316_v46  ;;  %vm3557_vm12 = vcmp.lt.s32.totalorder %v3556_v15, 0  ;;  %v3166_v33 = vsel %vm3160_vm15, %v3163_v10, %v3165_v8 }
 0x2e9   : > { %v3543_v18 = vmin.u32 %v2257_v31, %v5306_v38  ;;  %v5321_v52 = vmul.u32.u64.low %v3175_v34, %v3174_v45  ;;  %v5322_v21 = vmul.u32.u64.high %v3175_v34, %v3174_v45, %v5321_v52  ;;  %vm2826_vm6 = vcmp.gt.s32.totalorder %v2825_v44, 0 }
 0x2ea   : > { %v6355_v60 = vand.u32 2147483647, %v5208_v29  ;;  %v2827_v1 = vsel %vm2826_vm6, %v2825_v44, 0  ;;  %v5326_v20 = vsel %vm3557_vm12, 0, %v3556_v15  ;;  %v3185_v28 = vadd.s32 1, %v5317_v54 }
 0x2eb   : > { %v2829_v23 = vand.u32 31, %v2827_v1  ;;  %v2259_v58 = vclz %v3543_v18  ;;  %v3182_v49 = vmul.u32 %v3175_v34, %v3166_v33  ;;  %vm3184_vm2 = vc.u32 %v5322_v21, %v5316_v46 }
 0x2ec   : > { %v2579_v2 = vsub.s32 4294967266, %v5326_v20  ;;  %v3186_v59 = vsel %vm3184_vm2, %v3185_v28, %v5317_v54  ;;  %v2822_v12 = vand.u32 8388607, %v6355_v60  ;;  %v2559_v43 = vadd.s32 %v5245_v19, %v5242_v27 }
 0x2ed   : > { %v2830_v56 = vsub.s32 32, %v2829_v23  ;;  %v3187_v25 = vadd.s32 %v3186_v59, %v3182_v49  ;;  %v3544_v63 = vadd.s32 4294967294, %v2259_v58  ;;  %v2832_v57 = vshll.u32 %v6411_v30, %v2829_v23 }
 0x2ee   : > { %v2580_v9 = vadd.s32 127, %v2579_v2  ;;  %v2823_v11 = vor.u32 8388608, %v2822_v12  ;;  %v2835_v39 = vshll.u32 %v6462_v36, %v2829_v23  ;;  %v2838_v0 = vshll.u32 %v6463_v61, %v2829_v23 }
 0x2ef   : > { %v3188_v22 = vadd.s32 536870912, %v3187_v25  ;;  %v2833_v4 = vshrl.u32 %v6462_v36, %v2830_v56  ;;  %v2836_v37 = vshrl.u32 %v6463_v61, %v2830_v56  ;;  %v2839_v15 = vshrl.u32 %v6464_v50, %v2830_v56 }
 0x2f0   : > { %v2842_v27 = vshrl.u32 %v6409_v41, %v2830_v56  ;;  %vm3545_vm3 = vcmp.lt.s32.totalorder %v3544_v63, 0  ;;  %v2828_v19 = vshrl.u32 %v2827_v1, 5  ;;  %v2841_v13 = vshll.u32 %v6464_v50, %v2829_v23 }
 0x2f1   : > { %v5341_v55 = vshrl.u32 %v3188_v22, 30  ;;  %v5348_v34 = vadd.f32 %v1875_v62, %v5190_v6  ;;  %v2834_v10 = vor.u32 %v2833_v4, %v2832_v57  ;;  %v2837_v8 = vor.u32 %v2836_v37, %v2835_v39 }
 0x2f2   : > { %v2840_v45 = vor.u32 %v2839_v15, %v2838_v0  ;;  %v2843_v54 = vor.u32 %v2842_v27, %v2841_v13  ;;  %v2844_v44 = vshll.u32 %v6409_v41, %v2829_v23  ;;  %v2845_v18 = vshrl.u32 %v6410_v53, %v2830_v56 }
 0x2f3   : > { %6466 = vst [vmem:[#allocation8_spill] sm:$0xff] %v5348_v34  ;;  %v3190_v31 = vshll.u32 %v5341_v55, 30  ;;  %v2863_v52 = vshll.u32 %v2823_v11, 8  ;;  %v2575_v33 = vsub.s32 32, %v5326_v20  ;;  %v2581_v28 = vshll.u32 %v2580_v9, 23 }
 0x2f4   : > { %v5354_v1 = vsel %vm3545_vm3, 0, %v3544_v63  ;;  %v2846_v49 = vor.u32 %v2845_v18, %v2844_v44  ;;  %vm2847_vm9 = vcmp.lt.s32.totalorder %v2828_v19, 1  ;;  %vm2850_vm0 = vcmp.lt.s32.totalorder %v2828_v19, 4 }
 0x2f5   : > { %v5356_v58 = vsub.s32 %v3187_v25, %v3190_v31  ;;  %v1986_v2 = vand.u32 2139095040, %v5348_v34  ;;  %v2831_v12 = vshrl.u32 %v6411_v30, %v2830_v56  ;;  %v2852_v23 = vsel %vm2850_vm0, %v2840_v45, 2102212464 }
 0x2f6   : > { %v2855_v22 = vsel %vm2847_vm9, %v2834_v10, %v2837_v8  ;;  %v2267_v4 = vsub.s32 4294967266, %v5354_v1  ;;  %vm2849_vm11 = vcmp.lt.s32.totalorder %v2828_v19, 3  ;;  %v2856_v37 = vsel %vm2850_vm0, %v2843_v54, 920167782 }
 0x2f7   : > { %v3193_v59 = vsub.s32 0, %v5356_v58  ;;  %v2859_v62 = vsel %vm2847_vm9, %v2837_v8, %v2840_v45  ;;  %vm2848_vm10 = vcmp.lt.s32.totalorder %v2828_v19, 2  ;;  %v2851_v63 = vsel %vm2847_vm9, %v2831_v12, %v2834_v10  ;;  %v1877_v10 = vpop.f32.mrf.mxu1 }
 0x2f8   : > { %v2857_v25 = vsel %vm2849_vm11, %v2840_v45, %v2856_v37  ;;  %v2860_v9 = vsel %vm2850_vm0, %v2846_v49, 1326507024  ;;  %v2853_v57 = vsel %vm2849_vm11, %v2837_v8, %v2852_v23  ;;  %v2577_v0 = vshrl.u32 %v2559_v43, %v2575_v33 }
 0x2f9   : > { %v3579_v11 = vmin.u32 %v3193_v59, %v5356_v58  ;;  %v2858_v15 = vsel %vm2848_vm10, %v2855_v22, %v2857_v25  ;;  %v2861_v39 = vsel %vm2849_vm11, %v2843_v54, %v2860_v9  ;;  %v1987_v18 = vshrl.u32 %v1986_v2, 23 }
 0x2fa   : > { %v2862_v56 = vsel %vm2848_vm10, %v2859_v62, %v2861_v39  ;;  %v5365_v27 = vmul.u32.u64.low %v2863_v52, %v2858_v15  ;;  %v5366_v13 = vmul.u32.u64.high %v2863_v52, %v2858_v15, %v5365_v27  ;;  %v2576_v45 = vshll.u32 %v5284_v26, %v5326_v20 }
 0x2fb   : > { %v5369_v31 = vmul.u32.u64.low %v2863_v52, %v2862_v56  ;;  %v5370_v44 = vmul.u32.u64.high %v2863_v52, %v2862_v56, %v5369_v31  ;;  %v2582_v49 = vor.u32 4788187, %v2581_v28  ;;  %v2268_v8 = vadd.s32 127, %v2267_v4 }
 0x2fc   : > { %v2854_v59 = vsel %vm2848_vm10, %v2851_v63, %v2853_v57  ;;  %v3195_v54 = vclz %v3579_v11  ;;  %v6353_v43 = vand.u32 2147483647, %v5348_v34  ;;  %v3534_v33 = vadd.s32 4294967169, %v1987_v18 }
 0x2fd   : > { %v2578_v12 = vor.u32 %v2577_v0, %v2576_v45  ;;  %v2873_v23 = vadd.s32 1, %v5366_v13  ;;  %v5378_v22 = vadd.f32 %v1877_v10, %v5190_v6  ;;  %v2870_v37 = vmul.u32 %v2863_v52, %v2854_v59 }
 0x2fe   : > { %vm2872_vm13 = vc.u32 %v5370_v44, %v5365_v27  ;;  %v1993_v2 = vadd.s32 1, %v3534_v33  ;;  %v2583_v26 = vand.u32 2147483647, %v2582_v49  ;;  %v2263_v20 = vsub.s32 32, %v5354_v1 }
 0x2ff   : > { %6467 = vst [vmem:[#allocation7_spill] sm:$0xff] %v5378_v22  ;;  %v2269_v19 = vshll.u32 %v2268_v8, 23  ;;  %v2874_v28 = vsel %vm2872_vm13, %v2873_v23, %v5366_v13  ;;  %v3580_v4 = vadd.s32 4294967294, %v3195_v54  ;;  %v1990_v63 = vand.u32 8388607, %v6353_v43 }
 0x300   : > { %v2875_v62 = vadd.s32 %v2874_v28, %v2870_v37  ;;  %vm1994_vm8 = vcmp.gt.s32.totalorder %v1993_v2, 0  ;;  %v2585_v25 = vcvt.s32.f32 %v2578_v12  ;;  %v2247_v6 = vadd.s32 %v5269_v16, %v5277_v32 }
 0x301   : > { %v1995_v52 = vsel %vm1994_vm8, %v1993_v2, 0  ;;  %v2090_v9 = vand.u32 2139095040, %v5378_v22  ;;  %v2264_v39 = vshll.u32 %v5306_v38, %v5354_v1  ;;  %v5393_v56 = vor.u32 4788187, %v2269_v19 }
 0x302   : > { %v2876_v11 = vadd.s32 536870912, %v2875_v62  ;;  %v1997_v57 = vand.u32 31, %v1995_v52  ;;  %v5389_v15 = vmul.f32 %v2585_v25, %v2583_v26  ;;  %v2265_v0 = vshrl.u32 %v2247_v6, %v2263_v20 }
 0x303   : > { %vm3581_vm1 = vcmp.lt.s32.totalorder %v3580_v4, 0  ;;  %v1991_v31 = vor.u32 8388608, %v1990_v63  ;;  %v1996_v10 = vshrl.u32 %v1995_v52, 5  ;;  %v2091_v45 = vshrl.u32 %v2090_v9, 23 }
 0x304   : > { %v5395_v13 = vshrl.u32 %v2876_v11, 30  ;;  %v1998_v18 = vsub.s32 32, %v1997_v57  ;;  %v2000_v16 = vshll.u32 %v6411_v30, %v1997_v57  ;;  %v2003_v32 = vshll.u32 %v6462_v36, %v1997_v57 }
 0x305   : > { %v2006_v1 = vshll.u32 %v6463_v61, %v1997_v57  ;;  %v2009_v54 = vshll.u32 %v6464_v50, %v1997_v57  ;;  %v2012_v12 = vshll.u32 %v6409_v41, %v1997_v57  ;;  %v5411_v20 = vsel %vm3581_vm1, 0, %v3580_v4 }
 0x306   : > { %v2878_v49 = vshll.u32 %v5395_v13, 30  ;;  %v2001_v8 = vshrl.u32 %v6462_v36, %v1998_v18  ;;  %v2004_v38 = vshrl.u32 %v6463_v61, %v1998_v18  ;;  %v2007_v59 = vshrl.u32 %v6464_v50, %v1998_v18 }
 0x307   : > { %v2010_v33 = vshrl.u32 %v6409_v41, %v1998_v18  ;;  %v2013_v26 = vshrl.u32 %v6410_v53, %v1998_v18  ;;  %v6352_v63 = vand.u32 2147483647, %v5378_v22  ;;  %vm2015_vm7 = vcmp.lt.s32.totalorder %v1996_v10, 1 }
 0x308   : > { %v5407_v23 = vsub.s32 %v2875_v62, %v2878_v49  ;;  %v2002_v37 = vor.u32 %v2001_v8, %v2000_v16  ;;  %v2005_v2 = vor.u32 %v2004_v38, %v2003_v32  ;;  %v2008_v19 = vor.u32 %v2007_v59, %v2006_v1 }
 0x309   : > { %v2011_v28 = vor.u32 %v2010_v33, %v2009_v54  ;;  %v2014_v6 = vor.u32 %v2013_v26, %v2012_v12  ;;  %v2031_v52 = vshll.u32 %v1991_v31, 8  ;;  %v1999_v9 = vshrl.u32 %v6411_v30, %v1998_v18 }
 0x30a   : > { %v2881_v25 = vsub.s32 0, %v5407_v23  ;;  %vm2018_vm5 = vcmp.lt.s32.totalorder %v1996_v10, 4  ;;  %v2023_v62 = vsel %vm2015_vm7, %v2002_v37, %v2005_v2  ;;  %v3538_v11 = vadd.s32 4294967169, %v2091_v45 }
 0x30b   : > { %vm2017_vm15 = vcmp.lt.s32.totalorder %v1996_v10, 3  ;;  %v2020_v4 = vsel %vm2018_vm5, %v2008_v19, 2102212464  ;;  %v2024_v16 = vsel %vm2018_vm5, %v2011_v28, 920167782  ;;  %vm2016_vm4 = vcmp.lt.s32.totalorder %v1996_v10, 2 }
 0x30c   : > { %v3567_v57 = vmin.u32 %v2881_v25, %v5407_v23  ;;  %v2025_v32 = vsel %vm2017_vm15, %v2008_v19, %v2024_v16  ;;  %v2027_v49 = vsel %vm2015_vm7, %v2005_v2, %v2008_v19  ;;  %v2028_v8 = vsel %vm2018_vm5, %v2014_v6, 1326507024 }
 0x30d   : > { %v3203_v38 = vsub.s32 4294967266, %v5411_v20  ;;  %v2019_v31 = vsel %vm2015_vm7, %v1999_v9, %v2002_v37  ;;  %v2026_v18 = vsel %vm2016_vm4, %v2023_v62, %v2025_v32  ;;  %v2021_v59 = vsel %vm2017_vm15, %v2005_v2, %v2020_v4 }
 0x30e   : > { %v2883_v1 = vclz %v3567_v57  ;;  %v2029_v54 = vsel %vm2017_vm15, %v2011_v28, %v2028_v8  ;;  %v5422_v45 = vmul.u32.u64.low %v2031_v52, %v2026_v18  ;;  %v5423_v33 = vmul.u32.u64.high %v2031_v52, %v2026_v18, %v5422_v45 }
 0x30f   : > { %v2587_v12 = vxor.u32 2147483648, %v5389_v15  ;;  %v2266_v26 = vor.u32 %v2265_v0, %v2264_v39  ;;  %v2030_v25 = vsel %vm2016_vm4, %v2027_v49, %v2029_v54  ;;  %v2094_v19 = vand.u32 8388607, %v6352_v63 }
 0x310   : > { %v3568_v6 = vadd.s32 4294967294, %v2883_v1  ;;  %v5430_v57 = vmul.u32.u64.low %v2031_v52, %v2030_v25  ;;  %v5431_v16 = vmul.u32.u64.high %v2031_v52, %v2030_v25, %v5430_v57  ;;  %v2097_v37 = vadd.s32 1, %v3538_v11 }
 0x311   : > { %vm2505_vm14 = vcmp.lt.s32.totalorder %v5188_v51, 0  ;;  %v2271_v2 = vand.u32 2147483647, %v5393_v56  ;;  %v2022_v28 = vsel %vm2016_vm4, %v2019_v31, %v2021_v59  ;;  %v5438_v9 = vadd.s32 %v5316_v46, %v5322_v21  ;;  %v1881_v56 = vpop.f32.mrf.mxu1 }
 0x312   : > { %v5440_v39 = vadd.s32 127, %v3203_v38  ;;  %v2041_v0 = vadd.s32 1, %v5423_v33  ;;  %vm2098_vm12 = vcmp.gt.s32.totalorder %v2097_v37, 0  ;;  %v5446_v62 = vsel %vm2505_vm14, %v2587_v12, %v5389_v15 }
 0x313   : > { %v2273_v11 = vcvt.s32.f32 %v2266_v26  ;;  %v2095_v4 = vor.u32 8388608, %v2094_v19  ;;  %v2099_v32 = vsel %vm2098_vm12, %v2097_v37, 0  ;;  %vm3569_vm6 = vcmp.lt.s32.totalorder %v3568_v6, 0 }
 0x314   : > { %v2038_v10 = vmul.u32 %v2031_v52, %v2022_v28  ;;  %vm2040_vm2 = vc.u32 %v5431_v16, %v5422_v45  ;;  %v2101_v46 = vand.u32 31, %v2099_v32  ;;  %v3199_v49 = vsub.s32 32, %v5411_v20 }
 0x315   : > { %v5450_v21 = vmul.f32 %v2273_v11, %v2271_v2  ;;  %v2871_v8 = vadd.s32 %v5365_v27, %v5370_v44  ;;  %v2042_v15 = vsel %vm2040_vm2, %v2041_v0, %v5423_v33  ;;  %v3205_v38 = vshll.u32 %v5440_v39, 23 }
 0x316   : > { %v2043_v1 = vadd.s32 %v2042_v15, %v2038_v10  ;;  %v2102_v31 = vsub.s32 32, %v2101_v46  ;;  %v5458_v18 = vadd.f32 %v1881_v56, %v5185_v7  ;;  %v5460_v52 = vsel %vm3569_vm6, 0, %v3568_v6 }
 0x317   : > { %v2100_v59 = vshrl.u32 %v2099_v32, 5  ;;  %v2104_v54 = vshll.u32 %v6411_v30, %v2101_v46  ;;  %v5463_v12 = vshll.u32 %v2095_v4, 8  ;;  %v2107_v27 = vshll.u32 %v6462_v36, %v2101_v46 }
 0x318   : > { %6468 = vst [vmem:[#allocation5_spill] sm:$0xff] %v5458_v18  ;;  %v2044_v26 = vadd.s32 536870912, %v2043_v1  ;;  %v2105_v25 = vshrl.u32 %v6462_v36, %v2102_v31  ;;  %v2108_v44 = vshrl.u32 %v6463_v61, %v2102_v31  ;;  %v2110_v33 = vshll.u32 %v6463_v61, %v2101_v46 }
 0x319   : > { %v2111_v19 = vshrl.u32 %v6464_v50, %v2102_v31  ;;  %v2113_v57 = vshll.u32 %v6464_v50, %v2101_v46  ;;  %v2114_v6 = vshrl.u32 %v6409_v41, %v2102_v31  ;;  %v2891_v37 = vsub.s32 4294967266, %v5460_v52 }
 0x31a   : > { %v5473_v2 = vshrl.u32 %v2044_v26, 30  ;;  %v2106_v28 = vor.u32 %v2105_v25, %v2104_v54  ;;  %v2109_v39 = vor.u32 %v2108_v44, %v2107_v27  ;;  %v2116_v4 = vshll.u32 %v6409_v41, %v2101_v46 }
 0x31b   : > { %v2112_v0 = vor.u32 %v2111_v19, %v2110_v33  ;;  %v2115_v11 = vor.u32 %v2114_v6, %v2113_v57  ;;  %v2117_v32 = vshrl.u32 %v6410_v53, %v2102_v31  ;;  %v2887_v56 = vsub.s32 32, %v5460_v52 }
 0x31c   : > { %6469 = vst [vmem:[#allocation9_spill] sm:$0xff] %v5473_v2  ;;  %v2046_v10 = vshll.u32 %v5473_v2, 30  ;;  %v2103_v15 = vshrl.u32 %v6411_v30, %v2102_v31  ;;  %v2298_v63 = vand.u32 2139095040, %v5458_v18  ;;  %vm5483_vm3 = vcmp.le.f32.partialorder %v2503_v17, 0.7853982 }
 0x31d   : > { %v2118_v54 = vor.u32 %v2117_v32, %v2116_v4  ;;  %vm2119_vm9 = vcmp.lt.s32.totalorder %v2100_v59, 1  ;;  %vm2121_vm0 = vcmp.lt.s32.totalorder %v2100_v59, 3  ;;  %vm2122_vm11 = vcmp.lt.s32.totalorder %v2100_v59, 4 }
 0x31e   : > { %v5487_v46 = vsub.s32 %v2043_v1, %v2046_v10  ;;  %v2124_v25 = vsel %vm2122_vm11, %v2112_v0, 2102212464  ;;  %v2127_v27 = vsel %vm2119_vm9, %v2106_v28, %v2109_v39  ;;  %v2128_v44 = vsel %vm2122_vm11, %v2115_v11, 920167782 }
 0x31f   : > { %v2892_v33 = vadd.s32 127, %v2891_v37  ;;  %vm2120_vm10 = vcmp.lt.s32.totalorder %v2100_v59, 2  ;;  %v2129_v31 = vsel %vm2121_vm0, %v2112_v0, %v2128_v44  ;;  %v2131_v19 = vsel %vm2119_vm9, %v2109_v39, %v2112_v0 }
 0x320   : > { %vm2193_vm13 = vcmp.lt.s32.totalorder %v5195_v42, 0  ;;  %v2049_v17 = vsub.s32 0, %v5487_v46  ;;  %v2123_v57 = vsel %vm2119_vm9, %v2103_v15, %v2106_v28  ;;  %v2130_v6 = vsel %vm2120_vm10, %v2127_v27, %v2129_v31  ;;  %v1883_v15 = vpop.f32.mrf.mxu1 }
 0x321   : > { %v2132_v4 = vsel %vm2122_vm11, %v2118_v54, 1326507024  ;;  %v2125_v32 = vsel %vm2121_vm0, %v2109_v39, %v2124_v25  ;;  %v5496_v10 = vmul.u32.u64.low %v5463_v12, %v2130_v6  ;;  %v5497_v43 = vmul.u32.u64.high %v5463_v12, %v2130_v6, %v5496_v10 }
 0x322   : > { %v2133_v1 = vsel %vm2121_vm0, %v2115_v11, %v2132_v4  ;;  %v3200_v37 = vshll.u32 %v5356_v58, %v5411_v20  ;;  %v3201_v0 = vshrl.u32 %v5438_v9, %v3199_v49  ;;  %v3535_v44 = vmin.u32 %v2049_v17, %v5487_v46 }
 0x323   : > { %v2134_v28 = vsel %vm2120_vm10, %v2131_v19, %v2133_v1  ;;  %vm5507_vm8 = vcmp.le.f32.partialorder %v2191_v14, 0.7853982  ;;  %v6472_v39 = vmov 0  ;;  %v3206_v11 = vor.u32 4788187, %v3205_v38 }
 0x324   : > { %v6473_v39 = vsel %vm5507_vm8, 4294967295, %v6472_v39  ;;  %v5512_v54 = vmul.u32.u64.low %v5463_v12, %v2134_v28  ;;  %v5513_v25 = vmul.u32.u64.high %v5463_v12, %v2134_v28, %v5512_v54  ;;  %v2299_v27 = vshrl.u32 %v2298_v63, 23 }
 0x325   : > { %6474 = vst [vmem:[#allocation11_spill] sm:$0xff] %v6473_v39  ;;  %v2889_v58 = vshrl.u32 %v2871_v8, %v2887_v56  ;;  %v2893_v20 = vshll.u32 %v2892_v33, 23  ;;  %v2051_v9 = vclz %v3535_v44  ;;  %v2126_v49 = vsel %vm2120_vm10, %v2123_v57, %v2125_v32 }
 0x326   : > { %v2275_v31 = vxor.u32 2147483648, %v5450_v21  ;;  %v2145_v19 = vadd.s32 1, %v5497_v43  ;;  %v3546_v17 = vadd.s32 4294967169, %v2299_v27  ;;  %v5519_v14 = vadd.f32 %v1883_v15, %v5185_v7 }
 0x327   : > { %v2591_v38 = vsel %vm5483_vm3, %v5188_v51, %v5446_v62  ;;  %v3202_v6 = vor.u32 %v3201_v0, %v3200_v37  ;;  %v2888_v63 = vshll.u32 %v5407_v23, %v5460_v52  ;;  %v6354_v8 = vand.u32 2147483647, %v5458_v18 }
 0x328   : > { %6475 = vst [vmem:[#allocation12_spill] sm:$0xff] %v5519_v14  ;;  %v3536_v59 = vadd.s32 4294967294, %v2051_v9  ;;  %v2142_v56 = vmul.u32 %v5463_v12, %v2126_v49  ;;  %vm2144_vm1 = vc.u32 %v5513_v25, %v5496_v10  ;;  %v2305_v33 = vadd.s32 1, %v3546_v17 }
 0x329   : > { %v3207_v7 = vand.u32 2147483647, %v3206_v11  ;;  %v5531_v57 = vor.u32 %v2889_v58, %v2888_v63  ;;  %v5533_v4 = vor.u32 4788187, %v2893_v20  ;;  %v2146_v62 = vsel %vm2144_vm1, %v2145_v19, %v5497_v43 }
 0x32a   : > { %v2276_v23 = vsel %vm2193_vm13, %v2275_v31, %v5450_v21  ;;  %v2147_v52 = vadd.s32 %v2146_v62, %v2142_v56  ;;  %vm2306_vm7 = vcmp.gt.s32.totalorder %v2305_v33, 0  ;;  %v2402_v32 = vand.u32 2139095040, %v5519_v14 }
 0x32b   : > { %3836 = vcosq.f32 %v2591_v38  ;;  %v3209_v12 = vcvt.s32.f32 %v3202_v6  ;;  %v2302_v1 = vand.u32 8388607, %v6354_v8  ;;  %v2307_v37 = vsel %vm2306_vm7, %v2305_v33, 0 }
 0x32c   : > { %3838 = vsinq.f32 %v2591_v38  ;;  %vm3537_vm5 = vcmp.lt.s32.totalorder %v3536_v59, 0  ;;  %v2148_v0 = vadd.s32 536870912, %v2147_v52  ;;  %v2309_v44 = vand.u32 31, %v2307_v37 }
 0x32d   : > { %v5545_v43 = vsel %vm5507_vm8, %v5195_v42, %v2276_v23  ;;  %v5547_v21 = vmul.f32 %v3209_v12, %v3207_v7  ;;  %v2895_v28 = vand.u32 2147483647, %v5533_v4  ;;  %v2897_v15 = vcvt.s32.f32 %v5531_v57 }
 0x32e   : > { %v5551_v11 = vshrl.u32 %v2148_v0, 30  ;;  %v2310_v54 = vsub.s32 32, %v2309_v44  ;;  %v2403_v58 = vshrl.u32 %v2402_v32, 23  ;;  %v5554_v20 = vsel %vm3537_vm5, 0, %v3536_v59 }
 0x32f   : > { %v2303_v9 = vor.u32 8388608, %v2302_v1  ;;  %v2308_v49 = vshrl.u32 %v2307_v37, 5  ;;  %v2312_v31 = vshll.u32 %v6411_v30, %v2309_v44  ;;  %v2315_v38 = vshll.u32 %v6462_v36, %v2309_v44 }
 0x330   : > { %6476 = vst [vmem:[#allocation13_spill] sm:$0xff] %v5551_v11  ;;  %v2150_v19 = vshll.u32 %v5551_v11, 30  ;;  %v2313_v17 = vshrl.u32 %v6462_v36, %v2310_v54  ;;  %v2316_v6 = vshrl.u32 %v6463_v61, %v2310_v54  ;;  %v2318_v63 = vshll.u32 %v6463_v61, %v2309_v44 }
 0x331   : > { %v2319_v56 = vshrl.u32 %v6464_v50, %v2310_v54  ;;  %v2321_v33 = vshll.u32 %v6464_v50, %v2309_v44  ;;  %v2322_v59 = vshrl.u32 %v6409_v41, %v2310_v54  ;;  %v3550_v62 = vadd.s32 4294967169, %v2403_v58 }
 0x332   : > { %v5565_v7 = vsub.s32 %v2147_v52, %v2150_v19  ;;  %v2314_v57 = vor.u32 %v2313_v17, %v2312_v31  ;;  %v2317_v4 = vor.u32 %v2316_v6, %v2315_v38  ;;  %v2324_v12 = vshll.u32 %v6409_v41, %v2309_v44 }
 0x333   : > { %v2320_v23 = vor.u32 %v2319_v56, %v2318_v63  ;;  %v2323_v32 = vor.u32 %v2322_v59, %v2321_v33  ;;  %v2325_v1 = vshrl.u32 %v6410_v53, %v2310_v54  ;;  %v2055_v37 = vsub.s32 32, %v5554_v20 }
 0x334   : > { %v2059_v0 = vsub.s32 4294967266, %v5554_v20  ;;  %v2311_v8 = vshrl.u32 %v6411_v30, %v2310_v54  ;;  %v2343_v60 = vshll.u32 %v2303_v9, 8  ;;  %v2153_v48 = vsub.s32 0, %v5565_v7 }
 0x335   : > { %v2326_v52 = vor.u32 %v2325_v1, %v2324_v12  ;;  %vm2327_vm15 = vcmp.lt.s32.totalorder %v2308_v49, 1  ;;  %vm2330_vm4 = vcmp.lt.s32.totalorder %v2308_v49, 4  ;;  %vm2329_vm12 = vcmp.lt.s32.totalorder %v2308_v49, 3 }
 0x336   : > { %v2332_v58 = vsel %vm2330_vm4, %v2320_v23, 2102212464  ;;  %v2335_v31 = vsel %vm2327_vm15, %v2314_v57, %v2317_v4  ;;  %v2336_v19 = vsel %vm2330_vm4, %v2323_v32, 920167782  ;;  %vm2328_vm6 = vcmp.lt.s32.totalorder %v2308_v49, 2 }
 0x337   : > { %v2337_v44 = vsel %vm2329_vm12, %v2320_v23, %v2336_v19  ;;  %v2339_v17 = vsel %vm2327_vm15, %v2317_v4, %v2320_v23  ;;  %v2409_v38 = vadd.s32 1, %v3550_v62  ;;  %v2060_v63 = vadd.s32 127, %v2059_v0 }
 0x338   : > { %v5573_v6 = vpop.eup %3836  ;;  %v2331_v56 = vsel %vm2327_vm15, %v2311_v8, %v2314_v57  ;;  %v2338_v54 = vsel %vm2328_vm6, %v2335_v31, %v2337_v44  ;;  %v2340_v9 = vsel %vm2330_vm4, %v2326_v52, 1326507024  ;;  %v2333_v59 = vsel %vm2329_vm12, %v2317_v4, %v2332_v58 }
 0x339   : > { %v5576_v33 = vpop.eup %3838  ;;  %v2341_v12 = vsel %vm2329_vm12, %v2323_v32, %v2340_v9  ;;  %v5578_v1 = vmul.u32.u64.low %v2343_v60, %v2338_v54  ;;  %v5579_v27 = vmul.u32.u64.high %v2343_v60, %v2338_v54, %v5578_v1  ;;  %v5582_v2 = vmul.f32 %v2897_v15, %v2895_v28 }
 0x33a   : > { %v2039_v62 = vadd.s32 %v5422_v45, %v5431_v16  ;;  %v3539_v23 = vmin.u32 %v2153_v48, %v5565_v7  ;;  %v2342_v8 = vsel %vm2328_vm6, %v2339_v17, %v2341_v12  ;;  %v6477_v52 = vand.u32 2147483647, %v5519_v14  ;;  %v1887_v48 = vpop.f32.mrf.mxu1 }
 0x33b   : > { %v5588_v57 = vmul.u32.u64.low %v2343_v60, %v2342_v8  ;;  %v5589_v0 = vmul.u32.u64.high %v2343_v60, %v2342_v8, %v5588_v57  ;;  %vm2410_vm2 = vcmp.gt.s32.totalorder %v2409_v38, 0  ;;  %v2061_v58 = vshll.u32 %v2060_v63, 23 }
 0x33c   : > { %v2406_v4 = vand.u32 8388607, %v6477_v52  ;;  %v2057_v32 = vshrl.u32 %v2039_v62, %v2055_v37  ;;  %v2334_v31 = vsel %vm2328_vm6, %v2331_v56, %v2333_v59  ;;  %v2411_v28 = vsel %vm2410_vm2, %v2409_v38, 0 }
 0x33d   : > { %3840 = vcosq.f32 %v5545_v43  ;;  %v2353_v45 = vadd.s32 1, %v5579_v27  ;;  %v2413_v16 = vand.u32 31, %v2411_v28  ;;  %v3211_v15 = vxor.u32 2147483648, %v5547_v21 }
 0x33e   : > { %v2056_v44 = vshll.u32 %v5487_v46, %v5554_v20  ;;  %v2155_v17 = vclz %v3539_v23  ;;  %v2350_v54 = vmul.u32 %v2343_v60, %v2334_v31  ;;  %vm2352_vm9 = vc.u32 %v5589_v0, %v5578_v1 }
 0x33f   : > { %v2407_v49 = vor.u32 8388608, %v2406_v4  ;;  %v2414_v37 = vsub.s32 32, %v2413_v16  ;;  %v2062_v63 = vor.u32 4788187, %v2061_v58  ;;  %v2354_v56 = vsel %vm2352_vm9, %v2353_v45, %v5579_v27 }
 0x340   : > { %v2058_v38 = vor.u32 %v2057_v32, %v2056_v44  ;;  %v5604_v9 = vadd.f32 %v1887_v48, %v5183_v3  ;;  %v2355_v59 = vadd.s32 %v2354_v56, %v2350_v54  ;;  %v2416_v12 = vshll.u32 %v6411_v30, %v2413_v16 }
 0x341   : > { %v2417_v62 = vshrl.u32 %v6462_v36, %v2414_v37  ;;  %v2420_v46 = vshrl.u32 %v6463_v61, %v2414_v37  ;;  %v3540_v60 = vadd.s32 4294967294, %v2155_v17  ;;  %v2419_v20 = vshll.u32 %v6462_v36, %v2413_v16 }
 0x342   : > { %v2422_v23 = vshll.u32 %v6463_v61, %v2413_v16  ;;  %v2423_v8 = vshrl.u32 %v6464_v50, %v2414_v37  ;;  %vm3129_vm0 = vcmp.lt.s32.totalorder %v5202_v35, 0  ;;  %v2356_v27 = vadd.s32 536870912, %v2355_v59 }
 0x343   : > { %v2412_v57 = vshrl.u32 %v2411_v28, 5  ;;  %v2418_v52 = vor.u32 %v2417_v62, %v2416_v12  ;;  %v5613_v4 = vshll.u32 %v2407_v49, 8  ;;  %v2421_v32 = vor.u32 %v2420_v46, %v2419_v20 }
 0x344   : > { %v2424_v58 = vor.u32 %v2423_v8, %v2422_v23  ;;  %v2425_v31 = vshll.u32 %v6464_v50, %v2413_v16  ;;  %v2426_v45 = vshrl.u32 %v6409_v41, %v2414_v37  ;;  %v2065_v48 = vcvt.s32.f32 %v2058_v38 }
 0x345   : > { %v5617_v44 = vshrl.u32 %v2356_v27, 30  ;;  %v2428_v17 = vshll.u32 %v6409_v41, %v2413_v16  ;;  %v2429_v54 = vshrl.u32 %v6410_v53, %v2414_v37  ;;  %v6479_v56 = vand.u32 2147483647, %v5202_v35 }
 0x346   : > { %vm2817_vm10 = vcmp.lt.s32.totalorder %v5208_v29, 0  ;;  %v2063_v49 = vand.u32 2147483647, %v2062_v63  ;;  %vm3541_vm1 = vcmp.lt.s32.totalorder %v3540_v60, 0  ;;  %v2415_v12 = vshrl.u32 %v6411_v30, %v2414_v37 }
 0x347   : > { %6478 = vst [vmem:[#allocation14_spill] sm:$0xff] %v5617_v44  ;;  %vm5623_vm11 = vcmp.le.f32.partialorder %v6479_v56, 0.7853982  ;;  %v2427_v62 = vor.u32 %v2426_v45, %v2425_v31  ;;  %v2358_v38 = vshll.u32 %v5617_v44, 30  ;;  %v2430_v46 = vor.u32 %v2429_v54, %v2428_v17 }
 0x348   : > { %vm2431_vm7 = vcmp.lt.s32.totalorder %v2412_v57, 1  ;;  %vm2434_vm5 = vcmp.lt.s32.totalorder %v2412_v57, 4  ;;  %vm2433_vm15 = vcmp.lt.s32.totalorder %v2412_v57, 3  ;;  %vm2432_vm4 = vcmp.lt.s32.totalorder %v2412_v57, 2 }
 0x349   : > { %v2436_v16 = vsel %vm2434_vm5, %v2424_v58, 2102212464  ;;  %v2439_v20 = vsel %vm2431_vm7, %v2418_v52, %v2421_v32  ;;  %v2440_v23 = vsel %vm2434_vm5, %v2427_v62, 920167782  ;;  %v5630_v8 = vsub.s32 %v2355_v59, %v2358_v38 }
 0x34a   : > { %v2441_v27 = vsel %vm2433_vm15, %v2424_v58, %v2440_v23  ;;  %v2443_v56 = vsel %vm2431_vm7, %v2421_v32, %v2424_v58  ;;  %v5632_v19 = vpop.eup %3840  ;;  %v6483_v63 = vand.u32 2147483647, %v5208_v29  ;;  %v2435_v31 = vsel %vm2431_vm7, %v2415_v12, %v2418_v52  ;;  %v1889_v58 = vpop.f32.mrf.mxu1 }
 0x34b   : > { %6482 = vst [vmem:[#allocation15_spill] sm:$0xff] %v5632_v19  ;;  %v2437_v45 = vsel %vm2433_vm15, %v2421_v32, %v2436_v16  ;;  %v2442_v17 = vsel %vm2432_vm4, %v2439_v20, %v2441_v27  ;;  %v2444_v54 = vsel %vm2434_vm5, %v2430_v46, 1326507024  ;;  %v2361_v11 = vsub.s32 0, %v5630_v8 }
 0x34c   : > { %vm5636_vm12 = vcmp.le.f32.partialorder %v6483_v63, 0.7853982  ;;  %v2445_v59 = vsel %vm2433_vm15, %v2427_v62, %v2444_v54  ;;  %v5643_v38 = vmul.u32.u64.low %v5613_v4, %v2442_v17  ;;  %v5644_v23 = vmul.u32.u64.high %v5613_v4, %v2442_v17, %v5643_v38 }
 0x34d   : > { %v3212_v63 = vsel %vm3129_vm0, %v3211_v15, %v5547_v21  ;;  %v2066_v22 = vmul.f32 %v2065_v48, %v2063_v49  ;;  %v2446_v52 = vsel %vm2432_vm4, %v2443_v56, %v2445_v59  ;;  %v2610_v32 = vand.u32 2139095040, %v5604_v9 }
 0x34e   : > { %v2158_v12 = vsel %vm3541_vm1, 0, %v3540_v60  ;;  %v3547_v46 = vmin.u32 %v2361_v11, %v5630_v8  ;;  %v5655_v62 = vmul.u32.u64.low %v5613_v4, %v2446_v52  ;;  %v5656_v16 = vmul.u32.u64.high %v5613_v4, %v2446_v52, %v5655_v62 }
 0x34f   : > { %3842 = vsinq.f32 %v5545_v43  ;;  %v2438_v20 = vsel %vm2432_vm4, %v2435_v31, %v2437_v45  ;;  %v2611_v27 = vshrl.u32 %v2610_v32, 23  ;;  %v5661_v21 = vadd.f32 %v1889_v58, %v5183_v3 }
 0x350   : > { %v3215_v15 = vsel %vm5623_vm11, %v5202_v35, %v3212_v63  ;;  %v6487_v60 = vxor.u32 2147483648, %v5582_v2  ;;  %v2363_v48 = vclz %v3547_v46  ;;  %v2457_v49 = vadd.s32 1, %v5644_v23 }
 0x351   : > { %6486 = vst [vmem:[#allocation16_spill] sm:$0xff] %v5661_v21  ;;  %v2067_v43 = vxor.u32 2147483648, %v2066_v22  ;;  %v2159_v57 = vsub.s32 32, %v2158_v12  ;;  %v3558_v56 = vadd.s32 4294967169, %v2611_v27  ;;  %v2714_v31 = vand.u32 2139095040, %v5661_v21  ;;  %v1893_v27 = vpop.f32.mrf.mxu1 }
 0x352   : > { %v2900_v11 = vsel %vm2817_vm10, %v6487_v60, %v5582_v2  ;;  %v2163_v3 = vsub.s32 4294967266, %v2158_v12  ;;  %v3548_v45 = vadd.s32 4294967294, %v2363_v48  ;;  %v2454_v17 = vmul.u32 %v5613_v4, %v2438_v20 }
 0x353   : > { %vm2456_vm6 = vc.u32 %v5656_v16, %v5643_v38  ;;  %v2143_v54 = vadd.s32 %v5496_v10, %v5513_v25  ;;  %v2617_v59 = vadd.s32 1, %v3558_v56  ;;  %v2715_v58 = vshrl.u32 %v2714_v31, 23 }
 0x354   : > { %v2458_v2 = vsel %vm2456_vm6, %v2457_v49, %v5644_v23  ;;  %3844 = vcosq.f32 %v3215_v15  ;;  %v2903_v63 = vsel %vm5636_vm12, %v5208_v29, %v2900_v11  ;;  %vm1985_vm2 = vcmp.lt.s32.totalorder %v5348_v34, 0 }
 0x355   : > { %v2459_v52 = vadd.s32 %v2458_v2, %v2454_v17  ;;  %3846 = vsinq.f32 %v3215_v15  ;;  %v2161_v4 = vshrl.u32 %v2143_v54, %v2159_v57  ;;  %vm3549_vm9 = vcmp.lt.s32.totalorder %v3548_v45, 0 }
 0x356   : > { %vm2618_vm1 = vcmp.gt.s32.totalorder %v2617_v59, 0  ;;  %v2068_v32 = vsel %vm1985_vm2, %v2067_v43, %v2066_v22  ;;  %v5685_v10 = vadd.s32 127, %v2163_v3  ;;  %v6363_v23 = vand.u32 2147483647, %v5604_v9 }
 0x357   : > { %v2460_v25 = vadd.s32 536870912, %v2459_v52  ;;  %3848 = vcosq.f32 %v2903_v63  ;;  %v2160_v46 = vshll.u32 %v5565_v7, %v2158_v12  ;;  %v2619_v62 = vsel %vm2618_vm1, %v2617_v59, 0 }
 0x358   : > { %6488 = vst [vmem:[#allocation17_spill] sm:$0xff] %v5685_v10  ;;  %v3562_v20 = vadd.s32 4294967169, %v2715_v58  ;;  %3850 = vsinq.f32 %v2903_v63  ;;  %v6489_v15 = vand.u32 2147483647, %v5348_v34  ;;  %v6490_v60 = vmov 0 }
 0x359   : > { %v5695_v11 = vsel %vm3549_vm9, 0, %v3548_v45  ;;  %v5697_v22 = vshrl.u32 %v2460_v25, 30  ;;  %v5704_v7 = vor.u32 %v2161_v4, %v2160_v46  ;;  %v2351_v12 = vadd.s32 %v5578_v1, %v5589_v0 }
 0x35a   : > { %vm5691_vm7 = vcmp.le.f32.partialorder %v6489_v15, 0.7853982  ;;  %v2621_v49 = vand.u32 31, %v2619_v62  ;;  %v2614_v56 = vand.u32 8388607, %v6363_v23  ;;  %v5713_v31 = vadd.f32 %v1893_v27, %v5181_v24 }
 0x35b   : > { %v6491_v60 = vsel %vm5691_vm7, 4294967295, %v6490_v60  ;;  %6493 = vst [vmem:[#allocation19_spill] sm:$0xff] %v5697_v22  ;;  %v5702_v48 = vsel %vm5691_vm7, %v5348_v34, %v2068_v32  ;;  %6495 = vst [vmem:[#allocation21_spill] sm:$0xff] %v5704_v7  ;;  %v2462_v57 = vshll.u32 %v5697_v22, 30  ;;  %v2371_v3 = vsub.s32 4294967266, %v5695_v11 }
 0x35c   : > { %6492 = vst [vmem:[#allocation18_spill] sm:$0xff] %v6491_v60  ;;  %6494 = vst [vmem:[#allocation20_spill] sm:$0xff] %v5702_v48  ;;  %v2622_v45 = vsub.s32 32, %v2621_v49  ;;  %v2721_v54 = vadd.s32 1, %v3562_v20  ;;  %v5717_v2 = vpop.eup %3842  ;;  %v5721_v0 = vshrl.u32 %v2619_v62, 5  ;;  %v2624_v59 = vshll.u32 %v6411_v30, %v2621_v49 }
 0x35d   : > { %6496 = vst [vmem:[#allocation22_spill] sm:$0xff] %v5713_v31  ;;  %6497 = vst [vmem:[#allocation23_spill] sm:$0xff] %v5717_v2  ;;  %v5719_v1 = vsub.s32 %v2459_v52, %v2462_v57  ;;  %v2627_v58 = vshll.u32 %v6462_v36, %v2621_v49  ;;  %v2630_v32 = vshll.u32 %v6463_v61, %v2621_v49  ;;  %v2615_v17 = vor.u32 8388608, %v2614_v56 }
 0x35e   : > { %v2625_v63 = vshrl.u32 %v6462_v36, %v2622_v45  ;;  %v2628_v4 = vshrl.u32 %v6463_v61, %v2622_v45  ;;  %v2631_v25 = vshrl.u32 %v6464_v50, %v2622_v45  ;;  %v2633_v20 = vshll.u32 %v6464_v50, %v2621_v49 }
 0x35f   : > { %v2465_v46 = vsub.s32 0, %v5719_v1  ;;  %v2634_v52 = vshrl.u32 %v6409_v41, %v2622_v45  ;;  %v2636_v62 = vshll.u32 %v6409_v41, %v2621_v49  ;;  %v2637_v43 = vshrl.u32 %v6410_v53, %v2622_v45 }
 0x360   : > { %v2626_v27 = vor.u32 %v2625_v63, %v2624_v59  ;;  %v2629_v15 = vor.u32 %v2628_v4, %v2627_v58  ;;  %v2632_v57 = vor.u32 %v2631_v25, %v2630_v32  ;;  %v6498_v34 = vand.u32 2147483647, %v5661_v21 }
 0x361   : > { %v3551_v23 = vmin.u32 %v2465_v46, %v5719_v1  ;;  %v2635_v60 = vor.u32 %v2634_v52, %v2633_v20  ;;  %v5737_v22 = vpop.eup %3844  ;;  %v2367_v48 = vsub.s32 32, %v5695_v11  ;;  %v2372_v7 = vadd.s32 127, %v2371_v3 }
 0x362   : > { %v2718_v44 = vand.u32 8388607, %v6498_v34  ;;  %v2638_v14 = vor.u32 %v2637_v43, %v2636_v62  ;;  %vm2722_vm5 = vcmp.gt.s32.totalorder %v2721_v54, 0  ;;  %v5740_v49 = vpop.eup %3846  ;;  %vm2639_vm15 = vcmp.lt.s32.totalorder %v5721_v0, 1  ;;  %v1895_v62 = vpop.f32.mrf.mxu1 }
 0x363   : > { %v2467_v59 = vclz %v3551_v23  ;;  %vm2641_vm4 = vcmp.lt.s32.totalorder %v5721_v0, 3  ;;  %vm2642_vm6 = vcmp.lt.s32.totalorder %v5721_v0, 4  ;;  %v2647_v56 = vsel %vm2639_vm15, %v2626_v27, %v2629_v15 }
 0x364   : > { %v2648_v34 = vsel %vm2642_vm6, %v2635_v60, 920167782  ;;  %v2651_v58 = vsel %vm2639_vm15, %v2629_v15, %v2632_v57  ;;  %v2652_v63 = vsel %vm2642_vm6, %v2638_v14, 1326507024  ;;  %v5749_v3 = vpop.eup %3848  ;;  %v2655_v23 = vshll.u32 %v2615_v17, 8 }
 0x365   : > { %v2649_v43 = vsel %vm2641_vm4, %v2632_v57, %v2648_v34  ;;  %v2719_v4 = vor.u32 8388608, %v2718_v44  ;;  %v5754_v25 = vpop.eup %3850  ;;  %v3552_v46 = vadd.s32 4294967294, %v2467_v59  ;;  %vm2640_vm9 = vcmp.lt.s32.totalorder %v5721_v0, 2 }
 0x366   : > { %v2644_v20 = vsel %vm2642_vm6, %v2632_v57, 2102212464  ;;  %v2653_v52 = vsel %vm2641_vm4, %v2635_v60, %v2652_v63  ;;  %v2623_v14 = vshrl.u32 %v6411_v30, %v2622_v45  ;;  %v2650_v21 = vsel %vm2640_vm9, %v2647_v56, %v2649_v43 }
 0x367   : > { %v2654_v44 = vsel %vm2640_vm9, %v2651_v58, %v2653_v52  ;;  %v2723_v17 = vsel %vm2722_vm5, %v2721_v54, 0  ;;  %v2369_v34 = vshrl.u32 %v2351_v12, %v2367_v48  ;;  %v2373_v32 = vshll.u32 %v2372_v7, 23 }
 0x368   : > { %v5765_v59 = vmul.u32.u64.low %v2655_v23, %v2654_v44  ;;  %v5766_v10 = vmul.u32.u64.high %v2655_v23, %v2654_v44, %v5765_v59  ;;  %v2368_v57 = vshll.u32 %v5630_v8, %v5695_v11  ;;  %v2643_v60 = vsel %vm2639_vm15, %v2623_v14, %v2626_v27 }
 0x369   : > { %v2645_v45 = vsel %vm2641_vm4, %v2629_v15, %v2644_v20  ;;  %v5775_v56 = vadd.f32 %v1895_v62, %v5181_v24  ;;  %vm3553_vm1 = vcmp.lt.s32.totalorder %v3552_v46, 0  ;;  %v2725_v48 = vand.u32 31, %v2723_v17 }
 0x36a   : > { %v5777_v58 = vmul.u32.u64.low %v2655_v23, %v2650_v21  ;;  %v5778_v54 = vmul.u32.u64.high %v2655_v23, %v2650_v21, %v5777_v58  ;;  %v5781_v7 = vshll.u32 %v2719_v4, 8  ;;  %v2922_v12 = vand.u32 2139095040, %v5713_v31 }
 0x36b   : > { %6499 = vst [vmem:[#allocation24_spill] sm:$0xff] %v5775_v56  ;;  %v6500_v8 = vand.u32 2147483647, %v5713_v31  ;;  %v5789_v15 = vor.u32 %v2369_v34, %v2368_v57  ;;  %v5791_v24 = vor.u32 4788187, %v2373_v32  ;;  %v2646_v21 = vsel %vm2640_vm9, %v2643_v60, %v2645_v45 }
 0x36c   : > { %v2726_v63 = vsub.s32 32, %v2725_v48  ;;  %v5795_v43 = vsel %vm3553_vm1, 0, %v3552_v46  ;;  %vm2664_vm5 = vc.u32 %v5766_v10, %v5777_v58  ;;  %v2724_v4 = vshrl.u32 %v2723_v17, 5 }
 0x36d   : > { %v5786_v11 = vand.u32 8388607, %v6500_v8  ;;  %v2728_v20 = vshll.u32 %v6411_v30, %v2725_v48  ;;  %v2665_v52 = vadd.s32 1, %v5778_v54  ;;  %v2731_v14 = vshll.u32 %v6462_v36, %v2725_v48 }
 0x36e   : > { %v2729_v62 = vshrl.u32 %v6462_v36, %v2726_v63  ;;  %v2732_v32 = vshrl.u32 %v6463_v61, %v2726_v63  ;;  %v2662_v44 = vmul.u32 %v2655_v23, %v2646_v21  ;;  %v2734_v0 = vshll.u32 %v6463_v61, %v2725_v48 }
 0x36f   : > { %v2735_v46 = vshrl.u32 %v6464_v50, %v2726_v63  ;;  %v2737_v34 = vshll.u32 %v6464_v50, %v2725_v48  ;;  %v2666_v59 = vsel %vm2664_vm5, %v2665_v52, %v5778_v54  ;;  %v2738_v60 = vshrl.u32 %v6409_v41, %v2726_v63 }
 0x370   : > { %v2730_v17 = vor.u32 %v2729_v62, %v2728_v20  ;;  %v2733_v57 = vor.u32 %v2732_v32, %v2731_v14  ;;  %v2475_v45 = vsub.s32 4294967266, %v5795_v43  ;;  %v2667_v8 = vadd.s32 %v2666_v59, %v2662_v44 }
 0x371   : > { %v2736_v27 = vor.u32 %v2735_v46, %v2734_v0  ;;  %v2923_v31 = vshrl.u32 %v2922_v12, 23  ;;  %v2739_v19 = vor.u32 %v2738_v60, %v2737_v34  ;;  %v2740_v23 = vshll.u32 %v6409_v41, %v2725_v48 }
 0x372   : > { %v2741_v21 = vshrl.u32 %v6410_v53, %v2726_v63  ;;  %vm2743_vm15 = vcmp.lt.s32.totalorder %v2724_v4, 1  ;;  %v2668_v2 = vadd.s32 536870912, %v2667_v8  ;;  %v2727_v18 = vshrl.u32 %v6411_v30, %v2726_v63 }
 0x373   : > { %vm2745_vm4 = vcmp.lt.s32.totalorder %v2724_v4, 3  ;;  %vm2746_vm6 = vcmp.lt.s32.totalorder %v2724_v4, 4  ;;  %v2751_v52 = vsel %vm2743_vm15, %v2730_v17, %v2733_v57  ;;  %v2476_v14 = vadd.s32 127, %v2475_v45 }
 0x374   : > { %v2742_v54 = vor.u32 %v2741_v21, %v2740_v23  ;;  %v2748_v20 = vsel %vm2746_vm6, %v2736_v27, 2102212464  ;;  %v2752_v62 = vsel %vm2746_vm6, %v2739_v19, 920167782  ;;  %v5813_v32 = vshrl.u32 %v2668_v2, 30 }
 0x375   : > { %vm2744_vm9 = vcmp.lt.s32.totalorder %v2724_v4, 2  ;;  %v2753_v12 = vsel %vm2745_vm4, %v2736_v27, %v2752_v62  ;;  %v2747_v44 = vsel %vm2743_vm15, %v2727_v18, %v2730_v17  ;;  %v2755_v0 = vsel %vm2743_vm15, %v2733_v57, %v2736_v27 }
 0x376   : > { %6501 = vst [vmem:[#allocation25_spill] sm:$0xff] %v5813_v32  ;;  %v2754_v48 = vsel %vm2744_vm9, %v2751_v52, %v2753_v12  ;;  %v2756_v46 = vsel %vm2746_vm6, %v2742_v54, 1326507024  ;;  %v2670_v34 = vshll.u32 %v5813_v32, 30  ;;  %v2749_v63 = vsel %vm2745_vm4, %v2733_v57, %v2748_v20 }
 0x377   : > { %v2757_v59 = vsel %vm2745_vm4, %v2739_v19, %v2756_v46  ;;  %v3570_v60 = vadd.s32 4294967169, %v2923_v31  ;;  %v2471_v23 = vsub.s32 32, %v5795_v43  ;;  %v2455_v19 = vadd.s32 %v5643_v38, %v5656_v16 }
 0x378   : > { %v2758_v2 = vsel %vm2744_vm9, %v2755_v0, %v2757_v59  ;;  %v5823_v45 = vmul.u32.u64.low %v5781_v7, %v2754_v48  ;;  %v5824_v21 = vmul.u32.u64.high %v5781_v7, %v2754_v48, %v5823_v45  ;;  %v5827_v18 = vsub.s32 %v2667_v8, %v2670_v34 }
 0x379   : > { %v5830_v27 = vmul.u32.u64.low %v5781_v7, %v2758_v2  ;;  %v5831_v17 = vmul.u32.u64.high %v5781_v7, %v2758_v2, %v5830_v27  ;;  %v2929_v54 = vadd.s32 1, %v3570_v60  ;;  %v2477_v31 = vshll.u32 %v2476_v14, 23 }
 0x37a   : > { %v2750_v20 = vsel %vm2744_vm9, %v2747_v44, %v2749_v63  ;;  %v2673_v52 = vsub.s32 0, %v5827_v18  ;;  %v2927_v62 = vor.u32 8388608, %v5786_v11  ;;  %v3026_v8 = vand.u32 2139095040, %v5775_v56 }
 0x37b   : > { %vm2930_vm1 = vcmp.gt.s32.totalorder %v2929_v54, 0  ;;  %v2769_v48 = vadd.s32 1, %v5824_v21  ;;  %v6383_v46 = vand.u32 2147483647, %v5775_v56  ;;  %v5843_v34 = vshrl.u32 %v2455_v19, %v2471_v23 }
 0x37c   : > { %v2931_v0 = vsel %vm2930_vm1, %v2929_v54, 0  ;;  %v3559_v38 = vmin.u32 %v2673_v52, %v5827_v18  ;;  %v2766_v16 = vmul.u32 %v5781_v7, %v2750_v20  ;;  %vm2768_vm5 = vc.u32 %v5831_v17, %v5823_v45 }
 0x37d   : > { %v5849_v11 = vor.u32 4788187, %v2477_v31  ;;  %v2663_v4 = vadd.s32 %v5777_v58, %v5766_v10  ;;  %v2770_v14 = vsel %vm2768_vm5, %v2769_v48, %v5824_v21  ;;  %v2933_v44 = vand.u32 31, %v2931_v0 }
 0x37e   : > { %v2675_v63 = vclz %v3559_v38  ;;  %v2771_v59 = vadd.s32 %v2770_v14, %v2766_v16  ;;  %v5854_v60 = vshll.u32 %v2927_v62, 8  ;;  %v3027_v23 = vshrl.u32 %v3026_v8, 23 }
 0x37f   : > { %v5856_v2 = vshrl.u32 %v2931_v0, 5  ;;  %v2934_v27 = vsub.s32 32, %v2933_v44  ;;  %v2936_v7 = vshll.u32 %v6411_v30, %v2933_v44  ;;  %v5861_v54 = vand.u32 8388607, %v6383_v46 }
 0x380   : > { %v3560_v19 = vadd.s32 4294967294, %v2675_v63  ;;  %v2772_v31 = vadd.s32 536870912, %v2771_v59  ;;  %v2939_v10 = vshll.u32 %v6462_v36, %v2933_v44  ;;  %v2942_v58 = vshll.u32 %v6463_v61, %v2933_v44 }
 0x381   : > { %v2937_v21 = vshrl.u32 %v6462_v36, %v2934_v27  ;;  %v2940_v20 = vshrl.u32 %v6463_v61, %v2934_v27  ;;  %v2943_v52 = vshrl.u32 %v6464_v50, %v2934_v27  ;;  %v2945_v62 = vshll.u32 %v6464_v50, %v2933_v44 }
 0x382   : > { %vm3561_vm15 = vcmp.lt.s32.totalorder %v3560_v19, 0  ;;  %v5869_v8 = vshrl.u32 %v2772_v31, 30  ;;  %v2946_v48 = vshrl.u32 %v6409_v41, %v2934_v27  ;;  %v2949_v0 = vshrl.u32 %v6410_v53, %v2934_v27 }
 0x383   : > { %v2678_v38 = vsel %vm3561_vm15, 0, %v3560_v19  ;;  %v2938_v16 = vor.u32 %v2937_v21, %v2936_v7  ;;  %v2941_v14 = vor.u32 %v2940_v20, %v2939_v10  ;;  %v2948_v63 = vshll.u32 %v6409_v41, %v2933_v44 }
 0x384   : > { %v2679_v46 = vsub.s32 32, %v2678_v38  ;;  %v2683_v57 = vsub.s32 4294967266, %v2678_v38  ;;  %v2774_v12 = vshll.u32 %v5869_v8, 30  ;;  %v2944_v56 = vor.u32 %v2943_v52, %v2942_v58 }
 0x385   : > { %v2947_v32 = vor.u32 %v2946_v48, %v2945_v62  ;;  %v2950_v39 = vor.u32 %v2949_v0, %v2948_v63  ;;  %vm2951_vm4 = vcmp.lt.s32.totalorder %v5856_v2, 1  ;;  %v3574_v31 = vadd.s32 4294967169, %v3027_v23 }
 0x386   : > { %v2684_v42 = vadd.s32 127, %v2683_v57  ;;  %v5876_v47 = vsub.s32 %v2771_v59, %v2774_v12  ;;  %vm2952_vm6 = vcmp.lt.s32.totalorder %v5856_v2, 2  ;;  %vm2954_vm9 = vcmp.lt.s32.totalorder %v5856_v2, 4 }
 0x387   : > { %v2935_v7 = vshrl.u32 %v6411_v30, %v2934_v27  ;;  %vm2953_vm1 = vcmp.lt.s32.totalorder %v5856_v2, 3  ;;  %v2959_v44 = vsel %vm2951_vm4, %v2938_v16, %v2941_v14  ;;  %v2960_v19 = vsel %vm2954_vm9, %v2947_v32, 920167782 }
 0x388   : > { %v2681_v10 = vshrl.u32 %v2663_v4, %v2679_v46  ;;  %v2685_v58 = vshll.u32 %v2684_v42, 23  ;;  %v2777_v21 = vsub.s32 0, %v5876_v47  ;;  %v2956_v23 = vsel %vm2954_vm9, %v2944_v56, 2102212464 }
 0x389   : > { %v2961_v57 = vsel %vm2953_vm1, %v2944_v56, %v2960_v19  ;;  %v2963_v12 = vsel %vm2951_vm4, %v2941_v14, %v2944_v56  ;;  %v2964_v59 = vsel %vm2954_vm9, %v2950_v39, 1326507024  ;;  %v3033_v20 = vadd.s32 1, %v3574_v31 }
 0x38a   : > { %v2680_v27 = vshll.u32 %v5827_v18, %v2678_v38  ;;  %v3563_v52 = vmin.u32 %v2777_v21, %v5876_v47  ;;  %v2955_v62 = vsel %vm2951_vm4, %v2935_v7, %v2938_v16  ;;  %v2962_v42 = vsel %vm2952_vm6, %v2959_v44, %v2961_v57 }
 0x38b   : > { %v2686_v46 = vor.u32 4788187, %v2685_v58  ;;  %v2965_v4 = vsel %vm2953_vm1, %v2947_v32, %v2964_v59  ;;  %v5898_v48 = vmul.u32.u64.low %v5854_v60, %v2962_v42  ;;  %v5899_v0 = vmul.u32.u64.high %v5854_v60, %v2962_v42, %v5898_v48 }
 0x38c   : > { %v2779_v39 = vclz %v3563_v52  ;;  %v2957_v56 = vsel %vm2953_vm1, %v2941_v14, %v2956_v23  ;;  %v2966_v18 = vsel %vm2952_vm6, %v2963_v12, %v2965_v4  ;;  %vm3034_vm5 = vcmp.gt.s32.totalorder %v3033_v20, 0 }
 0x38d   : > { %v2682_v38 = vor.u32 %v2681_v10, %v2680_v27  ;;  %v5907_v16 = vmul.u32.u64.low %v5854_v60, %v2966_v18  ;;  %v5908_v63 = vmul.u32.u64.high %v5854_v60, %v2966_v18, %v5907_v16  ;;  %v3035_v31 = vsel %vm3034_vm5, %v3033_v20, 0 }
 0x38e   : > { %v2472_v32 = vshll.u32 %v5719_v1, %v5795_v43  ;;  %v3564_v7 = vadd.s32 4294967294, %v2779_v39  ;;  %v3031_v44 = vor.u32 8388608, %v5861_v54  ;;  %v3037_v19 = vand.u32 31, %v3035_v31 }
 0x38f   : > { %v6502_v58 = vand.u32 2147483647, %v5791_v24  ;;  %v6503_v14 = vcvt.s32.f32 %v5789_v15  ;;  %v2687_v23 = vand.u32 2147483647, %v2686_v46  ;;  %v2958_v10 = vsel %vm2952_vm6, %v2955_v62, %v2957_v56 }
 0x390   : > { %v2977_v57 = vadd.s32 1, %v5899_v0  ;;  %v5923_v12 = vor.u32 %v5843_v34, %v2472_v32  ;;  %v2479_v1 = vand.u32 2147483647, %v5849_v11  ;;  %vm3565_vm15 = vcmp.lt.s32.totalorder %v3564_v7, 0 }
 0x391   : > { %v5917_v21 = vmul.f32 %v6503_v14, %v6502_v58  ;;  %v3038_v43 = vsub.s32 32, %v3037_v19  ;;  %v2689_v54 = vcvt.s32.f32 %v2682_v38  ;;  %v5926_v59 = vsel %vm3565_vm15, 0, %v3564_v7 }
 0x392   : > { %vm2976_vm4 = vc.u32 %v5908_v63, %v5898_v48  ;;  %v6504_v15 = vsub.s32 4, %v5341_v55  ;;  %v2767_v34 = vadd.s32 %v5823_v45, %v5831_v17  ;;  %v2787_v2 = vsub.s32 4294967266, %v5926_v59 }
 0x393   : > { %v2974_v20 = vmul.u32 %v5854_v60, %v2958_v10  ;;  %v5941_v27 = vshll.u32 %v3031_v44, 8  ;;  %v5943_v52 = vmul.f32 %v2689_v54, %v2687_v23  ;;  %v2978_v62 = vsel %vm2976_vm4, %v2977_v57, %v5899_v0 }
 0x394   : > { %v5935_v24 = vsel %vm3129_vm0, %v6504_v15, %v5341_v55  ;;  %v3036_v42 = vshrl.u32 %v3035_v31, 5  ;;  %v3041_v46 = vshrl.u32 %v6462_v36, %v3038_v43  ;;  %v3224_v45 = vxor.u32 2147483648, %v5740_v49 }
 0x395   : > { %v2979_v4 = vadd.s32 %v2978_v62, %v2974_v20  ;;  %v3216_v55 = vsel %vm5623_vm11, 0, %v5935_v24  ;;  %v3227_v17 = vxor.u32 2147483648, %v5737_v22  ;;  %v2783_v60 = vsub.s32 32, %v5926_v59 }
 0x396   : > { %v3040_v39 = vshll.u32 %v6411_v30, %v3037_v19  ;;  %v3043_v56 = vshll.u32 %v6462_v36, %v3037_v19  ;;  %v3044_v0 = vshrl.u32 %v6463_v61, %v3038_v43  ;;  %v2788_v18 = vadd.s32 127, %v2787_v2 }
 0x397   : > { %v2980_v38 = vadd.s32 536870912, %v2979_v4  ;;  %v3046_v16 = vshll.u32 %v6463_v61, %v3037_v19  ;;  %v3047_v31 = vshrl.u32 %v6464_v50, %v3038_v43  ;;  %v3049_v7 = vshll.u32 %v6464_v50, %v3037_v19 }
 0x398   : > { %v3042_v28 = vor.u32 %v3041_v46, %v3040_v39  ;;  %v3045_v32 = vor.u32 %v3044_v0, %v3043_v56  ;;  %v3050_v44 = vshrl.u32 %v6409_v41, %v3038_v43  ;;  %v2784_v58 = vshll.u32 %v5876_v47, %v5926_v59 }
 0x399   : > { %v5962_v14 = vshrl.u32 %v2980_v38, 30  ;;  %v3039_v36 = vshrl.u32 %v6411_v30, %v3038_v43  ;;  %v3048_v23 = vor.u32 %v3047_v31, %v3046_v16  ;;  %v2785_v10 = vshrl.u32 %v2767_v34, %v2783_v60 }
 0x39a   : > { %v3051_v57 = vor.u32 %v3050_v44, %v3049_v7  ;;  %v3052_v61 = vshll.u32 %v6409_v41, %v3037_v19  ;;  %v3053_v54 = vshrl.u32 %v6410_v53, %v3038_v43  ;;  %v2789_v15 = vshll.u32 %v2788_v18, 23 }
 0x39b   : > { %v2982_v24 = vshll.u32 %v5962_v14, 30  ;;  %vm3055_vm0 = vcmp.lt.s32.totalorder %v3036_v42, 1  ;;  %vm3058_vm11 = vcmp.lt.s32.totalorder %v3036_v42, 4  ;;  %vm3057_vm6 = vcmp.lt.s32.totalorder %v3036_v42, 3 }
 0x39c   : > { %v3054_v50 = vor.u32 %v3053_v54, %v3052_v61  ;;  %v3060_v2 = vsel %vm3058_vm11, %v3048_v23, 2102212464  ;;  %v3063_v47 = vsel %vm3055_vm0, %v3042_v28, %v3045_v32  ;;  %v3059_v20 = vsel %vm3055_vm0, %v3039_v36, %v3042_v28 }
 0x39d   : > { %v5968_v59 = vsub.s32 %v2979_v4, %v2982_v24  ;;  %v3061_v30 = vsel %vm3057_vm6, %v3045_v32, %v3060_v2  ;;  %v3064_v62 = vsel %vm3058_vm11, %v3051_v57, 920167782  ;;  %vm3056_vm9 = vcmp.lt.s32.totalorder %v3036_v42, 2 }
 0x39e   : > { %v3065_v34 = vsel %vm3057_vm6, %v3048_v23, %v3064_v62  ;;  %v3067_v46 = vsel %vm3055_vm0, %v3045_v32, %v3048_v23  ;;  %v3068_v41 = vsel %vm3058_vm11, %v3054_v50, 1326507024  ;;  %v5970_v19 = vor.u32 4788187, %v2789_v15 }
 0x39f   : > { %v2985_v53 = vsub.s32 0, %v5968_v59  ;;  %v3066_v43 = vsel %vm3056_vm9, %v3063_v47, %v3065_v34  ;;  %v3069_v60 = vsel %vm3057_vm6, %v3051_v57, %v3068_v41  ;;  %v3062_v39 = vsel %vm3056_vm9, %v3059_v20, %v3061_v30 }
 0x3a0   : > { %v3070_v56 = vsel %vm3056_vm9, %v3067_v46, %v3069_v60  ;;  %v5974_v0 = vmul.u32.u64.low %v5941_v27, %v3066_v43  ;;  %v5975_v18 = vmul.u32.u64.high %v5941_v27, %v3066_v43, %v5974_v0  ;;  %v2691_v4 = vxor.u32 2147483648, %v5943_v52 }
 0x3a1   : > { %v3571_v42 = vmin.u32 %v2985_v53, %v5968_v59  ;;  %v5981_v38 = vmul.u32.u64.low %v5941_v27, %v3070_v56  ;;  %v5982_v16 = vmul.u32.u64.high %v5941_v27, %v3070_v56, %v5981_v38  ;;  %vm3219_vm1 = vweird.f32 %v5202_v35  ;;  %v6505_v35 = vld [vmem:[#allocation6_spill] sm:$0xff] }
 0x3a2   : > { %v5985_v31 = vor.u32 %v2785_v10, %v2784_v58  ;;  %v2975_v28 = vadd.s32 %v5898_v48, %v5908_v63  ;;  %v3220_v32 = vadd.s32 3, %v3216_v55  ;;  %v2901_v7 = vsub.s32 4, %v5395_v13  ;;  %v6506_v38 = vld [vmem:[#allocation10_spill] sm:$0xff] }
 0x3a3   : > { %v2791_v44 = vand.u32 2147483647, %v5970_v19  ;;  %v2987_v36 = vclz %v3571_v42  ;;  %v3078_v23 = vmul.u32 %v5941_v27, %v3062_v39  ;;  %v2912_v57 = vxor.u32 2147483648, %v5754_v25 }
 0x3a4   : > { %v3081_v61 = vadd.s32 1, %v5975_v18  ;;  %v3221_v54 = vand.u32 3, %v3220_v32  ;;  %v2902_v58 = vsel %vm2817_vm10, %v2901_v7, %v5395_v13  ;;  %v2589_v10 = vsub.s32 4, %v5273_v40 }
 0x3a5   : > { %v3572_v48 = vadd.s32 4294967294, %v2987_v36  ;;  %vm3080_vm5 = vc.u32 %v5982_v16, %v5974_v0  ;;  %v2904_v63 = vsel %vm5636_vm12, 0, %v2902_v58  ;;  %v2915_v27 = vxor.u32 2147483648, %v5749_v3 }
 0x3a6   : > { %v3082_v55 = vsel %vm3080_vm5, %v3081_v61, %v5975_v18  ;;  %vm3222_vm15 = vcmp.lt.s32.totalorder %v3221_v54, 2  ;;  %vm3223_vm4 = vcmp.eq.s32.totalorder %v3221_v54, 0  ;;  %vm3226_vm0 = vcmp.eq.s32.totalorder %v3221_v54, 2 }
 0x3a7   : > { %vm3573_vm11 = vcmp.lt.s32.totalorder %v3572_v48, 0  ;;  %v3083_v15 = vadd.s32 %v3082_v55, %v3078_v23  ;;  %v3225_v13 = vsel %vm3223_vm4, %v5737_v22, %v3224_v45  ;;  %v3228_v24 = vsel %vm3226_vm0, %v3227_v17, %v5740_v49  ;;  %v6511_v55 = vld [vmem:[#allocation5_spill] sm:$0xff] }
 0x3a8   : > { %vm2907_vm10 = vweird.f32 %v5208_v29  ;;  %v2990_v37 = vsel %vm3573_vm11, 0, %v3572_v48  ;;  %v3229_v50 = vsel %vm3222_vm15, %v3225_v13, %v3228_v24  ;;  %v2908_v2 = vadd.s32 3, %v2904_v63 }
 0x3a9   : > { %v2590_v47 = vsel %vm2505_vm14, %v2589_v10, %v5273_v40  ;;  %v2991_v20 = vsub.s32 32, %v2990_v37  ;;  %v2995_v30 = vsub.s32 4294967266, %v2990_v37  ;;  %v3084_v62 = vadd.s32 536870912, %v3083_v15 }
 0x3aa   : > { %v2600_v34 = vxor.u32 2147483648, %v5576_v33  ;;  %v2992_v45 = vshll.u32 %v5968_v59, %v2990_v37  ;;  %v3230_v22 = vsel %vm3219_vm1, nan, %v3229_v50  ;;  %v2909_v49 = vand.u32 3, %v2908_v2 }
 0x3ab   : > { %v2592_v17 = vsel %vm5483_vm3, 0, %v2590_v47  ;;  %v2993_v46 = vshrl.u32 %v2975_v28, %v2991_v20  ;;  %v2996_v41 = vadd.s32 127, %v2995_v30  ;;  %v6020_v53 = vshrl.u32 %v3084_v62, 30  ;;  %3629 = vmatpush3.msra.mxu1 %v3230_v22  ;;  %v6513_v20 = vld [vmem:[#allocation15_spill] sm:$0xff]  ;;  %v6516_v62 = vld [vmem:[#allocation16_spill] sm:$0xff] }
 0x3ac   : > { %v2596_v40 = vadd.s32 3, %v2592_v17  ;;  %vm2609_vm14 = vcmp.lt.s32.totalorder %v5604_v9, 0  ;;  %3630 = vmatprep.subr.mxu1 %v6447_v5  ;;  %vm2911_vm12 = vcmp.eq.s32.totalorder %v2909_v49, 0  ;;  %vm2914_vm6 = vcmp.eq.s32.totalorder %v2909_v49, 2 }
 0x3ad   : > { %v2603_v59 = vxor.u32 2147483648, %v5573_v6  ;;  %v2277_v43 = vsub.s32 4, %v6505_v35  ;;  %v2994_v60 = vor.u32 %v2993_v46, %v2992_v45  ;;  %v2997_v39 = vshll.u32 %v2996_v41, 23 }
 0x3ae   : > { %v3086_v26 = vshll.u32 %v6020_v53, 30  ;;  %v2913_v56 = vsel %vm2911_vm12, %v5749_v3, %v2912_v57  ;;  %vm2910_vm3 = vcmp.lt.s32.totalorder %v2909_v49, 2  ;;  %v2916_v18 = vsel %vm2914_vm6, %v2915_v27, %v5754_v25 }
 0x3af   : > { %v2597_v42 = vand.u32 3, %v2596_v40  ;;  %v2278_v28 = vsel %vm2193_vm13, %v2277_v43, %v6505_v35  ;;  %v6507_v32 = vand.u32 2147483647, %v5604_v9  ;;  %v2998_v36 = vor.u32 4788187, %v2997_v39  ;;  %v6521_v40 = vld [vmem:[#allocation12_spill] sm:$0xff] }
 0x3b0   : > { %v3001_v23 = vcvt.s32.f32 %v2994_v60  ;;  %v6038_v61 = vsub.s32 %v3083_v15, %v3086_v26  ;;  %v2917_v54 = vsel %vm2910_vm3, %v2913_v56, %v2916_v18  ;;  %v2793_v48 = vcvt.s32.f32 %v5985_v31  ;;  %v6512_v31 = vld [vmem:[#allocation23_spill] sm:$0xff]  ;;  %v6093_v60 = vld [vmem:[%s6306_s4] sm:$0x7] }
 0x3b1   : > { %vm6034_vm9 = vcmp.le.f32.partialorder %v6507_v32, 0.7853982  ;;  %v2918_v3 = vsel %vm2907_vm10, nan, %v2917_v54  ;;  %vm2598_vm1 = vcmp.lt.s32.totalorder %v2597_v42, 2  ;;  %vm2599_vm5 = vcmp.eq.s32.totalorder %v2597_v42, 0 }
 0x3b2   : > { %vm2602_vm15 = vcmp.eq.s32.totalorder %v2597_v42, 2  ;;  %v2999_v25 = vand.u32 2147483647, %v2998_v36  ;;  %v3089_v57 = vsub.s32 0, %v6038_v61  ;;  %3631 = vmatpush3.msra.mxu1 %v2918_v3  ;;  %v2601_v58 = vsel %vm2599_vm5, %v5573_v6, %v2600_v34  ;;  %v6517_v34 = vld [vmem:[#allocation22_spill] sm:$0xff] }
 0x3b3   : > { %v2604_v10 = vsel %vm2602_vm15, %v2603_v59, %v5576_v33  ;;  %3632 = vmatprep.subr.mxu1 %v6447_v5  ;;  %vm2595_vm13 = vweird.f32 %v5188_v51  ;;  %v2280_v27 = vsel %vm5507_vm8, 0, %v2278_v28  ;;  %vm2297_vm4 = vcmp.lt.s32.totalorder %v6511_v55, 0 }
 0x3b4   : > { %v2605_v63 = vsel %vm2598_vm1, %v2601_v58, %v2604_v10  ;;  %v3002_v15 = vmul.f32 %v3001_v23, %v2999_v25  ;;  %v3575_v13 = vmin.u32 %v3089_v57, %v6038_v61  ;;  %v2284_v37 = vadd.s32 3, %v2280_v27 }
 0x3b5   : > { %v2606_v24 = vsel %vm2595_vm13, nan, %v2605_v63  ;;  %v2481_v6 = vcvt.s32.f32 %v5923_v12  ;;  %v2794_v33 = vmul.f32 %v2793_v48, %v2791_v44  ;;  %v2288_v50 = vxor.u32 2147483648, %v6512_v31  ;;  %v6514_v12 = vld [vmem:[#allocation17_spill] sm:$0xff] }
 0x3b6   : > { %3633 = vmatpush3.msra.mxu1 %v2606_v24  ;;  %v2692_v51 = vsel %vm2609_vm14, %v2691_v4, %v5943_v52  ;;  %v3091_v2 = vclz %v3575_v13  ;;  %v2285_v47 = vand.u32 3, %v2284_v37  ;;  %v2291_v30 = vxor.u32 2147483648, %v6513_v20  ;;  %v6529_v63 = vld [vmem:[#allocation21_spill] sm:$0xff] }
 0x3b7   : > { %3634 = vmatprep.subr.mxu1 %v6447_v5  ;;  %vm3955_vm8 = vmmov 0   ;;  %v6515_v19 = vshll.u32 %v6514_v12, 23  ;;  %vm2713_vm0 = vcmp.lt.s32.totalorder %v6516_v62, 0  ;;  %vm2921_vm11 = vcmp.lt.s32.totalorder %v6517_v34, 0  ;;  %v6530_v24 = vld [vmem:[#allocation25_spill] sm:$0xff] }
 0x3b8   : > { %3636 = vmatprep.mubr.msk.f32.mxu1 %vm3955_vm8, %v6447_v5  ;;  %v3003_v45 = vxor.u32 2147483648, %v3002_v15  ;;  %v2379_v52 = vxor.u32 2147483648, %v5917_v21  ;;  %v2482_v4 = vmul.f32 %v2481_v6, %v2479_v1  ;;  %v3576_v22 = vadd.s32 4294967294, %v3091_v2  ;;  %v6531_v6 = vld [vmem:[#allocation24_spill] sm:$0xff] }
 0x3b9   : > { %v6066_v44 = vor.u32 4788187, %v6515_v19  ;;  %vm2287_vm10 = vcmp.eq.s32.totalorder %v2285_v47, 0  ;;  %v6518_v49 = vand.u32 2147483647, %v6511_v55  ;;  %v2695_v17 = vsel %vm6034_vm9, %v5604_v9, %v2692_v51  ;;  %v6532_v2 = vld [vmem:[#allocation20_spill] sm:$0xff] }
 0x3ba   : > { %v2795_v46 = vxor.u32 2147483648, %v2794_v33  ;;  %v2289_v41 = vsel %vm2287_vm10, %v6513_v20, %v2288_v50  ;;  %vm2290_vm6 = vcmp.eq.s32.totalorder %v2285_v47, 2  ;;  %vm2401_vm3 = vcmp.lt.s32.totalorder %v6521_v40, 0 }
 0x3bb   : > { %vm6075_vm12 = vcmp.le.f32.partialorder %v6518_v49, 0.7853982  ;;  %v3079_v11 = vadd.s32 %v5974_v0, %v5982_v16  ;;  %vm3577_vm1 = vcmp.lt.s32.totalorder %v3576_v22, 0  ;;  %vm2286_vm5 = vcmp.lt.s32.totalorder %v2285_v47, 2 }
 0x3bc   : > { %v2292_v1 = vsel %vm2290_vm6, %v2291_v30, %v6512_v31  ;;  %v3004_v59 = vsel %vm2921_vm11, %v3003_v45, %v3002_v15  ;;  %v3094_v35 = vsel %vm3577_vm1, 0, %v3576_v22  ;;  %vm2283_vm15 = vweird.f32 %v6506_v38 }
 0x3bd   : > { %v2293_v43 = vsel %vm2286_vm5, %v2289_v41, %v2292_v1  ;;  %v3095_v39 = vsub.s32 32, %v3094_v35  ;;  %v3099_v26 = vsub.s32 4294967266, %v3094_v35  ;;  %v3005_v0 = vsub.s32 4, %v5962_v14 }
 0x3be   : > { %v2294_v56 = vsel %vm2283_vm15, nan, %v2293_v43  ;;  %v2380_v16 = vsel %vm2297_vm4, %v2379_v52, %v5917_v21  ;;  %3852 = vcosq.f32 %v2695_v17  ;;  %v2796_v18 = vsel %vm2713_vm0, %v2795_v46, %v2794_v33 }
 0x3bf   : > { %v6522_v42 = vand.u32 2147483647, %v6517_v34  ;;  %3635 = vmatpush3.msra.mxu1 %v2294_v56  ;;  %v3096_v32 = vshll.u32 %v6038_v61, %v3094_v35  ;;  %v3097_v36 = vshrl.u32 %v3079_v11, %v3095_v39  ;;  %v3100_v23 = vadd.s32 127, %v3099_v26  ;;  %v6540_v11 = vld [vmem:[#allocation14_spill] sm:$0xff] }
 0x3c0   : > { %vm6525_vm8 = vcmask 261120   ;;  %v2483_v21 = vxor.u32 2147483648, %v2482_v4  ;;  %3854 = vsinq.f32 %v2695_v17  ;;  %v6526_v54 = vand.u32 2147483647, %v6516_v62  ;;  %v6539_v17 = vld [vmem:[#allocation19_spill] sm:$0xff] }
 0x3c1   : > { %vm6103_vm13 = vcmp.le.f32.partialorder %v6522_v42, 0.7853982  ;;  %3637 = vmatmul.mubr.msk.f32.vlgmr.msra.gmra.mxu1 %vm6525_vm8, %v6093_v60  ;;  %v2797_v25 = vsub.s32 4, %v5869_v8  ;;  %v3098_v57 = vor.u32 %v3097_v36, %v3096_v32  ;;  %v3101_v58 = vshll.u32 %v3100_v23, 23  ;;  %v6541_v42 = vld [vmem:[#allocation7_spill] sm:$0xff] }
 0x3c2   : > { %v3007_v28 = vsel %vm6103_vm13, %v6517_v34, %v3004_v59  ;;  %vm6115_vm10 = vcmp.le.f32.partialorder %v6526_v54, 0.7853982  ;;  %v3006_v61 = vsel %vm2921_vm11, %v3005_v0, %v5962_v14  ;;  %v2167_v48 = vand.u32 2147483647, %v6066_v44 }
 0x3c3   : > { %v2799_v10 = vsel %vm6115_vm10, %v6516_v62, %v2796_v18  ;;  %v2169_v29 = vcvt.s32.f32 %v6529_v63  ;;  %3856 = vcosq.f32 %v3007_v28  ;;  %v3109_v27 = vsub.s32 4, %v6020_v53 }
 0x3c4   : > { %v2383_v15 = vsel %vm6075_vm12, %v6511_v55, %v2380_v16  ;;  %3858 = vsinq.f32 %v3007_v28  ;;  %v3102_v13 = vor.u32 4788187, %v3101_v58  ;;  %v2693_v37 = vsub.s32 4, %v6530_v24 }
 0x3c5   : > { %v2484_v14 = vsel %vm2401_vm3, %v2483_v21, %v2482_v4  ;;  %vm3025_vm11 = vcmp.lt.s32.totalorder %v6531_v6, 0  ;;  %v3008_v33 = vsel %vm6103_vm13, 0, %v3006_v61  ;;  %3860 = vcosq.f32 %v2799_v10 }
 0x3c6   : > { %v3103_v31 = vand.u32 2147483647, %v3102_v13  ;;  %v3105_v50 = vcvt.s32.f32 %v3098_v57  ;;  %v2798_v51 = vsel %vm2713_vm0, %v2797_v25, %v5869_v8  ;;  %3862 = vsinq.f32 %v2799_v10 }
 0x3c7   : > { %3864 = vcosq.f32 %v6532_v2  ;;  %v3110_v47 = vsel %vm3025_vm11, %v3109_v27, %v6020_v53  ;;  %v6533_v20 = vand.u32 2147483647, %v6521_v40  ;;  %v2170_v12 = vmul.f32 %v2169_v29, %v2167_v48  ;;  %v6545_v27 = vld [vmem:[#allocation13_spill] sm:$0xff] }
 0x3c8   : > { %v3106_v19 = vmul.f32 %v3105_v50, %v3103_v31  ;;  %v2694_v44 = vsel %vm2609_vm14, %v2693_v37, %v6530_v24  ;;  %3866 = vsinq.f32 %v2383_v15  ;;  %v6536_v45 = vand.u32 2147483647, %v6531_v6 }
 0x3c9   : > { %vm6147_vm6 = vcmp.le.f32.partialorder %v6533_v20, 0.7853982  ;;  %v3012_v52 = vadd.s32 3, %v3008_v33  ;;  %v2800_v4 = vsel %vm6115_vm10, 0, %v2798_v51  ;;  %v2485_v46 = vsub.s32 4, %v6539_v17 }
 0x3ca   : > { %v2487_v8 = vsel %vm6147_vm6, %v6521_v40, %v2484_v14  ;;  %vm6159_vm0 = vcmp.le.f32.partialorder %v6536_v45, 0.7853982  ;;  %v3107_v22 = vxor.u32 2147483648, %v3106_v19  ;;  %v2696_v41 = vsel %vm6034_vm9, 0, %v2694_v44  ;;  %v6546_v14 = vld [vmem:[#allocation9_spill] sm:$0xff]  ;;  %v6547_v44 = vld [vmem:[#allocation8_spill] sm:$0xff] }
 0x3cb   : > { %v3112_v49 = vsel %vm6159_vm0, 0, %v3110_v47  ;;  %3868 = vcosq.f32 %v2487_v8  ;;  %v2381_v1 = vsub.s32 4, %v6540_v11  ;;  %v6171_v59 = vpop.eup %3852  ;;  %v2171_v35 = vxor.u32 2147483648, %v2170_v12 }
 0x3cc   : > { %3870 = vsinq.f32 %v2487_v8  ;;  %v3108_v43 = vsel %vm3025_vm11, %v3107_v22, %v3106_v19  ;;  %v2804_v39 = vadd.s32 3, %v2800_v4  ;;  %v3116_v56 = vadd.s32 3, %v3112_v49 }
 0x3cd   : > { %3872 = vcosq.f32 %v2383_v15  ;;  %v3111_v26 = vsel %vm6159_vm0, %v6531_v6, %v3108_v43  ;;  %v6179_v7 = vand.u32 3, %v3012_v52  ;;  %v3855_v0 = vpop.eup %3854  ;;  %v2700_v16 = vadd.s32 3, %v2696_v41 }
 0x3ce   : > { %3874 = vsinq.f32 %v6532_v2  ;;  %v2486_v18 = vsel %vm2401_vm3, %v2485_v46, %v6539_v17  ;;  %vm2089_vm14 = vcmp.lt.s32.totalorder %v6541_v42, 0  ;;  %v2382_v38 = vsel %vm2297_vm4, %v2381_v1, %v6540_v11 }
 0x3cf   : > { %3876 = vcosq.f32 %v3111_v26  ;;  %v2172_v32 = vsel %vm2089_vm14, %v2171_v35, %v2170_v12  ;;  %v6190_v36 = vand.u32 3, %v2804_v39  ;;  %v6192_v21 = vand.u32 3, %v3116_v56 }
 0x3d0   : > { %3878 = vsinq.f32 %v3111_v26  ;;  %v3857_v28 = vpop.eup %3856  ;;  %vm3015_vm9 = vcmp.eq.s32.totalorder %v6179_v7, 0  ;;  %vm3018_vm3 = vcmp.eq.s32.totalorder %v6179_v7, 2  ;;  %v2488_v54 = vsel %vm6147_vm6, 0, %v2486_v18 }
 0x3d1   : > { %v3859_v23 = vpop.eup %3858  ;;  %vm3014_vm1 = vcmp.lt.s32.totalorder %v6179_v7, 2  ;;  %v2701_v25 = vand.u32 3, %v2700_v16  ;;  %v2704_v57 = vxor.u32 2147483648, %v3855_v0  ;;  %v2384_v58 = vsel %vm6075_vm12, 0, %v2382_v38 }
 0x3d2   : > { %v3861_v3 = vpop.eup %3860  ;;  %v6542_v61 = vand.u32 2147483647, %v6541_v42  ;;  %v3019_v63 = vxor.u32 2147483648, %v3857_v28  ;;  %v2707_v29 = vxor.u32 2147483648, %v6171_v59  ;;  %v2173_v15 = vsub.s32 4, %v6545_v27 }
 0x3d3   : > { %v3863_v48 = vpop.eup %3862  ;;  %v3016_v5 = vxor.u32 2147483648, %v3859_v23  ;;  %vm2806_vm12 = vcmp.lt.s32.totalorder %v6190_v36, 2  ;;  %v2492_v37 = vadd.s32 3, %v2488_v54  ;;  %v2069_v33 = vsub.s32 4, %v6546_v14 }
 0x3d4   : > { %vm6203_vm4 = vcmp.le.f32.partialorder %v6542_v61, 0.7853982  ;;  %v6212_v24 = vpop.eup %3864  ;;  %vm3122_vm5 = vcmp.eq.s32.totalorder %v6192_v21, 2  ;;  %vm2810_vm15 = vcmp.eq.s32.totalorder %v6190_v36, 2  ;;  %v2811_v31 = vxor.u32 2147483648, %v3861_v3 }
 0x3d5   : > { %v2175_v13 = vsel %vm6203_vm4, %v6541_v42, %v2172_v32  ;;  %v2388_v50 = vadd.s32 3, %v2384_v58  ;;  %v2174_v51 = vsel %vm2089_vm14, %v2173_v15, %v6545_v27  ;;  %v3867_v2 = vpop.eup %3866  ;;  %vm3119_vm13 = vcmp.eq.s32.totalorder %v6192_v21, 0 }
 0x3d6   : > { %3880 = vcosq.f32 %v2175_v13  ;;  %v2808_v47 = vxor.u32 2147483648, %v3863_v48  ;;  %vm2703_vm8 = vcmp.eq.s32.totalorder %v2701_v25, 0  ;;  %vm2706_vm10 = vcmp.eq.s32.totalorder %v2701_v25, 2 }
 0x3d7   : > { %3882 = vsinq.f32 %v2175_v13  ;;  %vm3118_vm11 = vcmp.lt.s32.totalorder %v6192_v21, 2  ;;  %vm3011_vm6 = vweird.f32 %v6517_v34  ;;  %v3020_v30 = vsel %vm3018_vm3, %v3019_v63, %v3859_v23 }
 0x3d8   : > { %v3869_v20 = vpop.eup %3868  ;;  %v2705_v12 = vsel %vm2703_vm8, %v6171_v59, %v2704_v57  ;;  %v2176_v19 = vsel %vm6203_vm4, 0, %v2174_v51  ;;  %v2070_v8 = vsel %vm1985_vm2, %v2069_v33, %v6546_v14  ;;  %vm3115_vm0 = vweird.f32 %v6531_v6 }
 0x3d9   : > { %v3871_v45 = vpop.eup %3870  ;;  %v3017_v53 = vsel %vm3015_vm9, %v3857_v28, %v3016_v5  ;;  %vm2803_vm14 = vweird.f32 %v6516_v62  ;;  %v2708_v52 = vsel %vm2706_vm10, %v2707_v29, %v3855_v0  ;;  %v2493_v4 = vand.u32 3, %v2492_v37 }
 0x3da   : > { %v2072_v49 = vsel %vm5691_vm7, 0, %v2070_v8  ;;  %v3873_v17 = vpop.eup %3872  ;;  %vm2807_vm3 = vcmp.eq.s32.totalorder %v6190_v36, 0  ;;  %v2812_v46 = vsel %vm2810_vm15, %v2811_v31, %v3863_v48  ;;  %vm2702_vm2 = vcmp.lt.s32.totalorder %v2701_v25, 2 }
 0x3db   : > { %v2389_v41 = vand.u32 3, %v2388_v50  ;;  %v3875_v11 = vpop.eup %3874  ;;  %v2809_v1 = vsel %vm2807_vm3, %v3861_v3, %v2808_v47  ;;  %v2499_v59 = vxor.u32 2147483648, %v3869_v20  ;;  %v2180_v35 = vadd.s32 3, %v2176_v19 }
 0x3dc   : > { %v2076_v43 = vadd.s32 3, %v2072_v49  ;;  %v3877_v39 = vpop.eup %3876  ;;  %v3021_v26 = vsel %vm3014_vm1, %v3017_v53, %v3020_v30  ;;  %vm2699_vm9 = vweird.f32 %v5604_v9  ;;  %v2709_v56 = vsel %vm2702_vm2, %v2705_v12, %v2708_v52 }
 0x3dd   : > { %v2496_v0 = vxor.u32 2147483648, %v3871_v45  ;;  %v2392_v16 = vxor.u32 2147483648, %v3867_v2  ;;  %v3879_v18 = vpop.eup %3878  ;;  %v3123_v38 = vxor.u32 2147483648, %v3877_v39  ;;  %vm2495_vm7 = vcmp.eq.s32.totalorder %v2493_v4, 0 }
 0x3de   : > { %vm2498_vm4 = vcmp.eq.s32.totalorder %v2493_v4, 2  ;;  %v2395_v28 = vxor.u32 2147483648, %v3873_v17  ;;  %v3120_v32 = vxor.u32 2147483648, %v3879_v18  ;;  %v2813_v23 = vsel %vm2806_vm12, %v2809_v1, %v2812_v46 }
 0x3df   : > { %vm2391_vm15 = vcmp.eq.s32.totalorder %v2389_v41, 0  ;;  %vm2394_vm8 = vcmp.eq.s32.totalorder %v2389_v41, 2  ;;  %v3124_v7 = vsel %vm3122_vm5, %v3123_v38, %v3879_v18  ;;  %v2500_v54 = vsel %vm2498_vm4, %v2499_v59, %v3871_v45 }
 0x3e0   : > { %v2181_v3 = vand.u32 3, %v2180_v35  ;;  %v2077_v25 = vand.u32 3, %v2076_v43  ;;  %v3121_v57 = vsel %vm3119_vm13, %v3877_v39, %v3120_v32  ;;  %v2497_v58 = vsel %vm2495_vm7, %v3869_v20, %v2496_v0 }
 0x3e1   : > { %v2080_v61 = vxor.u32 2147483648, %v3875_v11  ;;  %v2083_v10 = vxor.u32 2147483648, %v6212_v24  ;;  %v3125_v48 = vsel %vm3118_vm11, %v3121_v57, %v3124_v7  ;;  %v3022_v36 = vsel %vm3011_vm6, nan, %v3021_v26 }
 0x3e2   : > { %v2393_v63 = vsel %vm2391_vm15, %v3873_v17, %v2392_v16  ;;  %v2396_v29 = vsel %vm2394_vm8, %v2395_v28, %v3867_v2  ;;  %v3126_v15 = vsel %vm3115_vm0, nan, %v3125_v48  ;;  %v2814_v13 = vsel %vm2803_vm14, nan, %v2813_v23 }
 0x3e3   : > { %v3881_v27 = vpop.eup %3880  ;;  %vm2494_vm1 = vcmp.lt.s32.totalorder %v2493_v4, 2  ;;  %vm2390_vm12 = vcmp.lt.s32.totalorder %v2389_v41, 2  ;;  %3265 = vmatprep.subr.mxu0 %v3126_v15  ;;  %vm2079_vm5 = vcmp.eq.s32.totalorder %v2077_v25, 0  ;;  %vm2082_vm13 = vcmp.eq.s32.totalorder %v2077_v25, 2 }
 0x3e4   : > { %v2501_v5 = vsel %vm2494_vm1, %v2497_v58, %v2500_v54  ;;  %v2187_v37 = vxor.u32 2147483648, %v3881_v27  ;;  %v3883_v21 = vpop.eup %3882  ;;  %3266 = vmatpush1.msra.mxu0 %v3022_v36  ;;  %v2397_v34 = vsel %vm2390_vm12, %v2393_v63, %v2396_v29  ;;  %vm2186_vm10 = vcmp.eq.s32.totalorder %v2181_v3, 2 }
 0x3e5   : > { %v2081_v14 = vsel %vm2079_vm5, %v6212_v24, %v2080_v61  ;;  %v2084_v33 = vsel %vm2082_vm13, %v2083_v10, %v3875_v11  ;;  %3267 = vmatprep.subr.mxu0 %v2814_v13  ;;  %v2710_v6 = vsel %vm2699_vm9, nan, %v2709_v56  ;;  %vm2491_vm11 = vweird.f32 %v6521_v40 }
 0x3e6   : > { %v2184_v62 = vxor.u32 2147483648, %v3883_v21  ;;  %v2188_v31 = vsel %vm2186_vm10, %v2187_v37, %v3883_v21  ;;  %3268 = vmatpush1.msra.mxu0 %v2710_v6  ;;  %v2502_v50 = vsel %vm2491_vm11, nan, %v2501_v5  ;;  %vm2387_vm6 = vweird.f32 %v6511_v55  ;;  %v3236_v55 = vpop.permute.xlu0 %3235 }
 0x3e7   : > { %vm2183_vm0 = vcmp.eq.s32.totalorder %v2181_v3, 0  ;;  %vm2078_vm14 = vcmp.lt.s32.totalorder %v2077_v25, 2  ;;  %3269 = vmatprep.subr.mxu0 %v2502_v50  ;;  %v2398_v51 = vsel %vm2387_vm6, nan, %v2397_v34  ;;  %vm2182_vm3 = vcmp.lt.s32.totalorder %v2181_v3, 2 }
 0x3e8   : > { %v2185_v24 = vsel %vm2183_vm0, %v3881_v27, %v2184_v62  ;;  %v2085_v2 = vsel %vm2078_vm14, %v2081_v14, %v2084_v33  ;;  %3270 = vmatpush1.msra.mxu0 %v2398_v51  ;;  %vm2179_vm2 = vweird.f32 %v6541_v42  ;;  %vm2075_vm9 = vweird.f32 %v6547_v44 }
 0x3e9   : > { %v2189_v9 = vsel %vm2182_vm3, %v2185_v24, %v2188_v31  ;;  %v2086_v47 = vsel %vm2075_vm9, nan, %v2085_v2  ;;  %vm6549_vm7 = vcmask 261120  }
 0x3ea   : > { %v2190_v40 = vsel %vm2179_vm2, nan, %v2189_v9 }
 0x3eb   : > { %3271 = vmatprep.subr.mxu0 %v2190_v40 }
 0x3ec   : > { %3272 = vmatpush1.msra.mxu0 %v2086_v47 }
 0x3ed   : > { %3582 = vmatmul.mubr.msk.f32.vlgmr.msra.gmra.mxu0 %vm6549_vm7, %v6093_v60 }
 0x481   : > { %v3378_v20 = vpop.f32.mrf.mxu1 }
 0x482   : > { %v3379_v30 = vadd.f32 %v3378_v20, %v3236_v55 }
 0x483   : > { %v3638_v12 = vpop.f32.mrf.mxu1 }
 0x484   : > { %3387 = vst [vmem:[%s272_s15 + $0x8] sm:$0x7] %v3379_v30 }
 0x4ad   : > { %v3307_v42 = vpop.f32.mrf.mxu0 }
 0x4ae   : > { %v3308_v44 = vadd.f32 %v3307_v42, %v3236_v55 }
 0x4af   : > { %v3309_v19 = vpop.f32.mrf.mxu0 }
 0x4b0   : > { %v3310_v8 = vadd.f32 %v3309_v19, %v3236_v55 }
 0x4b2   : > { %v3384_v45 = vcombine.low %v3308_v44, %v3310_v8 }
 0x4b4   : > { %3386 = vst [vmem:[%s272_s15] sm:$0x77] %v3384_v45 }
 0x4b5   : > { %3897 = shalt.err (!%p3894_p3)
}
 0x4b6   : > { %s3898_s29 = scalar_lea.hbm %s3401_s19, 192  ;;  %s3902_s14 = scalar_lea.hbm %s6309_s7, 576 }
 0x4b7   : > { %p3899_p4 = scmp.ne.s32.totalorder %s3401_s19, %s3898_s29  ;;  %p3903_p9 = scmp.lt.s32.totalorder %s3401_s19, %s6309_s7 }
 0x4b8   : > { %p3904_p10 = scmp.lt.s32.totalorder %s3902_s14, %s3898_s29 }
 0x4b9   : > { %p3900_p7 = pnand %p3899_p4, %p4035_p5 }
 0x4ba   : > { %p3905_p11 = por %p3904_p10, %p3903_p9 }
 0x4bb   : > { %p3901_p8 = pneg %p3900_p7 }
 0x4bd   : > { %p3906_p12 = pnand %p3905_p11, %p3901_p8 }
 0x4bf   : > { %3909 = shalt.err (!%p3906_p12)
}
 0x4c0   : > { %3736 = dma.vmem_to_hbm [thread:$0]  (%p4035_p5), %s3404_s17, 192, %s3401_s19, %s3389_s20  }
 0x4c1 PF: > { %p3742_p13 = scmp.ge.s32.totalorder %s3944_s27, 2  ;;  %s3415_s18 = sand.u32 1, %s3932_s24  }
 0x4c2   : > { %s3416_s13 = scalar_lea.sflag [#allocation3], %s3415_s18 }
 0x4c3   : > { %p3739_p0 = pnand %p3742_p13, %p4039_p6 }
 0x4c5   : > { %p3740_p1 = pneg %p3739_p0 }
 0x4c7   : > { %3927 = dma.done.wait (%p3740_p1), %s3416_s13, 192  }
 0x4c8   : > { %3929 = vsyncadd (%p3740_p1), %s3416_s13, 4294967104  ;;  %p17_p2 = scmp.ge.s32.totalorder %s4022_s30, 5   ;;  %s6550_s24 = smov %s3936_s25 }
 0x4c9   : > { %s6551_s25 = smov %s3940_s26  ;;  %s6552_s26 = smov %s4033_s10 }
 0x4ca   : > { %s6553_s27 = smov %s4022_s30  ;;  %19 = sbr.rel (!%p17_p2) target bundleno = 3 (0x3), region = 83 }
 0x4cf   :  { %3421 = vsyncpa [#allocation3], 1 }
 0x4d0   :  { %3423 = vsyncpa [#allocation3 + $0x1], 1 }

</bundles_post_ra>
